<compile_context>
chip_gen: v6e
topology: v6e:2x2x1
jax: 0.10.0
libtpu: 0.0.40
codegen_flags: <defaults>
</compile_context>

<pallas_src>
import functools

import jax
import jax.numpy as jnp
from jax import lax
from jax.experimental import pallas as pl
from jax.experimental.pallas import tpu as pltpu

INPUT_SIZE = 19
HIDDEN_SIZE = 32
NUM_LAYERS = 2          # hard-wired as 2+2 stacked cells below (matches default)
OUTPUT_SIZE = 4
NUM_PARAMS = 3          # stands in for len(NORMALIZED_PARAMS_NAMES)

_H = HIDDEN_SIZE
_G4 = 4 * _H            # 128: width of packed state / one gate group
_G12 = 12 * _H          # 384: sigmoid (I|F|O) span
_G16 = 16 * _H          # 512: full fused gate width
_WU_ROW0 = 32           # row offset of the block-banded recurrent matrix
_BIAS_ROW = _WU_ROW0 + _G4   # 160: fused-bias row in w_pack
_OUT_DIM = OUTPUT_SIZE * NUM_PARAMS


def _seq2seq_kernel(x_ref,      # (T*B, 32)  time-major flattened, zero-padded D
                    w_ref,      # (168, 512) packed: [We0_big ; WU_big ; bias]
                    fc_ref,     # (136, O)   packed: fc_w at rows 96:128, fc_b at 128
                    out_ref,    # (B, O)
                    xw_ref,     # VMEM scratch (T*B, 512): pre-GEMM x @ We0_big
                    *, seq_len, batch):
    T, B = seq_len, batch
    H = _H

    # ---- one-shot pre-GEMM (off the serial chain): input projection of
    # encoder layer 0, scattered straight into the fused 16H gate layout.
    xw_ref[...] = jnp.dot(x_ref[...], w_ref[0:_WU_ROW0, :],
                          preferred_element_type=jnp.float32)

    lane = lax.broadcasted_iota(jnp.int32, (B, _G4), 1)

    def step(h_all, c_all, xw):
        # One block-banded matmul covers all 4 cells: recurrent (U) and
        # inter-layer (W) contributions.  Weights/bias are re-read from VMEM
        # near each use to keep vreg live ranges short.
        g = jnp.dot(h_all, w_ref[_WU_ROW0:_WU_ROW0 + _G4, :],
                    preferred_element_type=jnp.float32)
        g = g + w_ref[_BIAS_ROW:_BIAS_ROW + 1, :]
        if xw is not None:          # encoder-layer-0 input term (fill/steady only)
            g = g + xw
        # Gate layout: [ I(128) | F(128) | O(128) | G(128) ]  -> one sigmoid
        # pass over 12H lanes, one tanh pass over 4H lanes.
        sg = jax.nn.sigmoid(g[:, :_G12])
        tg = jnp.tanh(g[:, _G12:])
        c_new = sg[:, _G4:2 * _G4] * c_all + sg[:, :_G4] * tg
        h_new = sg[:, 2 * _G4:_G12] * jnp.tanh(c_new)
        return h_new, c_new

    h_all = jnp.zeros((B, _G4), jnp.float32)
    c_all = jnp.zeros((B, _G4), jnp.float32)

    # ---- fill (wall steps 0..2): cells whose time index is still negative
    # keep their zero state (static lane masks, only 3 steps).
    for s in range(3):
        h_new, c_new = step(h_all, c_all, xw_ref[s * B:(s + 1) * B, :])
        keep = lane < (s + 1) * H
        h_all = jnp.where(keep, h_new, h_all)
        c_all = jnp.where(keep, c_new, c_all)

    # ---- steady state (wall steps 3..T-1): all 4 cells valid, no masks.
    def body(s, carry):
        h, c = carry
        off = pl.multiple_of(s * B, B)
        return step(h, c, xw_ref[pl.ds(off, B), :])

    h_all, c_all = lax.fori_loop(3, T, body, (h_all, c_all), unroll=True)

    # ---- drain (wall steps T..T+2): stale bands compute garbage that is never
    # read by a still-valid band; only the dec-layer-1 band matters at the end.
    for _ in range(3):
        h_all, c_all = step(h_all, c_all, None)

    # ---- fc on decoder_out[:, -1, :].  fc weights live in rows 96:128 of the
    # packed fc matrix, so no cross-lane slice of h_all is needed.
    out_ref[...] = (jnp.dot(h_all, fc_ref[0:_G4, :],
                            preferred_element_type=jnp.float32)
                    + fc_ref[_G4:_G4 + 1, :])


# ------------------------------ parameter init -------------------------------
def init_params(key):
    """PyTorch-style uniform(-1/sqrt(H), 1/sqrt(H)) init, deterministic."""
    bound = 1.0 / float(HIDDEN_SIZE) ** 0.5
    keys = iter(jax.random.split(key, 32))

    def u(shape):
        return jax.random.uniform(next(keys), shape, jnp.float32, -bound, bound)

    def lstm_layer(in_dim):
        w_ih = u((4 * HIDDEN_SIZE, in_dim))
        w_hh = u((4 * HIDDEN_SIZE, HIDDEN_SIZE))
        b_ih = u((4 * HIDDEN_SIZE,))
        b_hh = u((4 * HIDDEN_SIZE,))
        # transposed weights, fused bias (1, 4H); torch gate column order [i,f,g,o]
        return w_ih.T, w_hh.T, (b_ih + b_hh)[None, :]

    enc0 = lstm_layer(INPUT_SIZE)
    enc1 = lstm_layer(HIDDEN_SIZE)
    dec0 = lstm_layer(HIDDEN_SIZE)
    dec1 = lstm_layer(HIDDEN_SIZE)

    fc_w = u((_OUT_DIM, HIDDEN_SIZE))
    fc_b = u((_OUT_DIM,))
    return {
        "enc0": enc0, "enc1": enc1, "dec0": dec0, "dec1": dec1,
        "fc_w": fc_w.T,            # (H, O)
        "fc_b": fc_b[None, :],     # (1, O)
    }


# ----------------------------- wrapper-side packing ---------------------------
def _pack_params(params):
    """Pack 11 per-layer operands into (w_pack, fc_pack) with the fused
    wavefront layout: gate groups [I|F|O|G], cell order [e0|e1|d0|d1]."""
    H = _H
    tgt_group = (0, 1, 3, 2)   # torch [i, f, g, o] -> packed group [I, F, O, G]

    def place(dst, src, cell, row0):
        rows = src.shape[0]
        for s_idx in range(4):
            c0 = tgt_group[s_idx] * _G4 + cell * H
            dst = dst.at[row0:row0 + rows, c0:c0 + H].set(
                src[:, s_idx * H:(s_idx + 1) * H])
        return dst

    We0, Ue0, be0 = params["enc0"]
    We1, Ue1, be1 = params["enc1"]
    Wd0, Ud0, bd0 = params["dec0"]
    Wd1, Ud1, bd1 = params["dec1"]

    w_pack = jnp.zeros((168, _G16), jnp.float32)
    # rows 0:32 -> encoder-layer-0 input projection (D zero-padded to 32)
    w_pack = place(w_pack, We0, cell=0, row0=0)
    # rows 32:160 -> block-banded matrix applied to packed h_all
    w_pack = place(w_pack, Ue0, cell=0, row0=_WU_ROW0 + 0 * H)   # e0 recurrent
    w_pack = place(w_pack, We1, cell=1, row0=_WU_ROW0 + 0 * H)   # e1 input
    w_pack = place(w_pack, Ue1, cell=1, row0=_WU_ROW0 + 1 * H)   # e1 recurrent
    w_pack = place(w_pack, Wd0, cell=2, row0=_WU_ROW0 + 1 * H)   # d0 input
    w_pack = place(w_pack, Ud0, cell=2, row0=_WU_ROW0 + 2 * H)   # d0 recurrent
    w_pack = place(w_pack, Wd1, cell=3, row0=_WU_ROW0 + 2 * H)   # d1 input
    w_pack = place(w_pack, Ud1, cell=3, row0=_WU_ROW0 + 3 * H)   # d1 recurrent
    # row 160 -> fused biases of all four cells
    for cell, b in enumerate((be0, be1, bd0, bd1)):
        w_pack = place(w_pack, b, cell=cell, row0=_BIAS_ROW)

    fc_pack = jnp.zeros((136, _OUT_DIM), jnp.float32)
    fc_pack = fc_pack.at[3 * H:4 * H, :].set(params["fc_w"])      # rows 96:128
    fc_pack = fc_pack.at[_G4:_G4 + 1, :].set(params["fc_b"])      # row 128
    return w_pack, fc_pack


def seq2seq_forward(x, params):
    """x: (B, T, INPUT_SIZE) batch-first, float32 (matches PyTorch module)."""
    B, T, D = x.shape
    assert D == INPUT_SIZE
    assert T >= 3, "wavefront schedule assumes at least 3 time steps"

    # Pad batch to a full f32 sublane.  (For throughput, batch more sequences
    # per call toward 128/256 LHS rows before sharding across cores/chips.)
    B_pad = max(8, ((B + 7) // 8) * 8)

    x_tm = jnp.transpose(x, (1, 0, 2)).astype(jnp.float32)       # (T, B, D)
    x_tm = jnp.pad(x_tm, ((0, 0), (0, B_pad - B), (0, 32 - D)))  # pad B and D
    x_flat = x_tm.reshape(T * B_pad, 32)                         # time-major

    w_pack, fc_pack = _pack_params(params)

    vmem = pl.BlockSpec(memory_space=pltpu.MemorySpace.VMEM)
    out = pl.pallas_call(
        functools.partial(_seq2seq_kernel, seq_len=T, batch=B_pad),
        out_shape=jax.ShapeDtypeStruct((B_pad, _OUT_DIM), jnp.float32),
        in_specs=[vmem, vmem, vmem],
        out_specs=vmem,
        scratch_shapes=[pltpu.VMEM((T * B_pad, _G16), jnp.float32)],
    )(x_flat, w_pack, fc_pack)

    # out.view(-1, output_size, len(NORMALIZED_PARAMS_NAMES))
    return out[:B].reshape(B, OUTPUT_SIZE, NUM_PARAMS)


# ---------------------------- pure-JAX reference -----------------------------
def _ref_forward(x, params):
    B = x.shape[0]
    H = HIDDEN_SIZE

    def cell(x_t, h, c, W, U, b):
        g = x_t @ W + h @ U + b
        i = jax.nn.sigmoid(g[:, 0:H])
        f = jax.nn.sigmoid(g[:, H:2 * H])
        gg = jnp.tanh(g[:, 2 * H:3 * H])
        o = jax.nn.sigmoid(g[:, 3 * H:4 * H])
        c = f * c + i * gg
        return o * jnp.tanh(c), c

    def run_stack(seq, l0, l1):
        z = jnp.zeros((B, H), jnp.float32)

        def step(carry, x_t):
            h0, c0, h1, c1 = carry
            h0, c0 = cell(x_t, h0, c0, *l0)
            h1, c1 = cell(h0, h1, c1, *l1)
            return (h0, c0, h1, c1), h1

        _, outs = lax.scan(step, (z, z, z, z), seq)
        return outs                                   # (T, B, H)

    seq = jnp.transpose(x, (1, 0, 2))
    enc = run_stack(seq, params["enc0"], params["enc1"])
    dec = run_stack(enc, params["dec0"], params["dec1"])
    out = dec[-1] @ params["fc_w"] + params["fc_b"]
    return out.reshape(B, OUTPUT_SIZE, NUM_PARAMS)


if __name__ == "__main__":
    key = jax.random.PRNGKey(0)
    k_x, k_p = jax.random.split(key)

    B, T = 2, 8
    x = jax.random.normal(k_x, (B, T, INPUT_SIZE), dtype=jnp.float32)
    params = init_params(k_p)

    out = seq2seq_forward(x, params)
    out = jax.block_until_ready(out)
    assert out.shape == (B, OUTPUT_SIZE, NUM_PARAMS)

    ref = _ref_forward(x, params)
    assert jnp.allclose(out, ref, rtol=1e-3, atol=1e-3)

    print("KERNEL_OK")
</pallas_src>

<mosaic_0001>
module attributes {stable_mosaic.version = 11 : i64} {
  func.func @_seq2seq_kernel(%arg0: memref<64x32xf32, #tpu.memory_space<vmem>>, %arg1: memref<168x512xf32, #tpu.memory_space<vmem>>, %arg2: memref<136x12xf32, #tpu.memory_space<vmem>>, %arg3: memref<8x12xf32, #tpu.memory_space<vmem>>, %arg4: memref<64x512xf32, #tpu.memory_space<vmem>>) attributes {dimension_semantics = [], scalar_prefetch = 0 : i64, scratch_operands = 1 : i64, tpu.core_type = #tpu.core_type<tc>} {
    %c0 = arith.constant 0 : index
    %c0_0 = arith.constant 0 : index
    %0 = vector.load %arg0[%c0, %c0_0] : memref<64x32xf32, #tpu.memory_space<vmem>>, vector<64x32xf32>
    %c0_1 = arith.constant 0 : index
    %c0_2 = arith.constant 0 : index
    %1 = vector.load %arg1[%c0_1, %c0_2] : memref<168x512xf32, #tpu.memory_space<vmem>>, vector<32x512xf32>
    %cst = arith.constant dense<0.000000e+00> : vector<64x512xf32>
    %2 = tpu.matmul %0, %1, %cst {dimension_numbers = #tpu.dot_dimension_numbers<[1], [0], [0], [1], [0, 0, 1, 1], [], []>} : vector<64x32xf32>, vector<32x512xf32>, vector<64x512xf32> -> vector<64x512xf32>
    %c0_3 = arith.constant 0 : index
    %c0_4 = arith.constant 0 : index
    %3 = vector.load %arg4[%c0_3, %c0_4] : memref<64x512xf32, #tpu.memory_space<vmem>>, vector<64x512xf32>
    tpu.vector_store %arg4[%c0_3, %c0_4], %2 {strides = array<i32>} : memref<64x512xf32, #tpu.memory_space<vmem>>, vector<64x512xf32>,
    %4 = tpu.iota {dimensions = array<i32: 1>} : vector<8x128xi32>
    %cst_5 = arith.constant 0.000000e+00 : f32
    %5 = vector.broadcast %cst_5 : f32 to vector<8x128xf32>
    %cst_6 = arith.constant 0.000000e+00 : f32
    %6 = vector.broadcast %cst_6 : f32 to vector<8x128xf32>
    %c0_7 = arith.constant 0 : index
    %c0_8 = arith.constant 0 : index
    %7 = vector.load %arg4[%c0_7, %c0_8] : memref<64x512xf32, #tpu.memory_space<vmem>>, vector<8x512xf32>
    %c32 = arith.constant 32 : index
    %c0_9 = arith.constant 0 : index
    %8 = vector.load %arg1[%c32, %c0_9] : memref<168x512xf32, #tpu.memory_space<vmem>>, vector<128x512xf32>
    %cst_10 = arith.constant dense<0.000000e+00> : vector<8x512xf32>
    %9 = tpu.matmul %5, %8, %cst_10 {dimension_numbers = #tpu.dot_dimension_numbers<[1], [0], [0], [1], [0, 0, 1, 1], [], []>} : vector<8x128xf32>, vector<128x512xf32>, vector<8x512xf32> -> vector<8x512xf32>
    %c160 = arith.constant 160 : index
    %c0_11 = arith.constant 0 : index
    %10 = vector.load %arg1[%c160, %c0_11] : memref<168x512xf32, #tpu.memory_space<vmem>>, vector<1x512xf32>
    %11 = vector.broadcast %10 : vector<1x512xf32> to vector<8x512xf32>
    %12 = arith.addf %9, %11 : vector<8x512xf32>
    %13 = arith.addf %12, %7 : vector<8x512xf32>
    %14 = vector.extract_strided_slice %13 {offsets = [0, 0], sizes = [8, 384], strides = [1, 1]} : vector<8x512xf32> to vector<8x384xf32>
    %15 = arith.negf %14 : vector<8x384xf32>
    %16 = math.exp %15 : vector<8x384xf32>
    %cst_12 = arith.constant 1.000000e+00 : f32
    %17 = vector.broadcast %cst_12 : f32 to vector<8x384xf32>
    %18 = arith.addf %17, %16 : vector<8x384xf32>
    %19 = arith.divf %17, %18 : vector<8x384xf32>
    %20 = vector.extract_strided_slice %13 {offsets = [0, 384], sizes = [8, 128], strides = [1, 1]} : vector<8x512xf32> to vector<8x128xf32>
    %21 = math.tanh %20 : vector<8x128xf32>
    %22 = vector.extract_strided_slice %19 {offsets = [0, 128], sizes = [8, 128], strides = [1, 1]} : vector<8x384xf32> to vector<8x128xf32>
    %23 = arith.mulf %22, %6 : vector<8x128xf32>
    %24 = vector.extract_strided_slice %19 {offsets = [0, 0], sizes = [8, 128], strides = [1, 1]} : vector<8x384xf32> to vector<8x128xf32>
    %25 = arith.mulf %24, %21 : vector<8x128xf32>
    %26 = arith.addf %23, %25 : vector<8x128xf32>
    %27 = vector.extract_strided_slice %19 {offsets = [0, 256], sizes = [8, 128], strides = [1, 1]} : vector<8x384xf32> to vector<8x128xf32>
    %28 = math.tanh %26 : vector<8x128xf32>
    %29 = arith.mulf %27, %28 : vector<8x128xf32>
    %c32_i32 = arith.constant 32 : i32
    %30 = vector.broadcast %c32_i32 : i32 to vector<8x128xi32>
    %31 = arith.cmpi slt, %4, %30 : vector<8x128xi32>
    %32 = arith.select %31, %29, %5 : vector<8x128xi1>, vector<8x128xf32>
    %33 = arith.select %31, %26, %6 : vector<8x128xi1>, vector<8x128xf32>
    %c8 = arith.constant 8 : index
    %c0_13 = arith.constant 0 : index
    %34 = vector.load %arg4[%c8, %c0_13] : memref<64x512xf32, #tpu.memory_space<vmem>>, vector<8x512xf32>
    %c32_14 = arith.constant 32 : index
    %c0_15 = arith.constant 0 : index
    %35 = vector.load %arg1[%c32_14, %c0_15] : memref<168x512xf32, #tpu.memory_space<vmem>>, vector<128x512xf32>
    %cst_16 = arith.constant dense<0.000000e+00> : vector<8x512xf32>
    %36 = tpu.matmul %32, %35, %cst_16 {dimension_numbers = #tpu.dot_dimension_numbers<[1], [0], [0], [1], [0, 0, 1, 1], [], []>} : vector<8x128xf32>, vector<128x512xf32>, vector<8x512xf32> -> vector<8x512xf32>
    %c160_17 = arith.constant 160 : index
    %c0_18 = arith.constant 0 : index
    %37 = vector.load %arg1[%c160_17, %c0_18] : memref<168x512xf32, #tpu.memory_space<vmem>>, vector<1x512xf32>
    %38 = vector.broadcast %37 : vector<1x512xf32> to vector<8x512xf32>
    %39 = arith.addf %36, %38 : vector<8x512xf32>
    %40 = arith.addf %39, %34 : vector<8x512xf32>
    %41 = vector.extract_strided_slice %40 {offsets = [0, 0], sizes = [8, 384], strides = [1, 1]} : vector<8x512xf32> to vector<8x384xf32>
    %42 = arith.negf %41 : vector<8x384xf32>
    %43 = math.exp %42 : vector<8x384xf32>
    %cst_19 = arith.constant 1.000000e+00 : f32
    %44 = vector.broadcast %cst_19 : f32 to vector<8x384xf32>
    %45 = arith.addf %44, %43 : vector<8x384xf32>
    %46 = arith.divf %44, %45 : vector<8x384xf32>
    %47 = vector.extract_strided_slice %40 {offsets = [0, 384], sizes = [8, 128], strides = [1, 1]} : vector<8x512xf32> to vector<8x128xf32>
    %48 = math.tanh %47 : vector<8x128xf32>
    %49 = vector.extract_strided_slice %46 {offsets = [0, 128], sizes = [8, 128], strides = [1, 1]} : vector<8x384xf32> to vector<8x128xf32>
    %50 = arith.mulf %49, %33 : vector<8x128xf32>
    %51 = vector.extract_strided_slice %46 {offsets = [0, 0], sizes = [8, 128], strides = [1, 1]} : vector<8x384xf32> to vector<8x128xf32>
    %52 = arith.mulf %51, %48 : vector<8x128xf32>
    %53 = arith.addf %50, %52 : vector<8x128xf32>
    %54 = vector.extract_strided_slice %46 {offsets = [0, 256], sizes = [8, 128], strides = [1, 1]} : vector<8x384xf32> to vector<8x128xf32>
    %55 = math.tanh %53 : vector<8x128xf32>
    %56 = arith.mulf %54, %55 : vector<8x128xf32>
    %c64_i32 = arith.constant 64 : i32
    %57 = vector.broadcast %c64_i32 : i32 to vector<8x128xi32>
    %58 = arith.cmpi slt, %4, %57 : vector<8x128xi32>
    %59 = arith.select %58, %56, %32 : vector<8x128xi1>, vector<8x128xf32>
    %60 = arith.select %58, %53, %33 : vector<8x128xi1>, vector<8x128xf32>
    %c16 = arith.constant 16 : index
    %c0_20 = arith.constant 0 : index
    %61 = vector.load %arg4[%c16, %c0_20] : memref<64x512xf32, #tpu.memory_space<vmem>>, vector<8x512xf32>
    %c32_21 = arith.constant 32 : index
    %c0_22 = arith.constant 0 : index
    %62 = vector.load %arg1[%c32_21, %c0_22] : memref<168x512xf32, #tpu.memory_space<vmem>>, vector<128x512xf32>
    %cst_23 = arith.constant dense<0.000000e+00> : vector<8x512xf32>
    %63 = tpu.matmul %59, %62, %cst_23 {dimension_numbers = #tpu.dot_dimension_numbers<[1], [0], [0], [1], [0, 0, 1, 1], [], []>} : vector<8x128xf32>, vector<128x512xf32>, vector<8x512xf32> -> vector<8x512xf32>
    %c160_24 = arith.constant 160 : index
    %c0_25 = arith.constant 0 : index
    %64 = vector.load %arg1[%c160_24, %c0_25] : memref<168x512xf32, #tpu.memory_space<vmem>>, vector<1x512xf32>
    %65 = vector.broadcast %64 : vector<1x512xf32> to vector<8x512xf32>
    %66 = arith.addf %63, %65 : vector<8x512xf32>
    %67 = arith.addf %66, %61 : vector<8x512xf32>
    %68 = vector.extract_strided_slice %67 {offsets = [0, 0], sizes = [8, 384], strides = [1, 1]} : vector<8x512xf32> to vector<8x384xf32>
    %69 = arith.negf %68 : vector<8x384xf32>
    %70 = math.exp %69 : vector<8x384xf32>
    %cst_26 = arith.constant 1.000000e+00 : f32
    %71 = vector.broadcast %cst_26 : f32 to vector<8x384xf32>
    %72 = arith.addf %71, %70 : vector<8x384xf32>
    %73 = arith.divf %71, %72 : vector<8x384xf32>
    %74 = vector.extract_strided_slice %67 {offsets = [0, 384], sizes = [8, 128], strides = [1, 1]} : vector<8x512xf32> to vector<8x128xf32>
    %75 = math.tanh %74 : vector<8x128xf32>
    %76 = vector.extract_strided_slice %73 {offsets = [0, 128], sizes = [8, 128], strides = [1, 1]} : vector<8x384xf32> to vector<8x128xf32>
    %77 = arith.mulf %76, %60 : vector<8x128xf32>
    %78 = vector.extract_strided_slice %73 {offsets = [0, 0], sizes = [8, 128], strides = [1, 1]} : vector<8x384xf32> to vector<8x128xf32>
    %79 = arith.mulf %78, %75 : vector<8x128xf32>
    %80 = arith.addf %77, %79 : vector<8x128xf32>
    %81 = vector.extract_strided_slice %73 {offsets = [0, 256], sizes = [8, 128], strides = [1, 1]} : vector<8x384xf32> to vector<8x128xf32>
    %82 = math.tanh %80 : vector<8x128xf32>
    %83 = arith.mulf %81, %82 : vector<8x128xf32>
    %c96_i32 = arith.constant 96 : i32
    %84 = vector.broadcast %c96_i32 : i32 to vector<8x128xi32>
    %85 = arith.cmpi slt, %4, %84 : vector<8x128xi32>
    %86 = arith.select %85, %83, %59 : vector<8x128xi1>, vector<8x128xf32>
    %87 = arith.select %85, %80, %60 : vector<8x128xi1>, vector<8x128xf32>
    %c3_i32 = arith.constant 3 : i32
    %c8_i32 = arith.constant 8 : i32
    %88 = arith.muli %c3_i32, %c8_i32 : i32
    %89 = tpu.assume_multiple %88, 8 : i32
    %90 = arith.index_cast %89 : i32 to index
    %c0_27 = arith.constant 0 : index
    %91 = vector.load %arg4[%90, %c0_27] : memref<64x512xf32, #tpu.memory_space<vmem>>, vector<8x512xf32>
    %c32_28 = arith.constant 32 : index
    %c0_29 = arith.constant 0 : index
    %92 = vector.load %arg1[%c32_28, %c0_29] : memref<168x512xf32, #tpu.memory_space<vmem>>, vector<128x512xf32>
    %cst_30 = arith.constant dense<0.000000e+00> : vector<8x512xf32>
    %93 = tpu.matmul %86, %92, %cst_30 {dimension_numbers = #tpu.dot_dimension_numbers<[1], [0], [0], [1], [0, 0, 1, 1], [], []>} : vector<8x128xf32>, vector<128x512xf32>, vector<8x512xf32> -> vector<8x512xf32>
    %c160_31 = arith.constant 160 : index
    %c0_32 = arith.constant 0 : index
    %94 = vector.load %arg1[%c160_31, %c0_32] : memref<168x512xf32, #tpu.memory_space<vmem>>, vector<1x512xf32>
    %95 = vector.broadcast %94 : vector<1x512xf32> to vector<8x512xf32>
    %96 = arith.addf %93, %95 : vector<8x512xf32>
    %97 = arith.addf %96, %91 : vector<8x512xf32>
    %98 = vector.extract_strided_slice %97 {offsets = [0, 0], sizes = [8, 384], strides = [1, 1]} : vector<8x512xf32> to vector<8x384xf32>
    %99 = arith.negf %98 : vector<8x384xf32>
    %100 = math.exp %99 : vector<8x384xf32>
    %cst_33 = arith.constant 1.000000e+00 : f32
    %101 = vector.broadcast %cst_33 : f32 to vector<8x384xf32>
    %102 = arith.addf %101, %100 : vector<8x384xf32>
    %103 = arith.divf %101, %102 : vector<8x384xf32>
    %104 = vector.extract_strided_slice %97 {offsets = [0, 384], sizes = [8, 128], strides = [1, 1]} : vector<8x512xf32> to vector<8x128xf32>
    %105 = math.tanh %104 : vector<8x128xf32>
    %106 = vector.extract_strided_slice %103 {offsets = [0, 128], sizes = [8, 128], strides = [1, 1]} : vector<8x384xf32> to vector<8x128xf32>
    %107 = arith.mulf %106, %87 : vector<8x128xf32>
    %108 = vector.extract_strided_slice %103 {offsets = [0, 0], sizes = [8, 128], strides = [1, 1]} : vector<8x384xf32> to vector<8x128xf32>
    %109 = arith.mulf %108, %105 : vector<8x128xf32>
    %110 = arith.addf %107, %109 : vector<8x128xf32>
    %111 = vector.extract_strided_slice %103 {offsets = [0, 256], sizes = [8, 128], strides = [1, 1]} : vector<8x384xf32> to vector<8x128xf32>
    %112 = math.tanh %110 : vector<8x128xf32>
    %113 = arith.mulf %111, %112 : vector<8x128xf32>
    %c4_i32 = arith.constant 4 : i32
    %c8_i32_34 = arith.constant 8 : i32
    %114 = arith.muli %c4_i32, %c8_i32_34 : i32
    %115 = tpu.assume_multiple %114, 8 : i32
    %116 = arith.index_cast %115 : i32 to index
    %c0_35 = arith.constant 0 : index
    %117 = vector.load %arg4[%116, %c0_35] : memref<64x512xf32, #tpu.memory_space<vmem>>, vector<8x512xf32>
    %c32_36 = arith.constant 32 : index
    %c0_37 = arith.constant 0 : index
    %118 = vector.load %arg1[%c32_36, %c0_37] : memref<168x512xf32, #tpu.memory_space<vmem>>, vector<128x512xf32>
    %cst_38 = arith.constant dense<0.000000e+00> : vector<8x512xf32>
    %119 = tpu.matmul %113, %118, %cst_38 {dimension_numbers = #tpu.dot_dimension_numbers<[1], [0], [0], [1], [0, 0, 1, 1], [], []>} : vector<8x128xf32>, vector<128x512xf32>, vector<8x512xf32> -> vector<8x512xf32>
    %c160_39 = arith.constant 160 : index
    %c0_40 = arith.constant 0 : index
    %120 = vector.load %arg1[%c160_39, %c0_40] : memref<168x512xf32, #tpu.memory_space<vmem>>, vector<1x512xf32>
    %121 = vector.broadcast %120 : vector<1x512xf32> to vector<8x512xf32>
    %122 = arith.addf %119, %121 : vector<8x512xf32>
    %123 = arith.addf %122, %117 : vector<8x512xf32>
    %124 = vector.extract_strided_slice %123 {offsets = [0, 0], sizes = [8, 384], strides = [1, 1]} : vector<8x512xf32> to vector<8x384xf32>
    %125 = arith.negf %124 : vector<8x384xf32>
    %126 = math.exp %125 : vector<8x384xf32>
    %cst_41 = arith.constant 1.000000e+00 : f32
    %127 = vector.broadcast %cst_41 : f32 to vector<8x384xf32>
    %128 = arith.addf %127, %126 : vector<8x384xf32>
    %129 = arith.divf %127, %128 : vector<8x384xf32>
    %130 = vector.extract_strided_slice %123 {offsets = [0, 384], sizes = [8, 128], strides = [1, 1]} : vector<8x512xf32> to vector<8x128xf32>
    %131 = math.tanh %130 : vector<8x128xf32>
    %132 = vector.extract_strided_slice %129 {offsets = [0, 128], sizes = [8, 128], strides = [1, 1]} : vector<8x384xf32> to vector<8x128xf32>
    %133 = arith.mulf %132, %110 : vector<8x128xf32>
    %134 = vector.extract_strided_slice %129 {offsets = [0, 0], sizes = [8, 128], strides = [1, 1]} : vector<8x384xf32> to vector<8x128xf32>
    %135 = arith.mulf %134, %131 : vector<8x128xf32>
    %136 = arith.addf %133, %135 : vector<8x128xf32>
    %137 = vector.extract_strided_slice %129 {offsets = [0, 256], sizes = [8, 128], strides = [1, 1]} : vector<8x384xf32> to vector<8x128xf32>
    %138 = math.tanh %136 : vector<8x128xf32>
    %139 = arith.mulf %137, %138 : vector<8x128xf32>
    %c5_i32 = arith.constant 5 : i32
    %c8_i32_42 = arith.constant 8 : i32
    %140 = arith.muli %c5_i32, %c8_i32_42 : i32
    %141 = tpu.assume_multiple %140, 8 : i32
    %142 = arith.index_cast %141 : i32 to index
    %c0_43 = arith.constant 0 : index
    %143 = vector.load %arg4[%142, %c0_43] : memref<64x512xf32, #tpu.memory_space<vmem>>, vector<8x512xf32>
    %c32_44 = arith.constant 32 : index
    %c0_45 = arith.constant 0 : index
    %144 = vector.load %arg1[%c32_44, %c0_45] : memref<168x512xf32, #tpu.memory_space<vmem>>, vector<128x512xf32>
    %cst_46 = arith.constant dense<0.000000e+00> : vector<8x512xf32>
    %145 = tpu.matmul %139, %144, %cst_46 {dimension_numbers = #tpu.dot_dimension_numbers<[1], [0], [0], [1], [0, 0, 1, 1], [], []>} : vector<8x128xf32>, vector<128x512xf32>, vector<8x512xf32> -> vector<8x512xf32>
    %c160_47 = arith.constant 160 : index
    %c0_48 = arith.constant 0 : index
    %146 = vector.load %arg1[%c160_47, %c0_48] : memref<168x512xf32, #tpu.memory_space<vmem>>, vector<1x512xf32>
    %147 = vector.broadcast %146 : vector<1x512xf32> to vector<8x512xf32>
    %148 = arith.addf %145, %147 : vector<8x512xf32>
    %149 = arith.addf %148, %143 : vector<8x512xf32>
    %150 = vector.extract_strided_slice %149 {offsets = [0, 0], sizes = [8, 384], strides = [1, 1]} : vector<8x512xf32> to vector<8x384xf32>
    %151 = arith.negf %150 : vector<8x384xf32>
    %152 = math.exp %151 : vector<8x384xf32>
    %cst_49 = arith.constant 1.000000e+00 : f32
    %153 = vector.broadcast %cst_49 : f32 to vector<8x384xf32>
    %154 = arith.addf %153, %152 : vector<8x384xf32>
    %155 = arith.divf %153, %154 : vector<8x384xf32>
    %156 = vector.extract_strided_slice %149 {offsets = [0, 384], sizes = [8, 128], strides = [1, 1]} : vector<8x512xf32> to vector<8x128xf32>
    %157 = math.tanh %156 : vector<8x128xf32>
    %158 = vector.extract_strided_slice %155 {offsets = [0, 128], sizes = [8, 128], strides = [1, 1]} : vector<8x384xf32> to vector<8x128xf32>
    %159 = arith.mulf %158, %136 : vector<8x128xf32>
    %160 = vector.extract_strided_slice %155 {offsets = [0, 0], sizes = [8, 128], strides = [1, 1]} : vector<8x384xf32> to vector<8x128xf32>
    %161 = arith.mulf %160, %157 : vector<8x128xf32>
    %162 = arith.addf %159, %161 : vector<8x128xf32>
    %163 = vector.extract_strided_slice %155 {offsets = [0, 256], sizes = [8, 128], strides = [1, 1]} : vector<8x384xf32> to vector<8x128xf32>
    %164 = math.tanh %162 : vector<8x128xf32>
    %165 = arith.mulf %163, %164 : vector<8x128xf32>
    %c6_i32 = arith.constant 6 : i32
    %c8_i32_50 = arith.constant 8 : i32
    %166 = arith.muli %c6_i32, %c8_i32_50 : i32
    %167 = tpu.assume_multiple %166, 8 : i32
    %168 = arith.index_cast %167 : i32 to index
    %c0_51 = arith.constant 0 : index
    %169 = vector.load %arg4[%168, %c0_51] : memref<64x512xf32, #tpu.memory_space<vmem>>, vector<8x512xf32>
    %c32_52 = arith.constant 32 : index
    %c0_53 = arith.constant 0 : index
    %170 = vector.load %arg1[%c32_52, %c0_53] : memref<168x512xf32, #tpu.memory_space<vmem>>, vector<128x512xf32>
    %cst_54 = arith.constant dense<0.000000e+00> : vector<8x512xf32>
    %171 = tpu.matmul %165, %170, %cst_54 {dimension_numbers = #tpu.dot_dimension_numbers<[1], [0], [0], [1], [0, 0, 1, 1], [], []>} : vector<8x128xf32>, vector<128x512xf32>, vector<8x512xf32> -> vector<8x512xf32>
    %c160_55 = arith.constant 160 : index
    %c0_56 = arith.constant 0 : index
    %172 = vector.load %arg1[%c160_55, %c0_56] : memref<168x512xf32, #tpu.memory_space<vmem>>, vector<1x512xf32>
    %173 = vector.broadcast %172 : vector<1x512xf32> to vector<8x512xf32>
    %174 = arith.addf %171, %173 : vector<8x512xf32>
    %175 = arith.addf %174, %169 : vector<8x512xf32>
    %176 = vector.extract_strided_slice %175 {offsets = [0, 0], sizes = [8, 384], strides = [1, 1]} : vector<8x512xf32> to vector<8x384xf32>
    %177 = arith.negf %176 : vector<8x384xf32>
    %178 = math.exp %177 : vector<8x384xf32>
    %cst_57 = arith.constant 1.000000e+00 : f32
    %179 = vector.broadcast %cst_57 : f32 to vector<8x384xf32>
    %180 = arith.addf %179, %178 : vector<8x384xf32>
    %181 = arith.divf %179, %180 : vector<8x384xf32>
    %182 = vector.extract_strided_slice %175 {offsets = [0, 384], sizes = [8, 128], strides = [1, 1]} : vector<8x512xf32> to vector<8x128xf32>
    %183 = math.tanh %182 : vector<8x128xf32>
    %184 = vector.extract_strided_slice %181 {offsets = [0, 128], sizes = [8, 128], strides = [1, 1]} : vector<8x384xf32> to vector<8x128xf32>
    %185 = arith.mulf %184, %162 : vector<8x128xf32>
    %186 = vector.extract_strided_slice %181 {offsets = [0, 0], sizes = [8, 128], strides = [1, 1]} : vector<8x384xf32> to vector<8x128xf32>
    %187 = arith.mulf %186, %183 : vector<8x128xf32>
    %188 = arith.addf %185, %187 : vector<8x128xf32>
    %189 = vector.extract_strided_slice %181 {offsets = [0, 256], sizes = [8, 128], strides = [1, 1]} : vector<8x384xf32> to vector<8x128xf32>
    %190 = math.tanh %188 : vector<8x128xf32>
    %191 = arith.mulf %189, %190 : vector<8x128xf32>
    %c7_i32 = arith.constant 7 : i32
    %c8_i32_58 = arith.constant 8 : i32
    %192 = arith.muli %c7_i32, %c8_i32_58 : i32
    %193 = tpu.assume_multiple %192, 8 : i32
    %194 = arith.index_cast %193 : i32 to index
    %c0_59 = arith.constant 0 : index
    %195 = vector.load %arg4[%194, %c0_59] : memref<64x512xf32, #tpu.memory_space<vmem>>, vector<8x512xf32>
    %c32_60 = arith.constant 32 : index
    %c0_61 = arith.constant 0 : index
    %196 = vector.load %arg1[%c32_60, %c0_61] : memref<168x512xf32, #tpu.memory_space<vmem>>, vector<128x512xf32>
    %cst_62 = arith.constant dense<0.000000e+00> : vector<8x512xf32>
    %197 = tpu.matmul %191, %196, %cst_62 {dimension_numbers = #tpu.dot_dimension_numbers<[1], [0], [0], [1], [0, 0, 1, 1], [], []>} : vector<8x128xf32>, vector<128x512xf32>, vector<8x512xf32> -> vector<8x512xf32>
    %c160_63 = arith.constant 160 : index
    %c0_64 = arith.constant 0 : index
    %198 = vector.load %arg1[%c160_63, %c0_64] : memref<168x512xf32, #tpu.memory_space<vmem>>, vector<1x512xf32>
    %199 = vector.broadcast %198 : vector<1x512xf32> to vector<8x512xf32>
    %200 = arith.addf %197, %199 : vector<8x512xf32>
    %201 = arith.addf %200, %195 : vector<8x512xf32>
    %202 = vector.extract_strided_slice %201 {offsets = [0, 0], sizes = [8, 384], strides = [1, 1]} : vector<8x512xf32> to vector<8x384xf32>
    %203 = arith.negf %202 : vector<8x384xf32>
    %204 = math.exp %203 : vector<8x384xf32>
    %cst_65 = arith.constant 1.000000e+00 : f32
    %205 = vector.broadcast %cst_65 : f32 to vector<8x384xf32>
    %206 = arith.addf %205, %204 : vector<8x384xf32>
    %207 = arith.divf %205, %206 : vector<8x384xf32>
    %208 = vector.extract_strided_slice %201 {offsets = [0, 384], sizes = [8, 128], strides = [1, 1]} : vector<8x512xf32> to vector<8x128xf32>
    %209 = math.tanh %208 : vector<8x128xf32>
    %210 = vector.extract_strided_slice %207 {offsets = [0, 128], sizes = [8, 128], strides = [1, 1]} : vector<8x384xf32> to vector<8x128xf32>
    %211 = arith.mulf %210, %188 : vector<8x128xf32>
    %212 = vector.extract_strided_slice %207 {offsets = [0, 0], sizes = [8, 128], strides = [1, 1]} : vector<8x384xf32> to vector<8x128xf32>
    %213 = arith.mulf %212, %209 : vector<8x128xf32>
    %214 = arith.addf %211, %213 : vector<8x128xf32>
    %215 = vector.extract_strided_slice %207 {offsets = [0, 256], sizes = [8, 128], strides = [1, 1]} : vector<8x384xf32> to vector<8x128xf32>
    %216 = math.tanh %214 : vector<8x128xf32>
    %217 = arith.mulf %215, %216 : vector<8x128xf32>
    %c5_i32_66 = arith.constant 5 : i32
    %c32_67 = arith.constant 32 : index
    %c0_68 = arith.constant 0 : index
    %218 = vector.load %arg1[%c32_67, %c0_68] : memref<168x512xf32, #tpu.memory_space<vmem>>, vector<128x512xf32>
    %cst_69 = arith.constant dense<0.000000e+00> : vector<8x512xf32>
    %219 = tpu.matmul %217, %218, %cst_69 {dimension_numbers = #tpu.dot_dimension_numbers<[1], [0], [0], [1], [0, 0, 1, 1], [], []>} : vector<8x128xf32>, vector<128x512xf32>, vector<8x512xf32> -> vector<8x512xf32>
    %c160_70 = arith.constant 160 : index
    %c0_71 = arith.constant 0 : index
    %220 = vector.load %arg1[%c160_70, %c0_71] : memref<168x512xf32, #tpu.memory_space<vmem>>, vector<1x512xf32>
    %221 = vector.broadcast %220 : vector<1x512xf32> to vector<8x512xf32>
    %222 = arith.addf %219, %221 : vector<8x512xf32>
    %223 = vector.extract_strided_slice %222 {offsets = [0, 0], sizes = [8, 384], strides = [1, 1]} : vector<8x512xf32> to vector<8x384xf32>
    %224 = arith.negf %223 : vector<8x384xf32>
    %225 = math.exp %224 : vector<8x384xf32>
    %cst_72 = arith.constant 1.000000e+00 : f32
    %226 = vector.broadcast %cst_72 : f32 to vector<8x384xf32>
    %227 = arith.addf %226, %225 : vector<8x384xf32>
    %228 = arith.divf %226, %227 : vector<8x384xf32>
    %229 = vector.extract_strided_slice %222 {offsets = [0, 384], sizes = [8, 128], strides = [1, 1]} : vector<8x512xf32> to vector<8x128xf32>
    %230 = math.tanh %229 : vector<8x128xf32>
    %231 = vector.extract_strided_slice %228 {offsets = [0, 128], sizes = [8, 128], strides = [1, 1]} : vector<8x384xf32> to vector<8x128xf32>
    %232 = arith.mulf %231, %214 : vector<8x128xf32>
    %233 = vector.extract_strided_slice %228 {offsets = [0, 0], sizes = [8, 128], strides = [1, 1]} : vector<8x384xf32> to vector<8x128xf32>
    %234 = arith.mulf %233, %230 : vector<8x128xf32>
    %235 = arith.addf %232, %234 : vector<8x128xf32>
    %236 = vector.extract_strided_slice %228 {offsets = [0, 256], sizes = [8, 128], strides = [1, 1]} : vector<8x384xf32> to vector<8x128xf32>
    %237 = math.tanh %235 : vector<8x128xf32>
    %238 = arith.mulf %236, %237 : vector<8x128xf32>
    %c32_73 = arith.constant 32 : index
    %c0_74 = arith.constant 0 : index
    %239 = vector.load %arg1[%c32_73, %c0_74] : memref<168x512xf32, #tpu.memory_space<vmem>>, vector<128x512xf32>
    %cst_75 = arith.constant dense<0.000000e+00> : vector<8x512xf32>
    %240 = tpu.matmul %238, %239, %cst_75 {dimension_numbers = #tpu.dot_dimension_numbers<[1], [0], [0], [1], [0, 0, 1, 1], [], []>} : vector<8x128xf32>, vector<128x512xf32>, vector<8x512xf32> -> vector<8x512xf32>
    %c160_76 = arith.constant 160 : index
    %c0_77 = arith.constant 0 : index
    %241 = vector.load %arg1[%c160_76, %c0_77] : memref<168x512xf32, #tpu.memory_space<vmem>>, vector<1x512xf32>
    %242 = vector.broadcast %241 : vector<1x512xf32> to vector<8x512xf32>
    %243 = arith.addf %240, %242 : vector<8x512xf32>
    %244 = vector.extract_strided_slice %243 {offsets = [0, 0], sizes = [8, 384], strides = [1, 1]} : vector<8x512xf32> to vector<8x384xf32>
    %245 = arith.negf %244 : vector<8x384xf32>
    %246 = math.exp %245 : vector<8x384xf32>
    %cst_78 = arith.constant 1.000000e+00 : f32
    %247 = vector.broadcast %cst_78 : f32 to vector<8x384xf32>
    %248 = arith.addf %247, %246 : vector<8x384xf32>
    %249 = arith.divf %247, %248 : vector<8x384xf32>
    %250 = vector.extract_strided_slice %243 {offsets = [0, 384], sizes = [8, 128], strides = [1, 1]} : vector<8x512xf32> to vector<8x128xf32>
    %251 = math.tanh %250 : vector<8x128xf32>
    %252 = vector.extract_strided_slice %249 {offsets = [0, 128], sizes = [8, 128], strides = [1, 1]} : vector<8x384xf32> to vector<8x128xf32>
    %253 = arith.mulf %252, %235 : vector<8x128xf32>
    %254 = vector.extract_strided_slice %249 {offsets = [0, 0], sizes = [8, 128], strides = [1, 1]} : vector<8x384xf32> to vector<8x128xf32>
    %255 = arith.mulf %254, %251 : vector<8x128xf32>
    %256 = arith.addf %253, %255 : vector<8x128xf32>
    %257 = vector.extract_strided_slice %249 {offsets = [0, 256], sizes = [8, 128], strides = [1, 1]} : vector<8x384xf32> to vector<8x128xf32>
    %258 = math.tanh %256 : vector<8x128xf32>
    %259 = arith.mulf %257, %258 : vector<8x128xf32>
    %c32_79 = arith.constant 32 : index
    %c0_80 = arith.constant 0 : index
    %260 = vector.load %arg1[%c32_79, %c0_80] : memref<168x512xf32, #tpu.memory_space<vmem>>, vector<128x512xf32>
    %cst_81 = arith.constant dense<0.000000e+00> : vector<8x512xf32>
    %261 = tpu.matmul %259, %260, %cst_81 {dimension_numbers = #tpu.dot_dimension_numbers<[1], [0], [0], [1], [0, 0, 1, 1], [], []>} : vector<8x128xf32>, vector<128x512xf32>, vector<8x512xf32> -> vector<8x512xf32>
    %c160_82 = arith.constant 160 : index
    %c0_83 = arith.constant 0 : index
    %262 = vector.load %arg1[%c160_82, %c0_83] : memref<168x512xf32, #tpu.memory_space<vmem>>, vector<1x512xf32>
    %263 = vector.broadcast %262 : vector<1x512xf32> to vector<8x512xf32>
    %264 = arith.addf %261, %263 : vector<8x512xf32>
    %265 = vector.extract_strided_slice %264 {offsets = [0, 0], sizes = [8, 384], strides = [1, 1]} : vector<8x512xf32> to vector<8x384xf32>
    %266 = arith.negf %265 : vector<8x384xf32>
    %267 = math.exp %266 : vector<8x384xf32>
    %cst_84 = arith.constant 1.000000e+00 : f32
    %268 = vector.broadcast %cst_84 : f32 to vector<8x384xf32>
    %269 = arith.addf %268, %267 : vector<8x384xf32>
    %270 = arith.divf %268, %269 : vector<8x384xf32>
    %271 = vector.extract_strided_slice %264 {offsets = [0, 384], sizes = [8, 128], strides = [1, 1]} : vector<8x512xf32> to vector<8x128xf32>
    %272 = math.tanh %271 : vector<8x128xf32>
    %273 = vector.extract_strided_slice %270 {offsets = [0, 128], sizes = [8, 128], strides = [1, 1]} : vector<8x384xf32> to vector<8x128xf32>
    %274 = arith.mulf %273, %256 : vector<8x128xf32>
    %275 = vector.extract_strided_slice %270 {offsets = [0, 0], sizes = [8, 128], strides = [1, 1]} : vector<8x384xf32> to vector<8x128xf32>
    %276 = arith.mulf %275, %272 : vector<8x128xf32>
    %277 = arith.addf %274, %276 : vector<8x128xf32>
    %278 = vector.extract_strided_slice %270 {offsets = [0, 256], sizes = [8, 128], strides = [1, 1]} : vector<8x384xf32> to vector<8x128xf32>
    %279 = math.tanh %277 : vector<8x128xf32>
    %280 = arith.mulf %278, %279 : vector<8x128xf32>
    %c0_85 = arith.constant 0 : index
    %c0_86 = arith.constant 0 : index
    %281 = vector.load %arg2[%c0_85, %c0_86] : memref<136x12xf32, #tpu.memory_space<vmem>>, vector<128x12xf32>
    %cst_87 = arith.constant dense<0.000000e+00> : vector<8x12xf32>
    %282 = tpu.matmul %280, %281, %cst_87 {dimension_numbers = #tpu.dot_dimension_numbers<[1], [0], [0], [1], [0, 0, 1, 1], [], []>} : vector<8x128xf32>, vector<128x12xf32>, vector<8x12xf32> -> vector<8x12xf32>
    %c128 = arith.constant 128 : index
    %c0_88 = arith.constant 0 : index
    %283 = vector.load %arg2[%c128, %c0_88] : memref<136x12xf32, #tpu.memory_space<vmem>>, vector<1x12xf32>
    %284 = vector.broadcast %283 : vector<1x12xf32> to vector<8x12xf32>
    %285 = arith.addf %282, %284 : vector<8x12xf32>
    %c0_89 = arith.constant 0 : index
    %c0_90 = arith.constant 0 : index
    %286 = vector.load %arg3[%c0_89, %c0_90] : memref<8x12xf32, #tpu.memory_space<vmem>>, vector<8x12xf32>
    tpu.vector_store %arg3[%c0_89, %c0_90], %285 {strides = array<i32>} : memref<8x12xf32, #tpu.memory_space<vmem>>, vector<8x12xf32>,
    return
  }
}

</mosaic_0001>

<bundles_post_ra>
// kernel: tpu_custom_call.1
= control target key start
LH: loop header
LB: loop body
LE: loop exit
PB: predicated region body
PF: predicated region fallthrough
CT: control target
= control target key end

     0   :  { %8 = vsyncpa [#allocation4], 0  ;;  %s4234_s0 = inlined_call_operand.vmem [shape: f32[64,32], index: 0, kind: input, shape index: {}]   ;;  %s4235_s1 = inlined_call_operand.hbm [shape: f32[168,512], index: 1, kind: input, shape index: {}]   ;;  %s4236_s2 = inlined_call_operand.vmem [shape: f32[136,12], index: 2, kind: input, shape index: {}]   ;;  %s4237_s3 = inlined_call_operand.hbm [shape: f32[8,12], index: 3, kind: output, shape index: {}]  }
   0x1   :  { %9 = vsyncpa [#allocation5], 0  ;;  %s2910_s12 = smov [#allocation3]  }
   0x2   :  { %s17_s13 = sshll.u32 %s2910_s12, 4  ;;  %s18_s13 = int_to_ptr.vmem [resolvable:$true] %s17_s13 }
   0x3   :  { %s2874_s14 = scalar_lea.vmem %s18_s13, 10752  ;;  %p2879_p1 = scmp.lt.s32.totalorder %s18_s13, %s18_s13 }
   0x4   :  { %p2875_p0 = scmp.ne.s32.totalorder %s18_s13, %s2874_s14  ;;  %p2880_p2 = scmp.lt.s32.totalorder %s2874_s14, %s2874_s14 }
   0x6   :  { %p2881_p3 = por %p2880_p2, %p2879_p1 }
   0x8   :  { %p2882_p4 = pnand %p2881_p3, %p2875_p0 }
   0xa   :  { %2885 = shalt.err (!%p2882_p4)
}
   0xb   :  { %s2911_s15 = smov 512   ;;  %s2912_s16 = smov 32  }
   0xc   :  { %23 = dma.hbm_to_vmem [thread:$0]  %s4235_s1, 10752, %s18_s13, [#allocation4], %s2911_s15, %s2911_s15, %s2912_s16  }
   0xd   :  { %2906 = dma.done.wait [#allocation4], 10752  }
   0xe   :  { %2907 = vsyncadd [#allocation4], 4294956544  ;;  %v4238_v0 = vmov 0.0   ;;  %v50_v1 = vld [vmem:[#allocation3 + $0x68] sm:$0xff]  ;;  %v52_v2 = vld [vmem:[#allocation3 + $0x78] sm:$0xff]  ;;  %vm53_vm0 = vcmask 261120  }
   0xf   :  { %142 = vmatprep.mubr.f32.mxu0 %v4238_v0  ;;  %255 = vmatprep.mubr.f32.mxu1 %v4238_v0  ;;  %v49_v3 = vld [vmem:[#allocation3 + $0x60] sm:$0xff]  ;;  %v51_v4 = vld [vmem:[#allocation3 + $0x70] sm:$0xff]  ;;  %v46_v5 = vld [vmem:[#allocation3 + $0x48] sm:$0xff]  ;;  %vm2914_vm4 = vmmov 0   ;;  %s2915_s11 = smov [#allocation6]   ;;  %vm2430_vm5 = vcmask 97280  }
  0x10   :  { %102 = vmatprep.subr.mxu0 %v50_v1  ;;  %215 = vmatprep.subr.mxu1 %v52_v2  ;;  %v48_v6 = vld [vmem:[#allocation3 + $0x58] sm:$0xff]  ;;  %v45_v7 = vld [vmem:[#allocation3 + $0x40] sm:$0xff]  ;;  %v47_v8 = vld [vmem:[#allocation3 + $0x50] sm:$0xff]  ;;  %s2438_s12 = sshll.u32 %s2915_s11, 4  ;;  %s2439_s12 = int_to_ptr.vmem [resolvable:$true] %s2438_s12 }
  0x11   :  { %103 = vmatpush1.msra.mxu0 %v49_v3  ;;  %216 = vmatpush1.msra.mxu1 %v51_v4  ;;  %v42_v9 = vld [vmem:[#allocation3 + $0x28] sm:$0xff]  ;;  %v44_v10 = vld [vmem:[#allocation3 + $0x38] sm:$0xff]  ;;  %v41_v11 = vld [vmem:[#allocation3 + $0x20] sm:$0xff]  ;;  %s2886_s13 = scalar_lea.vmem %s2439_s12, 128  ;;  %p2891_p6 = scmp.lt.s32.totalorder %s2439_s12, %s2439_s12 }
  0x12   :  { %104 = vmatprep.subr.mxu0 %v46_v5  ;;  %217 = vmatprep.subr.mxu1 %v48_v6  ;;  %v43_v12 = vld [vmem:[#allocation3 + $0x30] sm:$0xff]  ;;  %v38_v13 = vld [vmem:[#allocation3 + $0x8] sm:$0xff]  ;;  %v40_v14 = vld [vmem:[#allocation3 + $0x18] sm:$0xff]  ;;  %p2887_p5 = scmp.ne.s32.totalorder %s2439_s12, %s2886_s13  ;;  %p2892_p7 = scmp.lt.s32.totalorder %s2886_s13, %s2886_s13 }
  0x13   :  { %105 = vmatpush1.msra.mxu0 %v45_v7  ;;  %218 = vmatpush1.msra.mxu1 %v47_v8  ;;  %v37_v15 = vld [vmem:[#allocation3] sm:$0xff]  ;;  %v39_v16 = vld [vmem:[#allocation3 + $0x10] sm:$0xff]  ;;  %v2944_v18 = vld [vmem:[#allocation3 + $0x268] sm:$0xff] }
  0x14   :  { %106 = vmatprep.subr.mxu0 %v42_v9  ;;  %219 = vmatprep.subr.mxu1 %v44_v10  ;;  %v29_v17 = vld [vmem:[%s4234_s0] sm:$0xff]  ;;  %4343 = vst [vmem:[#allocation9_spill] sm:$0xff] %v2944_v18  ;;  %v2946_v19 = vld [vmem:[#allocation3 + $0x278] sm:$0xff]  ;;  %v2950_v21 = vld [vmem:[#allocation3 + $0x270] sm:$0xff]  ;;  %p2893_p8 = por %p2892_p7, %p2891_p6 }
  0x15   :  { %107 = vmatpush1.msra.mxu0 %v41_v11  ;;  %220 = vmatpush1.msra.mxu1 %v43_v12  ;;  %4344 = vst [vmem:[#allocation10_spill] sm:$0xff] %v2946_v19  ;;  %v2948_v20 = vld [vmem:[#allocation3 + $0x260] sm:$0xff]  ;;  %v2954_v22 = vld [vmem:[#allocation3 + $0x248] sm:$0xff]  ;;  %v2956_v23 = vld [vmem:[#allocation3 + $0x258] sm:$0xff] }
  0x16   :  { %108 = vmatprep.subr.mxu0 %v38_v13  ;;  %221 = vmatprep.subr.mxu1 %v40_v14  ;;  %v2962_v24 = vld [vmem:[#allocation3 + $0x240] sm:$0xff]  ;;  %v2964_v25 = vld [vmem:[#allocation3 + $0x250] sm:$0xff]  ;;  %v30_v26 = vld [vmem:[%s4234_s0 + $0x8] sm:$0xff]  ;;  %p2894_p9 = pnand %p2893_p8, %p2887_p5 }
  0x17   :  { %109 = vmatpush1.msra.mxu0 %v37_v15  ;;  %222 = vmatpush1.msra.mxu1 %v39_v16  ;;  %v2973_v27 = vld [vmem:[#allocation3 + $0x228] sm:$0xff]  ;;  %v2975_v28 = vld [vmem:[#allocation3 + $0x238] sm:$0xff]  ;;  %v2979_v29 = vld [vmem:[#allocation3 + $0x220] sm:$0xff] }
  0x18   :  { %2452 = vmatmul.mubr.msk.f32.vlgmr.msra.gmra.mxu0 %vm53_vm0, %v29_v17  ;;  %2460 = vmatmul.mubr.msk.f32.vlgmr.msra.gmra.mxu1 %vm53_vm0, %v29_v17  ;;  %v2981_v30 = vld [vmem:[#allocation3 + $0x230] sm:$0xff]  ;;  %v2985_v31 = vld [vmem:[#allocation3 + $0x208] sm:$0xff]  ;;  %v2987_v32 = vld [vmem:[#allocation3 + $0x218] sm:$0xff] }
  0x19   :  { %429 = vmatprep.subr.mxu0 %v2944_v18  ;;  %500 = vmatprep.subr.mxu1 %v2946_v19  ;;  %v2993_v33 = vld [vmem:[#allocation3 + $0x200] sm:$0xff]  ;;  %v2995_v34 = vld [vmem:[#allocation3 + $0x210] sm:$0xff]  ;;  %v3004_v36 = vld [vmem:[#allocation3 + $0x1e8] sm:$0xff] }
  0x1a   :  { %430 = vmatpush1.msra.mxu0 %v2948_v20  ;;  %501 = vmatpush1.msra.mxu1 %v2950_v21  ;;  %v31_v35 = vld [vmem:[%s4234_s0 + $0x10] sm:$0xff]  ;;  %v3006_v37 = vld [vmem:[#allocation3 + $0x1f8] sm:$0xff]  ;;  %v3010_v38 = vld [vmem:[#allocation3 + $0x1e0] sm:$0xff] }
  0x1b   :  { %431 = vmatprep.subr.mxu0 %v2954_v22  ;;  %502 = vmatprep.subr.mxu1 %v2956_v23  ;;  %v3012_v39 = vld [vmem:[#allocation3 + $0x1f0] sm:$0xff]  ;;  %v3016_v40 = vld [vmem:[#allocation3 + $0x1c8] sm:$0xff]  ;;  %v3018_v41 = vld [vmem:[#allocation3 + $0x1d8] sm:$0xff] }
  0x1c   :  { %148 = vmatprep.mubr.f32.mxu0 %v4238_v0  ;;  %261 = vmatprep.mubr.f32.mxu1 %v4238_v0  ;;  %v3024_v42 = vld [vmem:[#allocation3 + $0x1c0] sm:$0xff]  ;;  %v3026_v43 = vld [vmem:[#allocation3 + $0x1d0] sm:$0xff]  ;;  %v32_v44 = vld [vmem:[%s4234_s0 + $0x18] sm:$0xff] }
  0x1d   :  { %432 = vmatpush1.msra.mxu0 %v2962_v24  ;;  %503 = vmatpush1.msra.mxu1 %v2964_v25  ;;  %v3035_v45 = vld [vmem:[#allocation3 + $0x1a8] sm:$0xff]  ;;  %v3037_v46 = vld [vmem:[#allocation3 + $0x1b8] sm:$0xff]  ;;  %v3041_v47 = vld [vmem:[#allocation3 + $0x1a0] sm:$0xff] }
  0x1e   :  { %2453 = vmatmul.mubr.msk.f32.gmra.mxu0 %vm53_vm0, %v30_v26  ;;  %2461 = vmatmul.mubr.msk.f32.gmra.mxu1 %vm53_vm0, %v30_v26  ;;  %v3043_v48 = vld [vmem:[#allocation3 + $0x1b0] sm:$0xff]  ;;  %v3047_v49 = vld [vmem:[#allocation3 + $0x188] sm:$0xff]  ;;  %v3049_v50 = vld [vmem:[#allocation3 + $0x198] sm:$0xff] }
  0x1f   :  { %433 = vmatprep.subr.mxu0 %v2973_v27  ;;  %504 = vmatprep.subr.mxu1 %v2975_v28  ;;  %v3055_v51 = vld [vmem:[#allocation3 + $0x180] sm:$0xff]  ;;  %v3057_v52 = vld [vmem:[#allocation3 + $0x190] sm:$0xff]  ;;  %v3066_v54 = vld [vmem:[#allocation3 + $0x168] sm:$0xff] }
  0x20   :  { %434 = vmatpush1.msra.mxu0 %v2979_v29  ;;  %505 = vmatpush1.msra.mxu1 %v2981_v30  ;;  %v33_v53 = vld [vmem:[%s4234_s0 + $0x20] sm:$0xff]  ;;  %v3068_v55 = vld [vmem:[#allocation3 + $0x178] sm:$0xff]  ;;  %v3074_v57 = vld [vmem:[#allocation3 + $0x170] sm:$0xff] }
  0x21   :  { %435 = vmatprep.subr.mxu0 %v2985_v31  ;;  %506 = vmatprep.subr.mxu1 %v2987_v32  ;;  %v3072_v56 = vld [vmem:[#allocation3 + $0x160] sm:$0xff]  ;;  %v3078_v58 = vld [vmem:[#allocation3 + $0x148] sm:$0xff]  ;;  %v3080_v59 = vld [vmem:[#allocation3 + $0x158] sm:$0xff] }
  0x22   :  { %154 = vmatprep.mubr.f32.mxu0 %v4238_v0  ;;  %267 = vmatprep.mubr.f32.mxu1 %v4238_v0  ;;  %v3086_v60 = vld [vmem:[#allocation3 + $0x140] sm:$0xff]  ;;  %v3088_v61 = vld [vmem:[#allocation3 + $0x150] sm:$0xff]  ;;  %v34_v62 = vld [vmem:[%s4234_s0 + $0x28] sm:$0xff] }
  0x23   :  { %436 = vmatpush1.msra.mxu0 %v2993_v33  ;;  %507 = vmatpush1.msra.mxu1 %v2995_v34  ;;  %v3097_v63 = vld [vmem:[#allocation3 + $0x128] sm:$0xff]  ;;  %v3099_v1 = vld [vmem:[#allocation3 + $0x138] sm:$0xff]  ;;  %v3103_v2 = vld [vmem:[#allocation3 + $0x120] sm:$0xff] }
  0x24   :  { %2454 = vmatmul.mubr.msk.f32.gmra.mxu0 %vm53_vm0, %v31_v35  ;;  %2462 = vmatmul.mubr.msk.f32.gmra.mxu1 %vm53_vm0, %v31_v35  ;;  %4345 = vst [vmem:[#allocation11_spill] sm:$0xff] %v3103_v2  ;;  %v3105_v3 = vld [vmem:[#allocation3 + $0x130] sm:$0xff]  ;;  %v3109_v4 = vld [vmem:[#allocation3 + $0x108] sm:$0xff]  ;;  %v3111_v5 = vld [vmem:[#allocation3 + $0x118] sm:$0xff] }
  0x25   :  { %437 = vmatprep.subr.mxu0 %v3004_v36  ;;  %508 = vmatprep.subr.mxu1 %v3006_v37  ;;  %4346 = vst [vmem:[#allocation12_spill] sm:$0xff] %v3105_v3  ;;  %4347 = vst [vmem:[#allocation13_spill] sm:$0xff] %v3109_v4  ;;  %v3117_v6 = vld [vmem:[#allocation3 + $0x100] sm:$0xff]  ;;  %v3119_v7 = vld [vmem:[#allocation3 + $0x110] sm:$0xff] }
  0x26   :  { %438 = vmatpush1.msra.mxu0 %v3010_v38  ;;  %509 = vmatpush1.msra.mxu1 %v3012_v39  ;;  %4348 = vst [vmem:[#allocation14_spill] sm:$0xff] %v3111_v5  ;;  %4349 = vst [vmem:[#allocation15_spill] sm:$0xff] %v3117_v6  ;;  %v35_v8 = vld [vmem:[%s4234_s0 + $0x30] sm:$0xff]  ;;  %v3128_v9 = vld [vmem:[#allocation3 + $0xe8] sm:$0xff] }
  0x27   :  { %439 = vmatprep.subr.mxu0 %v3016_v40  ;;  %510 = vmatprep.subr.mxu1 %v3018_v41  ;;  %4350 = vst [vmem:[#allocation16_spill] sm:$0xff] %v3119_v7  ;;  %4351 = vst [vmem:[#allocation17_spill] sm:$0xff] %v3128_v9  ;;  %v3130_v10 = vld [vmem:[#allocation3 + $0xf8] sm:$0xff]  ;;  %v3134_v11 = vld [vmem:[#allocation3 + $0xe0] sm:$0xff] }
  0x28   :  { %160 = vmatprep.mubr.f32.mxu0 %v4238_v0  ;;  %273 = vmatprep.mubr.f32.mxu1 %v4238_v0  ;;  %4352 = vst [vmem:[#allocation18_spill] sm:$0xff] %v3130_v10  ;;  %4353 = vst [vmem:[#allocation19_spill] sm:$0xff] %v3134_v11  ;;  %v3136_v12 = vld [vmem:[#allocation3 + $0xf0] sm:$0xff]  ;;  %v3140_v13 = vld [vmem:[#allocation3 + $0xc8] sm:$0xff] }
  0x29   :  { %440 = vmatpush1.msra.mxu0 %v3024_v42  ;;  %511 = vmatpush1.msra.mxu1 %v3026_v43  ;;  %4354 = vst [vmem:[#allocation20_spill] sm:$0xff] %v3136_v12  ;;  %4355 = vst [vmem:[#allocation21_spill] sm:$0xff] %v3140_v13  ;;  %v3142_v14 = vld [vmem:[#allocation3 + $0xd8] sm:$0xff]  ;;  %v3148_v15 = vld [vmem:[#allocation3 + $0xc0] sm:$0xff] }
  0x2a   :  { %2455 = vmatmul.mubr.msk.f32.gmra.mxu0 %vm53_vm0, %v32_v44  ;;  %2463 = vmatmul.mubr.msk.f32.gmra.mxu1 %vm53_vm0, %v32_v44  ;;  %4356 = vst [vmem:[#allocation22_spill] sm:$0xff] %v3142_v14  ;;  %4357 = vst [vmem:[#allocation23_spill] sm:$0xff] %v3148_v15  ;;  %v3150_v16 = vld [vmem:[#allocation3 + $0xd0] sm:$0xff]  ;;  %v36_v17 = vld [vmem:[%s4234_s0 + $0x38] sm:$0xff] }
  0x2b   :  { %441 = vmatprep.subr.mxu0 %v3035_v45  ;;  %512 = vmatprep.subr.mxu1 %v3037_v46  ;;  %4358 = vst [vmem:[#allocation24_spill] sm:$0xff] %v3150_v16  ;;  %v3159_v26 = vld [vmem:[#allocation3 + $0xa8] sm:$0xff]  ;;  %v3161_v35 = vld [vmem:[#allocation3 + $0xb8] sm:$0xff]  ;;  %v3165_v44 = vld [vmem:[#allocation3 + $0xa0] sm:$0xff] }
  0x2c   :  { %442 = vmatpush1.msra.mxu0 %v3041_v47  ;;  %513 = vmatpush1.msra.mxu1 %v3043_v48  ;;  %4359 = vst [vmem:[#allocation25_spill] sm:$0xff] %v3159_v26  ;;  %4360 = vst [vmem:[#allocation26_spill] sm:$0xff] %v3161_v35 }
  0x2d   :  { %443 = vmatprep.subr.mxu0 %v3047_v49  ;;  %514 = vmatprep.subr.mxu1 %v3049_v50  ;;  %4361 = vst [vmem:[#allocation27_spill] sm:$0xff] %v3165_v44 }
  0x2e   :  { %166 = vmatprep.mubr.f32.mxu0 %v4238_v0  ;;  %279 = vmatprep.mubr.f32.mxu1 %v4238_v0 }
  0x2f   :  { %444 = vmatpush1.msra.mxu0 %v3055_v51  ;;  %515 = vmatpush1.msra.mxu1 %v3057_v52 }
  0x30   :  { %2456 = vmatmul.mubr.msk.f32.gmra.mxu0 %vm53_vm0, %v33_v53  ;;  %2464 = vmatmul.mubr.msk.f32.gmra.mxu1 %vm53_vm0, %v33_v53  ;;  %v3167_v53 = vld [vmem:[#allocation3 + $0xb0] sm:$0xff] }
  0x31   :  { %445 = vmatprep.subr.mxu0 %v3066_v54  ;;  %516 = vmatprep.subr.mxu1 %v3068_v55  ;;  %4362 = vst [vmem:[#allocation28_spill] sm:$0xff] %v3167_v53 }
  0x32   :  { %446 = vmatpush1.msra.mxu0 %v3072_v56  ;;  %517 = vmatpush1.msra.mxu1 %v3074_v57 }
  0x33   :  { %447 = vmatprep.subr.mxu0 %v3078_v58  ;;  %518 = vmatprep.subr.mxu1 %v3080_v59 }
  0x34   :  { %172 = vmatprep.mubr.f32.mxu0 %v4238_v0  ;;  %285 = vmatprep.mubr.f32.mxu1 %v4238_v0 }
  0x35   :  { %448 = vmatpush1.msra.mxu0 %v3086_v60  ;;  %519 = vmatpush1.msra.mxu1 %v3088_v61 }
  0x36   :  { %2457 = vmatmul.mubr.msk.f32.gmra.mxu0 %vm53_vm0, %v34_v62  ;;  %2465 = vmatmul.mubr.msk.f32.gmra.mxu1 %vm53_vm0, %v34_v62  ;;  %v3171_v62 = vld [vmem:[#allocation3 + $0x88] sm:$0xff] }
  0x37   :  { %449 = vmatprep.subr.mxu0 %v3097_v63  ;;  %520 = vmatprep.subr.mxu1 %v3099_v1  ;;  %4363 = vst [vmem:[#allocation29_spill] sm:$0xff] %v3171_v62 }
  0x38   :  { %450 = vmatpush1.msra.mxu0 %v3103_v2  ;;  %521 = vmatpush1.msra.mxu1 %v3105_v3 }
  0x39   :  { %451 = vmatprep.subr.mxu0 %v3109_v4  ;;  %522 = vmatprep.subr.mxu1 %v3111_v5 }
  0x3a   :  { %178 = vmatprep.mubr.f32.mxu0 %v4238_v0  ;;  %291 = vmatprep.mubr.f32.mxu1 %v4238_v0 }
  0x3b   :  { %452 = vmatpush1.msra.mxu0 %v3117_v6  ;;  %523 = vmatpush1.msra.mxu1 %v3119_v7 }
  0x3c   :  { %2458 = vmatmul.mubr.msk.f32.gmra.mxu0 %vm53_vm0, %v35_v8  ;;  %2466 = vmatmul.mubr.msk.f32.gmra.mxu1 %vm53_vm0, %v35_v8  ;;  %v3173_v8 = vld [vmem:[#allocation3 + $0x98] sm:$0xff] }
  0x3d   :  { %453 = vmatprep.subr.mxu0 %v3128_v9  ;;  %524 = vmatprep.subr.mxu1 %v3130_v10  ;;  %4364 = vst [vmem:[#allocation30_spill] sm:$0xff] %v3173_v8 }
  0x3e   :  { %454 = vmatpush1.msra.mxu0 %v3134_v11  ;;  %525 = vmatpush1.msra.mxu1 %v3136_v12 }
  0x3f   :  { %455 = vmatprep.subr.mxu0 %v3140_v13  ;;  %526 = vmatprep.subr.mxu1 %v3142_v14 }
  0x40   :  { %184 = vmatprep.mubr.f32.mxu0 %v4238_v0  ;;  %297 = vmatprep.mubr.f32.mxu1 %v4238_v0  ;;  %v3177_v0 = vld [vmem:[#allocation3 + $0x80] sm:$0xff] }
  0x41   :  { %456 = vmatpush1.msra.mxu0 %v3148_v15  ;;  %527 = vmatpush1.msra.mxu1 %v3150_v16  ;;  %4365 = vst [vmem:[#allocation31_spill] sm:$0xff] %v3177_v0  ;;  %v3181_v16 = vld [vmem:[#allocation3 + $0x90] sm:$0xff] }
  0x42   :  { %2459 = vmatmul.mubr.msk.f32.gmra.mxu0 %vm53_vm0, %v36_v17  ;;  %2467 = vmatmul.mubr.msk.f32.gmra.mxu1 %vm53_vm0, %v36_v17  ;;  %4366 = vst [vmem:[#allocation32_spill] sm:$0xff] %v3181_v16  ;;  %v4367_v17 = vmov 0.0  }
  0x43   :  { %457 = vmatprep.subr.mxu0 %v3159_v26  ;;  %528 = vmatprep.subr.mxu1 %v3161_v35 }
  0x44   :  { %458 = vmatpush1.msra.mxu0 %v3165_v44  ;;  %529 = vmatpush1.msra.mxu1 %v3167_v53 }
  0x45   :  { %459 = vmatprep.subr.mxu0 %v3171_v62  ;;  %530 = vmatprep.subr.mxu1 %v3173_v8 }
  0x46   :  { %460 = vmatpush1.msra.mxu0 %v3177_v0  ;;  %493 = vmatprep.mubr.f32.mxu0 %v4367_v17 }
  0x47   :  { %531 = vmatpush1.msra.mxu1 %v3181_v16  ;;  %564 = vmatprep.mubr.f32.mxu1 %v4367_v17 }
  0x48   :  { %494 = vmatmul.mubr.f32.vlgmr.msra.gmra.mxu0 %v4367_v17  ;;  %565 = vmatmul.mubr.f32.vlgmr.msra.gmra.mxu1 %v4367_v17 }
  0x49   :  { %606 = vmatprep.subr.mxu0 %v2944_v18  ;;  %677 = vmatprep.subr.mxu1 %v2946_v19 }
  0x4a   :  { %607 = vmatpush1.msra.mxu0 %v2948_v20  ;;  %678 = vmatpush1.msra.mxu1 %v2950_v21 }
  0x4b   :  { %608 = vmatprep.subr.mxu0 %v2954_v22  ;;  %679 = vmatprep.subr.mxu1 %v2956_v23 }
  0x4c   :  { %609 = vmatpush1.msra.mxu0 %v2962_v24  ;;  %680 = vmatpush1.msra.mxu1 %v2964_v25 }
  0x4d   :  { %610 = vmatprep.subr.mxu0 %v2973_v27  ;;  %681 = vmatprep.subr.mxu1 %v2975_v28 }
  0x4e   :  { %611 = vmatpush1.msra.mxu0 %v2979_v29  ;;  %682 = vmatpush1.msra.mxu1 %v2981_v30 }
  0x4f   :  { %612 = vmatprep.subr.mxu0 %v2985_v31  ;;  %683 = vmatprep.subr.mxu1 %v2987_v32 }
  0x50   :  { %613 = vmatpush1.msra.mxu0 %v2993_v33  ;;  %684 = vmatpush1.msra.mxu1 %v2995_v34 }
  0x51   :  { %614 = vmatprep.subr.mxu0 %v3004_v36  ;;  %685 = vmatprep.subr.mxu1 %v3006_v37 }
  0x52   :  { %615 = vmatpush1.msra.mxu0 %v3010_v38  ;;  %686 = vmatpush1.msra.mxu1 %v3012_v39 }
  0x53   :  { %616 = vmatprep.subr.mxu0 %v3016_v40  ;;  %687 = vmatprep.subr.mxu1 %v3018_v41 }
  0x54   :  { %617 = vmatpush1.msra.mxu0 %v3024_v42  ;;  %688 = vmatpush1.msra.mxu1 %v3026_v43 }
  0x55   :  { %618 = vmatprep.subr.mxu0 %v3035_v45  ;;  %689 = vmatprep.subr.mxu1 %v3037_v46 }
  0x56   :  { %619 = vmatpush1.msra.mxu0 %v3041_v47  ;;  %690 = vmatpush1.msra.mxu1 %v3043_v48 }
  0x57   :  { %620 = vmatprep.subr.mxu0 %v3047_v49  ;;  %691 = vmatprep.subr.mxu1 %v3049_v50 }
  0x58   :  { %621 = vmatpush1.msra.mxu0 %v3055_v51  ;;  %692 = vmatpush1.msra.mxu1 %v3057_v52 }
  0x59   :  { %622 = vmatprep.subr.mxu0 %v3066_v54  ;;  %693 = vmatprep.subr.mxu1 %v3068_v55 }
  0x5a   :  { %623 = vmatpush1.msra.mxu0 %v3072_v56  ;;  %694 = vmatpush1.msra.mxu1 %v3074_v57 }
  0x5b   :  { %624 = vmatprep.subr.mxu0 %v3078_v58  ;;  %695 = vmatprep.subr.mxu1 %v3080_v59 }
  0x5c   :  { %625 = vmatpush1.msra.mxu0 %v3086_v60  ;;  %696 = vmatpush1.msra.mxu1 %v3088_v61 }
  0x5d   :  { %626 = vmatprep.subr.mxu0 %v3097_v63  ;;  %697 = vmatprep.subr.mxu1 %v3099_v1 }
  0x5e   :  { %627 = vmatpush1.msra.mxu0 %v3103_v2  ;;  %698 = vmatpush1.msra.mxu1 %v3105_v3 }
  0x5f   :  { %628 = vmatprep.subr.mxu0 %v3109_v4  ;;  %699 = vmatprep.subr.mxu1 %v3111_v5  ;;  %v4368_v4 = vld [vmem:[#allocation24_spill] sm:$0xff] }
  0x60   :  { %629 = vmatpush1.msra.mxu0 %v3117_v6  ;;  %700 = vmatpush1.msra.mxu1 %v3119_v7 }
  0x61   :  { %630 = vmatprep.subr.mxu0 %v3128_v9  ;;  %701 = vmatprep.subr.mxu1 %v3130_v10 }
  0x62   :  { %631 = vmatpush1.msra.mxu0 %v3134_v11  ;;  %702 = vmatpush1.msra.mxu1 %v3136_v12 }
  0x63   :  { %632 = vmatprep.subr.mxu0 %v3140_v13  ;;  %703 = vmatprep.subr.mxu1 %v3142_v14 }
  0x64   :  { %633 = vmatpush1.msra.mxu0 %v3148_v15  ;;  %704 = vmatpush1.msra.mxu1 %v4368_v4 }
  0x65   :  { %634 = vmatprep.subr.mxu0 %v3159_v26  ;;  %705 = vmatprep.subr.mxu1 %v3161_v35 }
  0x66   :  { %635 = vmatpush1.msra.mxu0 %v3165_v44  ;;  %706 = vmatpush1.msra.mxu1 %v3167_v53 }
  0x67   :  { %636 = vmatprep.subr.mxu0 %v3171_v62  ;;  %707 = vmatprep.subr.mxu1 %v3173_v8 }
  0x68   :  { %637 = vmatpush1.msra.mxu0 %v3177_v0  ;;  %670 = vmatprep.mubr.f32.mxu0 %v4367_v17 }
  0x69   :  { %708 = vmatpush1.msra.mxu1 %v3181_v16  ;;  %741 = vmatprep.mubr.f32.mxu1 %v4367_v17 }
  0x6a   :  { %783 = vmatprep.subr.mxu0 %v2944_v18  ;;  %854 = vmatprep.subr.mxu1 %v2946_v19 }
  0xd8   :  { %v144_v35 = vpop.f32.mrf.mxu0  ;;  %v257_v44 = vpop.f32.mrf.mxu1 }
  0xda   :  { %v146_v26 = vpop.f32.mrf.mxu0  ;;  %v259_v53 = vpop.f32.mrf.mxu1 }
  0xde   :  { %v3259_v4 = vpop.f32.mrf.mxu0  ;;  %v3261_v62 = vpop.f32.mrf.mxu1 }
  0xdf   :  { %4369 = vst [vmem:[#allocation33_spill] sm:$0xff] %v3259_v4  ;;  %4370 = vst [vmem:[#allocation34_spill] sm:$0xff] %v3261_v62 }
  0xe0   :  { %v3263_v8 = vpop.f32.mrf.mxu0  ;;  %v3265_v0 = vpop.f32.mrf.mxu1 }
  0xe1   :  { %4371 = vst [vmem:[#allocation35_spill] sm:$0xff] %v3263_v8  ;;  %4372 = vst [vmem:[#allocation36_spill] sm:$0xff] %v3265_v0 }
  0xe4   :  { %v3267_v15 = vpop.f32.mrf.mxu0  ;;  %v3269_v16 = vpop.f32.mrf.mxu1 }
  0xe5   :  { %4373 = vst [vmem:[#allocation37_spill] sm:$0xff] %v3267_v15  ;;  %4374 = vst [vmem:[#allocation38_spill] sm:$0xff] %v3269_v16 }
  0xe6   :  { %v3271_v17 = vpop.f32.mrf.mxu0  ;;  %v3273_v18 = vpop.f32.mrf.mxu1 }
  0xe7   :  { %4375 = vst [vmem:[#allocation39_spill] sm:$0xff] %v3271_v17  ;;  %4376 = vst [vmem:[#allocation40_spill] sm:$0xff] %v3273_v18 }
  0xea   :  { %v3275_v19 = vpop.f32.mrf.mxu0  ;;  %v3277_v14 = vpop.f32.mrf.mxu1 }
  0xeb   :  { %4377 = vst [vmem:[#allocation41_spill] sm:$0xff] %v3275_v19  ;;  %4378 = vst [vmem:[#allocation42_spill] sm:$0xff] %v3277_v14  ;;  %v336_v19 = vlaneseq }
  0xec   :  { %v3279_v13 = vpop.f32.mrf.mxu0  ;;  %v3281_v4 = vpop.f32.mrf.mxu1 }
  0xed   :  { %4379 = vst [vmem:[#allocation43_spill] sm:$0xff] %v3279_v13  ;;  %4380 = vst [vmem:[#allocation44_spill] sm:$0xff] %v3281_v4  ;;  %v410_v4 = vshrl.u32 %v336_v19, 7 }
  0xef   :  { %v419_v9 = vsub.s32 2, %v410_v4 }
  0xf0   :  { %v3283_v62 = vpop.f32.mrf.mxu0  ;;  %v3285_v8 = vpop.f32.mrf.mxu1 }
  0xf1   :  { %4381 = vst [vmem:[#allocation45_spill] sm:$0xff] %v3283_v62  ;;  %4382 = vst [vmem:[#allocation46_spill] sm:$0xff] %v3285_v8  ;;  %v411_v8 = vsub.s32 0, %v410_v4 }
  0xf2   :  { %v3287_v0 = vpop.f32.mrf.mxu0  ;;  %v3289_v15 = vpop.f32.mrf.mxu1 }
  0xf3   :  { %4383 = vst [vmem:[#allocation47_spill] sm:$0xff] %v3287_v0  ;;  %4384 = vst [vmem:[#allocation48_spill] sm:$0xff] %v3289_v15  ;;  %v407_v15 = vld [vmem:[#allocation3 + $0x280] ss:$8 sm:$0xf] }
  0xf4   :  { %v3321_v3 = vrot.slane %v407_v15, %v419_v9 }
  0xf6   :  { %v3291_v16 = vpop.f32.mrf.mxu0  ;;  %v3293_v17 = vpop.f32.mrf.mxu1 }
  0xf7   :  { %4385 = vst [vmem:[#allocation49_spill] sm:$0xff] %v3291_v16  ;;  %4386 = vst [vmem:[#allocation50_spill] sm:$0xff] %v3293_v17  ;;  %v415_v16 = vsub.s32 1, %v410_v4 }
  0xf8   :  { %v3295_v18 = vpop.f32.mrf.mxu0  ;;  %v3297_v14 = vpop.f32.mrf.mxu1 }
  0xf9   :  { %4387 = vst [vmem:[#allocation51_spill] sm:$0xff] %v3295_v18  ;;  %4388 = vst [vmem:[#allocation52_spill] sm:$0xff] %v3297_v14  ;;  %v3311_v18 = vrot.slane %v407_v15, %v411_v8  ;;  %v3315_v14 = vrot.slane %v407_v15, %v415_v16 }
  0xfb   :  { %4395 = vst [vmem:[#allocation59_spill] sm:$0xff] %v3311_v18 }
  0xfc   :  { %v3299_v13 = vpop.f32.mrf.mxu0  ;;  %v3303_v62 = vpop.f32.mrf.mxu1 }
  0xfd   :  { %4389 = vst [vmem:[#allocation53_spill] sm:$0xff] %v3299_v13  ;;  %4391 = vst [vmem:[#allocation55_spill] sm:$0xff] %v3303_v62 }
  0xfe   :  { %v3301_v12 = vpop.f32.mrf.mxu0  ;;  %v3307_v11 = vpop.f32.mrf.mxu1 }
  0xff   :  { %4390 = vst [vmem:[#allocation54_spill] sm:$0xff] %v3301_v12  ;;  %4393 = vst [vmem:[#allocation57_spill] sm:$0xff] %v3307_v11 }
 0x102   :  { %v3305_v0 = vpop.f32.mrf.mxu0  ;;  %v3313_v10 = vpop.f32.mrf.mxu1 }
 0x103   :  { %4392 = vst [vmem:[#allocation56_spill] sm:$0xff] %v3305_v0  ;;  %4396 = vst [vmem:[#allocation60_spill] sm:$0xff] %v3313_v10  ;;  %v423_v10 = vsub.s32 3, %v410_v4 }
 0x104   :  { %v3309_v17 = vpop.f32.mrf.mxu0  ;;  %v3318_v7 = vpop.f32.mrf.mxu1 }
 0x105   :  { %4394 = vst [vmem:[#allocation58_spill] sm:$0xff] %v3309_v17  ;;  %4397 = vst [vmem:[#allocation61_spill] sm:$0xff] %v3318_v7  ;;  %v3324_v2 = vrot.slane %v407_v15, %v423_v10 }
 0x108   :  { %v495_v13 = vpop.f32.mrf.mxu0  ;;  %v566_v8 = vpop.f32.mrf.mxu1 }
 0x109   :  { %v496_v12 = vadd.f32 %v495_v13, %v3311_v18  ;;  %v567_v16 = vadd.f32 %v566_v8, %v3321_v3 }
 0x10a   :  { %v497_v62 = vpop.f32.mrf.mxu0  ;;  %v568_v13 = vpop.f32.mrf.mxu1 }
 0x10b   :  { %v571_v0 = vadd.f32 %v496_v12, %v144_v35  ;;  %v498_v6 = vadd.f32 %v497_v62, %v3315_v14  ;;  %v573_v18 = vadd.f32 %v567_v16, %v257_v44  ;;  %v569_v7 = vadd.f32 %v568_v13, %v3324_v2 }
 0x10d   :  { %v2468_v11 = vmul.f32 -1.442695, %v571_v0  ;;  %v572_v5 = vadd.f32 %v498_v6, %v146_v26  ;;  %v2470_v12 = vmul.f32 -1.442695, %v573_v18  ;;  %v574_v62 = vadd.f32 %v569_v7, %v259_v53 }
 0x10f   :  { %2562 = vpow2.f32 %v2468_v11  ;;  %v2469_v17 = vmul.f32 -1.442695, %v572_v5  ;;  %v3327_v11 = vand.u32 127, %v336_v19  ;;  %v4398_v19 = vld [vmem:[#allocation11_spill] sm:$0xff] }
 0x111   :  { %2564 = vpow2.f32 %v2469_v17  ;;  %vm599_vm1 = vcmp.lt.s32.totalorder %v3327_v11, 32  ;;  %vm776_vm2 = vcmp.lt.s32.totalorder %v3327_v11, 64  ;;  %vm953_vm3 = vcmp.lt.s32.totalorder %v3327_v11, 96  ;;  %v3504_v11 = vld [vmem:[#allocation3 + $0x248] sm:$0xff] }
 0x112   :  { %2566 = vpow2.f32 %v2470_v12  ;;  %v4399_v12 = vld [vmem:[#allocation12_spill] sm:$0xff] }
 0x11c   :  { %v2563_v35 = vpop.eup %2562 }
 0x11d   :  { %v584_v0 = vadd.f32 1.0, %v2563_v35  ;;  %v4400_v35 = vld [vmem:[#allocation13_spill] sm:$0xff] }
 0x11e   :  { %v2565_v6 = vpop.eup %2564 }
 0x11f   :  { %2568 = vrcp.f32 %v584_v0  ;;  %v585_v9 = vadd.f32 1.0, %v2565_v6  ;;  %v2567_v4 = vpop.eup %2566  ;;  %v4402_v0 = vld [vmem:[#allocation15_spill] sm:$0xff]  ;;  %v4403_v6 = vld [vmem:[#allocation16_spill] sm:$0xff] }
 0x120   :  { %2570 = vtanh.f32 %v574_v62  ;;  %v586_v26 = vadd.f32 1.0, %v2567_v4  ;;  %v4401_v62 = vld [vmem:[#allocation14_spill] sm:$0xff] }
 0x121   :  { %2572 = vrcp.f32 %v585_v9  ;;  %v4404_v9 = vld [vmem:[#allocation17_spill] sm:$0xff]  ;;  %v4405_v4 = vld [vmem:[#allocation18_spill] sm:$0xff] }
 0x122   :  { %2574 = vrcp.f32 %v586_v26  ;;  %v4409_v26 = vld [vmem:[#allocation22_spill] sm:$0xff] }
 0x12c   :  { %v2569_v5 = vpop.eup %2568 }
 0x12d   :  { %v2571_v10 = vpop.eup %2570 }
 0x12e   :  { %v2573_v15 = vpop.eup %2572  ;;  %v595_v17 = vmul.f32 %v2571_v10, %v2569_v5  ;;  %v4406_v5 = vld [vmem:[#allocation19_spill] sm:$0xff]  ;;  %v4407_v10 = vld [vmem:[#allocation20_spill] sm:$0xff] }
 0x12f   :  { %v594_v44 = vmul.f32 0.0, %v2573_v15  ;;  %v2575_v53 = vpop.eup %2574  ;;  %v4408_v15 = vld [vmem:[#allocation21_spill] sm:$0xff] }
 0x131   :  { %v596_v18 = vadd.f32 %v595_v17, %v594_v44  ;;  %v4410_v44 = vld [vmem:[#allocation23_spill] sm:$0xff]  ;;  %v4411_v17 = vld [vmem:[#allocation24_spill] sm:$0xff] }
 0x133   :  { %2576 = vtanh.f32 %v596_v18  ;;  %v3330_v7 = vsel %vm599_vm1, %v596_v18, 0.0  ;;  %v4412_v18 = vld [vmem:[#allocation25_spill] sm:$0xff] }
 0x140   :  { %v2577_v8 = vpop.eup %2576 }
 0x141   :  { %v598_v16 = vmul.f32 %v2577_v8, %v2575_v53  ;;  %v4413_v53 = vld [vmem:[#allocation26_spill] sm:$0xff]  ;;  %v4414_v8 = vld [vmem:[#allocation27_spill] sm:$0xff] }
 0x143   :  { %2471 = vmatmul.mubr.msk.f32.vlgmr.msra.gmra.mxu0 %vm599_vm1, %v598_v16  ;;  %2472 = vmatmul.mubr.msk.f32.vlgmr.msra.gmra.mxu1 %vm599_vm1, %v598_v16  ;;  %v3332_v13 = vsel %vm599_vm1, %v598_v16, 0.0  ;;  %v4415_v16 = vld [vmem:[#allocation28_spill] sm:$0xff] }
 0x144   :  { %784 = vmatpush1.msra.mxu0 %v2948_v20  ;;  %855 = vmatpush1.msra.mxu1 %v2950_v21 }
 0x145   :  { %785 = vmatprep.subr.mxu0 %v2954_v22  ;;  %856 = vmatprep.subr.mxu1 %v2956_v23 }
 0x146   :  { %786 = vmatpush1.msra.mxu0 %v2962_v24  ;;  %857 = vmatpush1.msra.mxu1 %v2964_v25 }
 0x147   :  { %787 = vmatprep.subr.mxu0 %v2973_v27  ;;  %858 = vmatprep.subr.mxu1 %v2975_v28 }
 0x148   :  { %788 = vmatpush1.msra.mxu0 %v2979_v29  ;;  %859 = vmatpush1.msra.mxu1 %v2981_v30 }
 0x149   :  { %789 = vmatprep.subr.mxu0 %v2985_v31  ;;  %860 = vmatprep.subr.mxu1 %v2987_v32 }
 0x14a   :  { %790 = vmatpush1.msra.mxu0 %v2993_v33  ;;  %861 = vmatpush1.msra.mxu1 %v2995_v34 }
 0x14b   :  { %791 = vmatprep.subr.mxu0 %v3004_v36  ;;  %862 = vmatprep.subr.mxu1 %v3006_v37 }
 0x14c   :  { %792 = vmatpush1.msra.mxu0 %v3010_v38  ;;  %863 = vmatpush1.msra.mxu1 %v3012_v39 }
 0x14d   :  { %793 = vmatprep.subr.mxu0 %v3016_v40  ;;  %864 = vmatprep.subr.mxu1 %v3018_v41 }
 0x14e   :  { %794 = vmatpush1.msra.mxu0 %v3024_v42  ;;  %865 = vmatpush1.msra.mxu1 %v3026_v43 }
 0x14f   :  { %795 = vmatprep.subr.mxu0 %v3035_v45  ;;  %866 = vmatprep.subr.mxu1 %v3037_v46 }
 0x150   :  { %796 = vmatpush1.msra.mxu0 %v3041_v47  ;;  %867 = vmatpush1.msra.mxu1 %v3043_v48 }
 0x151   :  { %797 = vmatprep.subr.mxu0 %v3047_v49  ;;  %868 = vmatprep.subr.mxu1 %v3049_v50 }
 0x152   :  { %798 = vmatpush1.msra.mxu0 %v3055_v51  ;;  %869 = vmatpush1.msra.mxu1 %v3057_v52 }
 0x153   :  { %799 = vmatprep.subr.mxu0 %v3066_v54  ;;  %870 = vmatprep.subr.mxu1 %v3068_v55 }
 0x154   :  { %800 = vmatpush1.msra.mxu0 %v3072_v56  ;;  %871 = vmatpush1.msra.mxu1 %v3074_v57 }
 0x155   :  { %801 = vmatprep.subr.mxu0 %v3078_v58  ;;  %872 = vmatprep.subr.mxu1 %v3080_v59 }
 0x156   :  { %802 = vmatpush1.msra.mxu0 %v3086_v60  ;;  %873 = vmatpush1.msra.mxu1 %v3088_v61 }
 0x157   :  { %803 = vmatprep.subr.mxu0 %v3097_v63  ;;  %874 = vmatprep.subr.mxu1 %v3099_v1 }
 0x158   :  { %804 = vmatpush1.msra.mxu0 %v4398_v19  ;;  %875 = vmatpush1.msra.mxu1 %v4399_v12  ;;  %v4427_v19 = vld [vmem:[#allocation36_spill] sm:$0xff] }
 0x159   :  { %805 = vmatprep.subr.mxu0 %v4400_v35  ;;  %876 = vmatprep.subr.mxu1 %v4401_v62  ;;  %v4426_v35 = vld [vmem:[#allocation34_spill] sm:$0xff] }
 0x15a   :  { %806 = vmatpush1.msra.mxu0 %v4402_v0  ;;  %877 = vmatpush1.msra.mxu1 %v4403_v6 }
 0x15b   :  { %807 = vmatprep.subr.mxu0 %v4404_v9  ;;  %878 = vmatprep.subr.mxu1 %v4405_v4  ;;  %v4416_v4 = vld [vmem:[#allocation29_spill] sm:$0xff] }
 0x15c   :  { %808 = vmatpush1.msra.mxu0 %v4406_v5  ;;  %879 = vmatpush1.msra.mxu1 %v4407_v10  ;;  %v4417_v5 = vld [vmem:[#allocation30_spill] sm:$0xff]  ;;  %v4418_v10 = vld [vmem:[#allocation31_spill] sm:$0xff]  ;;  %v4424_v9 = vld [vmem:[#allocation33_spill] sm:$0xff] }
 0x15d   :  { %809 = vmatprep.subr.mxu0 %v4408_v15  ;;  %880 = vmatprep.subr.mxu1 %v4409_v26  ;;  %v4419_v15 = vmov 0.0   ;;  %v4420_v26 = vld [vmem:[#allocation32_spill] sm:$0xff] }
 0x15e   :  { %810 = vmatpush1.msra.mxu0 %v4410_v44  ;;  %881 = vmatpush1.msra.mxu1 %v4411_v17  ;;  %v4421_v17 = vld [vmem:[#allocation9_spill] sm:$0xff] }
 0x15f   :  { %811 = vmatprep.subr.mxu0 %v4412_v18  ;;  %882 = vmatprep.subr.mxu1 %v4413_v53  ;;  %v4422_v18 = vld [vmem:[#allocation10_spill] sm:$0xff] }
 0x160   :  { %812 = vmatpush1.msra.mxu0 %v4414_v8  ;;  %883 = vmatpush1.msra.mxu1 %v4415_v16  ;;  %v4423_v8 = vld [vmem:[#allocation59_spill] sm:$0xff] }
 0x161   :  { %813 = vmatprep.subr.mxu0 %v4416_v4  ;;  %884 = vmatprep.subr.mxu1 %v4417_v5 }
 0x162   :  { %814 = vmatpush1.msra.mxu0 %v4418_v10  ;;  %847 = vmatprep.mubr.f32.mxu0 %v4419_v15  ;;  %v4425_v10 = vld [vmem:[#allocation35_spill] sm:$0xff] }
 0x163   :  { %885 = vmatpush1.msra.mxu1 %v4420_v26  ;;  %918 = vmatprep.mubr.f32.mxu1 %v4419_v15 }
 0x164   :  { %963 = vmatprep.subr.mxu0 %v4421_v17  ;;  %1034 = vmatprep.subr.mxu1 %v4422_v18 }
 0x203   :  { %v672_v53 = vpop.f32.mrf.mxu0  ;;  %v743_v62 = vpop.f32.mrf.mxu1 }
 0x204   :  { %v673_v44 = vadd.f32 %v672_v53, %v4423_v8  ;;  %v744_v15 = vadd.f32 %v743_v62, %v3321_v3 }
 0x205   :  { %v674_v16 = vpop.f32.mrf.mxu0  ;;  %v745_v17 = vpop.f32.mrf.mxu1 }
 0x206   :  { %v748_v4 = vadd.f32 %v673_v44, %v4424_v9  ;;  %v675_v5 = vadd.f32 %v674_v16, %v3315_v14  ;;  %v750_v18 = vadd.f32 %v744_v15, %v4426_v35  ;;  %v746_v12 = vadd.f32 %v745_v17, %v3324_v2 }
 0x208   :  { %v2473_v6 = vmul.f32 -1.442695, %v748_v4  ;;  %v749_v0 = vadd.f32 %v675_v5, %v4425_v10  ;;  %v2475_v53 = vmul.f32 -1.442695, %v750_v18  ;;  %v751_v9 = vadd.f32 %v746_v12, %v4427_v19 }
 0x20a   :  { %2578 = vpow2.f32 %v2473_v6  ;;  %v2474_v26 = vmul.f32 -1.442695, %v749_v0 }
 0x20c   :  { %2580 = vpow2.f32 %v2474_v26 }
 0x20d   :  { %2582 = vpow2.f32 %v2475_v53  ;;  %v4450_v53 = vld [vmem:[#allocation32_spill] sm:$0xff] }
 0x217   :  { %v2579_v8 = vpop.eup %2578 }
 0x218   :  { %v761_v44 = vadd.f32 1.0, %v2579_v8 }
 0x219   :  { %v2581_v16 = vpop.eup %2580 }
 0x21a   :  { %2584 = vrcp.f32 %v761_v44  ;;  %v762_v4 = vadd.f32 1.0, %v2581_v16  ;;  %v2583_v0 = vpop.eup %2582  ;;  %v4452_v44 = vld [vmem:[#allocation10_spill] sm:$0xff] }
 0x21b   :  { %2586 = vtanh.f32 %v751_v9  ;;  %v763_v10 = vadd.f32 1.0, %v2583_v0  ;;  %v4451_v9 = vld [vmem:[#allocation9_spill] sm:$0xff] }
 0x21c   :  { %2588 = vrcp.f32 %v762_v4  ;;  %v4453_v4 = vld [vmem:[#allocation59_spill] sm:$0xff] }
 0x21d   :  { %2590 = vrcp.f32 %v763_v10 }
 0x227   :  { %v2585_v6 = vpop.eup %2584 }
 0x228   :  { %v2587_v5 = vpop.eup %2586 }
 0x229   :  { %v2589_v62 = vpop.eup %2588  ;;  %v772_v15 = vmul.f32 %v2587_v5, %v2585_v6  ;;  %v4454_v5 = vld [vmem:[#allocation37_spill] sm:$0xff] }
 0x22a   :  { %v771_v35 = vmul.f32 %v2589_v62, %v3330_v7  ;;  %v2591_v12 = vpop.eup %2590 }
 0x22c   :  { %v773_v26 = vadd.f32 %v772_v15, %v771_v35  ;;  %v4455_v15 = vld [vmem:[#allocation39_spill] sm:$0xff] }
 0x22e   :  { %2592 = vtanh.f32 %v773_v26  ;;  %v3411_v19 = vsel %vm776_vm2, %v773_v26, %v3330_v7  ;;  %v4448_v7 = vld [vmem:[#allocation31_spill] sm:$0xff] }
 0x23b   :  { %v2593_v17 = vpop.eup %2592 }
 0x23c   :  { %v775_v18 = vmul.f32 %v2593_v17, %v2591_v12 }
 0x23e   :  { %v3414_v8 = vsel %vm776_vm2, %v775_v18, %v3332_v13  ;;  %v4449_v13 = vmov 0.0  }
 0x23f   :  { %848 = vmatmul.mubr.f32.vlgmr.msra.gmra.mxu0 %v3414_v8  ;;  %919 = vmatmul.mubr.f32.vlgmr.msra.gmra.mxu1 %v3414_v8 }
 0x240   :  { %964 = vmatpush1.msra.mxu0 %v2948_v20  ;;  %1035 = vmatpush1.msra.mxu1 %v2950_v21  ;;  %v4428_v20 = vld [vmem:[#allocation11_spill] sm:$0xff]  ;;  %v4429_v21 = vld [vmem:[#allocation12_spill] sm:$0xff] }
 0x241   :  { %965 = vmatprep.subr.mxu0 %v2954_v22  ;;  %1036 = vmatprep.subr.mxu1 %v2956_v23  ;;  %v4430_v22 = vld [vmem:[#allocation13_spill] sm:$0xff]  ;;  %v4431_v23 = vld [vmem:[#allocation14_spill] sm:$0xff] }
 0x242   :  { %966 = vmatpush1.msra.mxu0 %v2962_v24  ;;  %1037 = vmatpush1.msra.mxu1 %v2964_v25  ;;  %v4432_v24 = vld [vmem:[#allocation15_spill] sm:$0xff]  ;;  %v4433_v25 = vld [vmem:[#allocation16_spill] sm:$0xff] }
 0x243   :  { %967 = vmatprep.subr.mxu0 %v2973_v27  ;;  %1038 = vmatprep.subr.mxu1 %v2975_v28  ;;  %v4434_v27 = vld [vmem:[#allocation17_spill] sm:$0xff]  ;;  %v4435_v28 = vld [vmem:[#allocation18_spill] sm:$0xff] }
 0x244   :  { %968 = vmatpush1.msra.mxu0 %v2979_v29  ;;  %1039 = vmatpush1.msra.mxu1 %v2981_v30  ;;  %v4436_v29 = vld [vmem:[#allocation19_spill] sm:$0xff]  ;;  %v4437_v30 = vld [vmem:[#allocation20_spill] sm:$0xff] }
 0x245   :  { %969 = vmatprep.subr.mxu0 %v2985_v31  ;;  %1040 = vmatprep.subr.mxu1 %v2987_v32  ;;  %v4438_v31 = vld [vmem:[#allocation21_spill] sm:$0xff]  ;;  %v4439_v32 = vld [vmem:[#allocation22_spill] sm:$0xff] }
 0x246   :  { %970 = vmatpush1.msra.mxu0 %v2993_v33  ;;  %1041 = vmatpush1.msra.mxu1 %v2995_v34  ;;  %v4440_v33 = vld [vmem:[#allocation23_spill] sm:$0xff]  ;;  %v4441_v34 = vld [vmem:[#allocation24_spill] sm:$0xff] }
 0x247   :  { %971 = vmatprep.subr.mxu0 %v3004_v36  ;;  %1042 = vmatprep.subr.mxu1 %v3006_v37  ;;  %v4442_v36 = vld [vmem:[#allocation25_spill] sm:$0xff]  ;;  %v4443_v37 = vld [vmem:[#allocation26_spill] sm:$0xff] }
 0x248   :  { %972 = vmatpush1.msra.mxu0 %v3010_v38  ;;  %1043 = vmatpush1.msra.mxu1 %v3012_v39  ;;  %v4444_v38 = vld [vmem:[#allocation27_spill] sm:$0xff]  ;;  %v4445_v39 = vld [vmem:[#allocation28_spill] sm:$0xff] }
 0x249   :  { %973 = vmatprep.subr.mxu0 %v3016_v40  ;;  %1044 = vmatprep.subr.mxu1 %v3018_v41  ;;  %v4446_v40 = vld [vmem:[#allocation29_spill] sm:$0xff]  ;;  %v4447_v41 = vld [vmem:[#allocation30_spill] sm:$0xff] }
 0x24a   :  { %974 = vmatpush1.msra.mxu0 %v3024_v42  ;;  %1045 = vmatpush1.msra.mxu1 %v3026_v43 }
 0x24b   :  { %975 = vmatprep.subr.mxu0 %v3035_v45  ;;  %1046 = vmatprep.subr.mxu1 %v3037_v46 }
 0x24c   :  { %976 = vmatpush1.msra.mxu0 %v3041_v47  ;;  %1047 = vmatpush1.msra.mxu1 %v3043_v48 }
 0x24d   :  { %977 = vmatprep.subr.mxu0 %v3047_v49  ;;  %1048 = vmatprep.subr.mxu1 %v3049_v50 }
 0x24e   :  { %978 = vmatpush1.msra.mxu0 %v3055_v51  ;;  %1049 = vmatpush1.msra.mxu1 %v3057_v52 }
 0x24f   :  { %979 = vmatprep.subr.mxu0 %v3066_v54  ;;  %1050 = vmatprep.subr.mxu1 %v3068_v55 }
 0x250   :  { %980 = vmatpush1.msra.mxu0 %v3072_v56  ;;  %1051 = vmatpush1.msra.mxu1 %v3074_v57 }
 0x251   :  { %981 = vmatprep.subr.mxu0 %v3078_v58  ;;  %1052 = vmatprep.subr.mxu1 %v3080_v59 }
 0x252   :  { %982 = vmatpush1.msra.mxu0 %v3086_v60  ;;  %1053 = vmatpush1.msra.mxu1 %v3088_v61 }
 0x253   :  { %983 = vmatprep.subr.mxu0 %v3097_v63  ;;  %1054 = vmatprep.subr.mxu1 %v3099_v1 }
 0x254   :  { %984 = vmatpush1.msra.mxu0 %v4428_v20  ;;  %1055 = vmatpush1.msra.mxu1 %v4429_v21 }
 0x255   :  { %985 = vmatprep.subr.mxu0 %v4430_v22  ;;  %1056 = vmatprep.subr.mxu1 %v4431_v23 }
 0x256   :  { %986 = vmatpush1.msra.mxu0 %v4432_v24  ;;  %1057 = vmatpush1.msra.mxu1 %v4433_v25 }
 0x257   :  { %987 = vmatprep.subr.mxu0 %v4434_v27  ;;  %1058 = vmatprep.subr.mxu1 %v4435_v28 }
 0x258   :  { %988 = vmatpush1.msra.mxu0 %v4436_v29  ;;  %1059 = vmatpush1.msra.mxu1 %v4437_v30 }
 0x259   :  { %989 = vmatprep.subr.mxu0 %v4438_v31  ;;  %1060 = vmatprep.subr.mxu1 %v4439_v32 }
 0x25a   :  { %990 = vmatpush1.msra.mxu0 %v4440_v33  ;;  %1061 = vmatpush1.msra.mxu1 %v4441_v34 }
 0x25b   :  { %991 = vmatprep.subr.mxu0 %v4442_v36  ;;  %1062 = vmatprep.subr.mxu1 %v4443_v37 }
 0x25c   :  { %992 = vmatpush1.msra.mxu0 %v4444_v38  ;;  %1063 = vmatpush1.msra.mxu1 %v4445_v39 }
 0x25d   :  { %993 = vmatprep.subr.mxu0 %v4446_v40  ;;  %1064 = vmatprep.subr.mxu1 %v4447_v41 }
 0x25e   :  { %994 = vmatpush1.msra.mxu0 %v4448_v7  ;;  %1027 = vmatprep.mubr.f32.mxu0 %v4449_v13  ;;  %v4457_v7 = vld [vmem:[#allocation40_spill] sm:$0xff] }
 0x25f   :  { %1065 = vmatpush1.msra.mxu1 %v4450_v53  ;;  %1098 = vmatprep.mubr.f32.mxu1 %v4449_v13  ;;  %v4456_v53 = vld [vmem:[#allocation38_spill] sm:$0xff] }
 0x260   :  { %1140 = vmatprep.subr.mxu0 %v4451_v9  ;;  %1211 = vmatprep.subr.mxu1 %v4452_v44 }
 0x2ff   :  { %v849_v16 = vpop.f32.mrf.mxu0  ;;  %v920_v12 = vpop.f32.mrf.mxu1 }
 0x300   :  { %v850_v0 = vadd.f32 %v849_v16, %v4453_v4  ;;  %v921_v18 = vadd.f32 %v920_v12, %v3321_v3 }
 0x301   :  { %v851_v6 = vpop.f32.mrf.mxu0  ;;  %v922_v9 = vpop.f32.mrf.mxu1 }
 0x302   :  { %v925_v62 = vadd.f32 %v850_v0, %v4454_v5  ;;  %v852_v10 = vadd.f32 %v851_v6, %v3315_v14  ;;  %v927_v44 = vadd.f32 %v921_v18, %v4456_v53  ;;  %v923_v13 = vadd.f32 %v922_v9, %v3324_v2 }
 0x304   :  { %v2476_v35 = vmul.f32 -1.442695, %v925_v62  ;;  %v926_v26 = vadd.f32 %v852_v10, %v4455_v15  ;;  %v2478_v16 = vmul.f32 -1.442695, %v927_v44  ;;  %v928_v0 = vadd.f32 %v923_v13, %v4457_v7 }
 0x306   :  { %2594 = vpow2.f32 %v2476_v35  ;;  %v2477_v17 = vmul.f32 -1.442695, %v926_v26 }
 0x308   :  { %2596 = vpow2.f32 %v2477_v17 }
 0x309   :  { %2598 = vpow2.f32 %v2478_v16  ;;  %v3498_v16 = vld [vmem:[#allocation3 + $0x260] sm:$0xff] }
 0x313   :  { %v2595_v4 = vpop.eup %2594 }
 0x314   :  { %v938_v5 = vadd.f32 1.0, %v2595_v4 }
 0x315   :  { %v2597_v6 = vpop.eup %2596 }
 0x316   :  { %2600 = vrcp.f32 %v938_v5  ;;  %v939_v62 = vadd.f32 1.0, %v2597_v6  ;;  %v2599_v10 = vpop.eup %2598  ;;  %v3510_v5 = vld [vmem:[#allocation3 + $0x240] sm:$0xff]  ;;  %v3516_v6 = vld [vmem:[#allocation3 + $0x228] sm:$0xff] }
 0x317   :  { %2602 = vtanh.f32 %v928_v0  ;;  %v940_v12 = vadd.f32 1.0, %v2599_v10  ;;  %v3501_v0 = vld [vmem:[#allocation3 + $0x270] sm:$0xff]  ;;  %v3522_v10 = vld [vmem:[#allocation3 + $0x220] sm:$0xff] }
 0x318   :  { %2604 = vrcp.f32 %v939_v62  ;;  %v3519_v62 = vld [vmem:[#allocation3 + $0x238] sm:$0xff] }
 0x319   :  { %2606 = vrcp.f32 %v940_v12  ;;  %v3534_v12 = vld [vmem:[#allocation3 + $0x200] sm:$0xff] }
 0x323   :  { %v2601_v35 = vpop.eup %2600 }
 0x324   :  { %v2603_v15 = vpop.eup %2602 }
 0x325   :  { %v2605_v26 = vpop.eup %2604  ;;  %v949_v17 = vmul.f32 %v2603_v15, %v2601_v35  ;;  %v3525_v35 = vld [vmem:[#allocation3 + $0x230] sm:$0xff]  ;;  %v3528_v15 = vld [vmem:[#allocation3 + $0x208] sm:$0xff] }
 0x326   :  { %v948_v53 = vmul.f32 %v2605_v26, %v3411_v19  ;;  %v2607_v13 = vpop.eup %2606  ;;  %v3531_v26 = vld [vmem:[#allocation3 + $0x218] sm:$0xff] }
 0x328   :  { %v950_v18 = vadd.f32 %v949_v17, %v948_v53  ;;  %v3537_v53 = vld [vmem:[#allocation3 + $0x210] sm:$0xff]  ;;  %v3540_v17 = vld [vmem:[#allocation3 + $0x1e8] sm:$0xff] }
 0x32a   :  { %2608 = vtanh.f32 %v950_v18  ;;  %v3495_v7 = vsel %vm953_vm3, %v950_v18, %v3411_v19  ;;  %v3507_v19 = vld [vmem:[#allocation3 + $0x258] sm:$0xff] }
 0x32b   :  { %v3543_v18 = vld [vmem:[#allocation3 + $0x1f8] sm:$0xff] }
 0x337   :  { %v2609_v4 = vpop.eup %2608 }
 0x338   :  { %v952_v9 = vmul.f32 %v2609_v4, %v2607_v13  ;;  %v3546_v13 = vld [vmem:[#allocation3 + $0x1e0] sm:$0xff]  ;;  %v3549_v4 = vld [vmem:[#allocation3 + $0x1f0] sm:$0xff] }
 0x33a   :  { %v954_v44 = vsel %vm953_vm3, %v952_v9, %v3414_v8  ;;  %v3513_v8 = vld [vmem:[#allocation3 + $0x250] sm:$0xff]  ;;  %v3552_v9 = vld [vmem:[#allocation3 + $0x1c8] sm:$0xff] }
 0x33b   :  { %1028 = vmatmul.mubr.f32.vlgmr.msra.gmra.mxu0 %v954_v44  ;;  %1099 = vmatmul.mubr.f32.vlgmr.msra.gmra.mxu1 %v954_v44  ;;  %v3555_v44 = vld [vmem:[#allocation3 + $0x1d8] sm:$0xff] }
 0x33c   :  { %1141 = vmatpush1.msra.mxu0 %v3498_v16  ;;  %1212 = vmatpush1.msra.mxu1 %v3501_v0 }
 0x33d   :  { %1142 = vmatprep.subr.mxu0 %v3504_v11  ;;  %1213 = vmatprep.subr.mxu1 %v3507_v19 }
 0x33e   :  { %1143 = vmatpush1.msra.mxu0 %v3510_v5  ;;  %1214 = vmatpush1.msra.mxu1 %v3513_v8 }
 0x33f   :  { %1144 = vmatprep.subr.mxu0 %v3516_v6  ;;  %1215 = vmatprep.subr.mxu1 %v3519_v62 }
 0x340   :  { %1145 = vmatpush1.msra.mxu0 %v3522_v10  ;;  %1216 = vmatpush1.msra.mxu1 %v3525_v35 }
 0x341   :  { %1146 = vmatprep.subr.mxu0 %v3528_v15  ;;  %1217 = vmatprep.subr.mxu1 %v3531_v26 }
 0x342   :  { %1147 = vmatpush1.msra.mxu0 %v3534_v12  ;;  %1218 = vmatpush1.msra.mxu1 %v3537_v53 }
 0x343   :  { %1148 = vmatprep.subr.mxu0 %v3540_v17  ;;  %1219 = vmatprep.subr.mxu1 %v3543_v18 }
 0x344   :  { %1149 = vmatpush1.msra.mxu0 %v3546_v13  ;;  %1220 = vmatpush1.msra.mxu1 %v3549_v4 }
 0x345   :  { %1150 = vmatprep.subr.mxu0 %v3552_v9  ;;  %1221 = vmatprep.subr.mxu1 %v3555_v44 }
 0x346   :  { %1151 = vmatpush1.msra.mxu0 %v3024_v42  ;;  %1222 = vmatpush1.msra.mxu1 %v3026_v43  ;;  %v4458_v42 = vld [vmem:[#allocation31_spill] sm:$0xff]  ;;  %v4459_v43 = vmov 0.0  }
 0x347   :  { %1152 = vmatprep.subr.mxu0 %v3035_v45  ;;  %1223 = vmatprep.subr.mxu1 %v3037_v46  ;;  %v4460_v45 = vld [vmem:[#allocation32_spill] sm:$0xff]  ;;  %v3602_v46 = vld [vmem:[#allocation3 + $0x268] sm:$0xff] }
 0x348   :  { %1153 = vmatpush1.msra.mxu0 %v3041_v47  ;;  %1224 = vmatpush1.msra.mxu1 %v3043_v48  ;;  %4461 = vst [vmem:[#allocation33_spill] sm:$0xff] %v3602_v46  ;;  %v3605_v47 = vld [vmem:[#allocation3 + $0x278] sm:$0xff] }
 0x349   :  { %1154 = vmatprep.subr.mxu0 %v3047_v49  ;;  %1225 = vmatprep.subr.mxu1 %v3049_v50  ;;  %4462 = vst [vmem:[#allocation35_spill] sm:$0xff] %v3605_v47  ;;  %v4463_v49 = vld [vmem:[#allocation59_spill] sm:$0xff] }
 0x34a   :  { %1155 = vmatpush1.msra.mxu0 %v3055_v51  ;;  %1226 = vmatpush1.msra.mxu1 %v3057_v52  ;;  %v4464_v52 = vld [vmem:[#allocation41_spill] sm:$0xff] }
 0x34b   :  { %1156 = vmatprep.subr.mxu0 %v3066_v54  ;;  %1227 = vmatprep.subr.mxu1 %v3068_v55 }
 0x34c   :  { %1157 = vmatpush1.msra.mxu0 %v3072_v56  ;;  %1228 = vmatpush1.msra.mxu1 %v3074_v57  ;;  %v4465_v57 = vld [vmem:[#allocation43_spill] sm:$0xff] }
 0x34d   :  { %1158 = vmatprep.subr.mxu0 %v3078_v58  ;;  %1229 = vmatprep.subr.mxu1 %v3080_v59 }
 0x34e   :  { %1159 = vmatpush1.msra.mxu0 %v3086_v60  ;;  %1230 = vmatpush1.msra.mxu1 %v3088_v61 }
 0x34f   :  { %1160 = vmatprep.subr.mxu0 %v3097_v63  ;;  %1231 = vmatprep.subr.mxu1 %v3099_v1  ;;  %v4466_v1 = vld [vmem:[#allocation42_spill] sm:$0xff] }
 0x350   :  { %1161 = vmatpush1.msra.mxu0 %v4428_v20  ;;  %1232 = vmatpush1.msra.mxu1 %v4429_v21 }
 0x351   :  { %1162 = vmatprep.subr.mxu0 %v4430_v22  ;;  %1233 = vmatprep.subr.mxu1 %v4431_v23 }
 0x352   :  { %1163 = vmatpush1.msra.mxu0 %v4432_v24  ;;  %1234 = vmatpush1.msra.mxu1 %v4433_v25  ;;  %v4467_v24 = vld [vmem:[#allocation44_spill] sm:$0xff] }
 0x353   :  { %1164 = vmatprep.subr.mxu0 %v4434_v27  ;;  %1235 = vmatprep.subr.mxu1 %v4435_v28 }
 0x354   :  { %1165 = vmatpush1.msra.mxu0 %v4436_v29  ;;  %1236 = vmatpush1.msra.mxu1 %v4437_v30 }
 0x355   :  { %1166 = vmatprep.subr.mxu0 %v4438_v31  ;;  %1237 = vmatprep.subr.mxu1 %v4439_v32 }
 0x356   :  { %1167 = vmatpush1.msra.mxu0 %v4440_v33  ;;  %1238 = vmatpush1.msra.mxu1 %v4441_v34 }
 0x357   :  { %1168 = vmatprep.subr.mxu0 %v4442_v36  ;;  %1239 = vmatprep.subr.mxu1 %v4443_v37 }
 0x358   :  { %1169 = vmatpush1.msra.mxu0 %v4444_v38  ;;  %1240 = vmatpush1.msra.mxu1 %v4445_v39 }
 0x359   :  { %1170 = vmatprep.subr.mxu0 %v4446_v40  ;;  %1241 = vmatprep.subr.mxu1 %v4447_v41 }
 0x35a   :  { %1171 = vmatpush1.msra.mxu0 %v4458_v42  ;;  %1204 = vmatprep.mubr.f32.mxu0 %v4459_v43  ;;  %v3643_v42 = vld [vmem:[#allocation3 + $0x1d0] sm:$0xff] }
 0x35b   :  { %1242 = vmatpush1.msra.mxu1 %v4460_v45  ;;  %1275 = vmatprep.mubr.f32.mxu1 %v4459_v43  ;;  %v3646_v45 = vld [vmem:[#allocation3 + $0x1a8] sm:$0xff] }
 0x35c   :  { %1317 = vmatprep.subr.mxu0 %v3602_v46  ;;  %1388 = vmatprep.subr.mxu1 %v3605_v47 }
 0x3fb   :  { %v1029_v48 = vpop.f32.mrf.mxu0  ;;  %v1100_v59 = vpop.f32.mrf.mxu1 }
 0x3fc   :  { %v1030_v50 = vadd.f32 %v1029_v48, %v4463_v49  ;;  %v1101_v61 = vadd.f32 %v1100_v59, %v3321_v3  ;;  %v3649_v48 = vld [vmem:[#allocation3 + $0x1b8] sm:$0xff]  ;;  %v3676_v59 = vld [vmem:[#allocation3 + $0x160] sm:$0xff] }
 0x3fd   :  { %v1031_v51 = vpop.f32.mrf.mxu0  ;;  %v1102_v63 = vpop.f32.mrf.mxu1 }
 0x3fe   :  { %v1105_v54 = vadd.f32 %v1030_v50, %v4464_v52  ;;  %v1032_v55 = vadd.f32 %v1031_v51, %v3315_v14  ;;  %v1107_v20 = vadd.f32 %v1101_v61, %v4466_v1  ;;  %v1103_v21 = vadd.f32 %v1102_v63, %v3324_v2  ;;  %v3652_v50 = vld [vmem:[#allocation3 + $0x1a0] sm:$0xff]  ;;  %v3655_v51 = vld [vmem:[#allocation3 + $0x1b0] sm:$0xff]  ;;  %v3658_v52 = vld [vmem:[#allocation3 + $0x188] sm:$0xff] }
 0x3ff   :  { %v3682_v61 = vld [vmem:[#allocation3 + $0x148] sm:$0xff]  ;;  %v3685_v63 = vld [vmem:[#allocation3 + $0x158] sm:$0xff]  ;;  %v3688_v1 = vld [vmem:[#allocation3 + $0x140] sm:$0xff] }
 0x400   :  { %v2479_v56 = vmul.f32 -1.442695, %v1105_v54  ;;  %v1106_v58 = vadd.f32 %v1032_v55, %v4465_v57  ;;  %v2481_v22 = vmul.f32 -1.442695, %v1107_v20  ;;  %v1108_v25 = vadd.f32 %v1103_v21, %v4467_v24  ;;  %v3661_v54 = vld [vmem:[#allocation3 + $0x198] sm:$0xff]  ;;  %v3664_v55 = vld [vmem:[#allocation3 + $0x180] sm:$0xff] }
 0x401   :  { %v3670_v57 = vld [vmem:[#allocation3 + $0x168] sm:$0xff]  ;;  %v3691_v20 = vld [vmem:[#allocation3 + $0x150] sm:$0xff] }
 0x402   :  { %2610 = vpow2.f32 %v2479_v56  ;;  %v2480_v60 = vmul.f32 -1.442695, %v1106_v58  ;;  %v3667_v56 = vld [vmem:[#allocation3 + $0x190] sm:$0xff]  ;;  %v3673_v58 = vld [vmem:[#allocation3 + $0x178] sm:$0xff]  ;;  %v3694_v21 = vld [vmem:[#allocation3 + $0x128] sm:$0xff] }
 0x403   :  { %v3703_v24 = vld [vmem:[#allocation3 + $0x130] sm:$0xff] }
 0x404   :  { %2612 = vpow2.f32 %v2480_v60  ;;  %v3679_v60 = vld [vmem:[#allocation3 + $0x170] sm:$0xff] }
 0x405   :  { %2614 = vpow2.f32 %v2481_v22  ;;  %v3697_v22 = vld [vmem:[#allocation3 + $0x138] sm:$0xff] }
 0x40f   :  { %v2611_v23 = vpop.eup %2610 }
 0x410   :  { %v1118_v27 = vadd.f32 1.0, %v2611_v23  ;;  %v3700_v23 = vld [vmem:[#allocation3 + $0x120] sm:$0xff] }
 0x411   :  { %v2613_v28 = vpop.eup %2612 }
 0x412   :  { %2616 = vrcp.f32 %v1118_v27  ;;  %v1119_v29 = vadd.f32 1.0, %v2613_v28  ;;  %v2615_v30 = vpop.eup %2614  ;;  %v3709_v27 = vld [vmem:[#allocation3 + $0x118] sm:$0xff]  ;;  %v3712_v28 = vld [vmem:[#allocation3 + $0x100] sm:$0xff] }
 0x413   :  { %2618 = vtanh.f32 %v1108_v25  ;;  %v1120_v34 = vadd.f32 1.0, %v2615_v30  ;;  %v3706_v25 = vld [vmem:[#allocation3 + $0x108] sm:$0xff]  ;;  %4469 = vst [vmem:[#allocation36_spill] sm:$0xff] %v3709_v27  ;;  %4470 = vst [vmem:[#allocation11_spill] sm:$0xff] %v3712_v28 }
 0x414   :  { %2620 = vrcp.f32 %v1119_v29  ;;  %4468 = vst [vmem:[#allocation34_spill] sm:$0xff] %v3706_v25  ;;  %v3715_v29 = vld [vmem:[#allocation3 + $0x110] sm:$0xff]  ;;  %v3718_v30 = vld [vmem:[#allocation3 + $0xe8] sm:$0xff] }
 0x415   :  { %2622 = vrcp.f32 %v1120_v34  ;;  %4471 = vst [vmem:[#allocation12_spill] sm:$0xff] %v3715_v29  ;;  %4472 = vst [vmem:[#allocation13_spill] sm:$0xff] %v3718_v30  ;;  %v3730_v34 = vld [vmem:[#allocation3 + $0xc8] sm:$0xff] }
 0x416   :  { %4476 = vst [vmem:[#allocation17_spill] sm:$0xff] %v3730_v34 }
 0x41f   :  { %v2617_v31 = vpop.eup %2616 }
 0x420   :  { %v2619_v32 = vpop.eup %2618 }
 0x421   :  { %v2621_v33 = vpop.eup %2620  ;;  %v1129_v37 = vmul.f32 %v2619_v32, %v2617_v31  ;;  %v3721_v31 = vld [vmem:[#allocation3 + $0xf8] sm:$0xff]  ;;  %v3724_v32 = vld [vmem:[#allocation3 + $0xe0] sm:$0xff] }
 0x422   :  { %v1128_v36 = vmul.f32 %v2621_v33, %v3495_v7  ;;  %v2623_v39 = vpop.eup %2622  ;;  %v3640_v7 = vld [vmem:[#allocation3 + $0x1c0] sm:$0xff]  ;;  %4473 = vst [vmem:[#allocation14_spill] sm:$0xff] %v3721_v31  ;;  %4474 = vst [vmem:[#allocation15_spill] sm:$0xff] %v3724_v32  ;;  %v3727_v33 = vld [vmem:[#allocation3 + $0xf0] sm:$0xff] }
 0x423   :  { %4475 = vst [vmem:[#allocation16_spill] sm:$0xff] %v3727_v33 }
 0x424   :  { %v3617_v38 = vadd.f32 %v1129_v37, %v1128_v36  ;;  %v3733_v36 = vld [vmem:[#allocation3 + $0xd8] sm:$0xff]  ;;  %v3736_v37 = vld [vmem:[#allocation3 + $0xc0] sm:$0xff] }
 0x425   :  { %4477 = vst [vmem:[#allocation18_spill] sm:$0xff] %v3733_v36  ;;  %4478 = vst [vmem:[#allocation19_spill] sm:$0xff] %v3736_v37 }
 0x426   :  { %2624 = vtanh.f32 %v3617_v38 }
 0x433   :  { %v2625_v40 = vpop.eup %2624 }
 0x434   :  { %v1132_v41 = vmul.f32 %v2625_v40, %v2623_v39  ;;  %v3739_v39 = vld [vmem:[#allocation3 + $0xd0] sm:$0xff]  ;;  %v3742_v40 = vld [vmem:[#allocation3 + $0xa8] sm:$0xff] }
 0x435   :  { %4479 = vst [vmem:[#allocation20_spill] sm:$0xff] %v3739_v39  ;;  %4480 = vst [vmem:[#allocation21_spill] sm:$0xff] %v3742_v40 }
 0x436   :  { %1205 = vmatmul.mubr.f32.vlgmr.msra.gmra.mxu0 %v1132_v41  ;;  %1276 = vmatmul.mubr.f32.vlgmr.msra.gmra.mxu1 %v1132_v41  ;;  %v3745_v41 = vld [vmem:[#allocation3 + $0xb8] sm:$0xff] }
 0x437   :  { %1318 = vmatpush1.msra.mxu0 %v3498_v16  ;;  %1389 = vmatpush1.msra.mxu1 %v3501_v0  ;;  %4481 = vst [vmem:[#allocation22_spill] sm:$0xff] %v3745_v41 }
 0x438   :  { %1319 = vmatprep.subr.mxu0 %v3504_v11  ;;  %1390 = vmatprep.subr.mxu1 %v3507_v19 }
 0x439   :  { %1320 = vmatpush1.msra.mxu0 %v3510_v5  ;;  %1391 = vmatpush1.msra.mxu1 %v3513_v8 }
 0x43a   :  { %1321 = vmatprep.subr.mxu0 %v3516_v6  ;;  %1392 = vmatprep.subr.mxu1 %v3519_v62 }
 0x43b   :  { %1322 = vmatpush1.msra.mxu0 %v3522_v10  ;;  %1393 = vmatpush1.msra.mxu1 %v3525_v35 }
 0x43c   :  { %1323 = vmatprep.subr.mxu0 %v3528_v15  ;;  %1394 = vmatprep.subr.mxu1 %v3531_v26 }
 0x43d   :  { %1324 = vmatpush1.msra.mxu0 %v3534_v12  ;;  %1395 = vmatpush1.msra.mxu1 %v3537_v53 }
 0x43e   :  { %1325 = vmatprep.subr.mxu0 %v3540_v17  ;;  %1396 = vmatprep.subr.mxu1 %v3543_v18 }
 0x43f   :  { %1326 = vmatpush1.msra.mxu0 %v3546_v13  ;;  %1397 = vmatpush1.msra.mxu1 %v3549_v4 }
 0x440   :  { %1327 = vmatprep.subr.mxu0 %v3552_v9  ;;  %1398 = vmatprep.subr.mxu1 %v3555_v44 }
 0x441   :  { %1328 = vmatpush1.msra.mxu0 %v3640_v7  ;;  %1399 = vmatpush1.msra.mxu1 %v3643_v42 }
 0x442   :  { %1329 = vmatprep.subr.mxu0 %v3646_v45  ;;  %1400 = vmatprep.subr.mxu1 %v3649_v48 }
 0x443   :  { %1330 = vmatpush1.msra.mxu0 %v3652_v50  ;;  %1401 = vmatpush1.msra.mxu1 %v3655_v51 }
 0x444   :  { %1331 = vmatprep.subr.mxu0 %v3658_v52  ;;  %1402 = vmatprep.subr.mxu1 %v3661_v54 }
 0x445   :  { %1332 = vmatpush1.msra.mxu0 %v3664_v55  ;;  %1403 = vmatpush1.msra.mxu1 %v3667_v56 }
 0x446   :  { %1333 = vmatprep.subr.mxu0 %v3670_v57  ;;  %1404 = vmatprep.subr.mxu1 %v3673_v58 }
 0x447   :  { %1334 = vmatpush1.msra.mxu0 %v3676_v59  ;;  %1405 = vmatpush1.msra.mxu1 %v3679_v60 }
 0x448   :  { %1335 = vmatprep.subr.mxu0 %v3682_v61  ;;  %1406 = vmatprep.subr.mxu1 %v3685_v63 }
 0x449   :  { %1336 = vmatpush1.msra.mxu0 %v3688_v1  ;;  %1407 = vmatpush1.msra.mxu1 %v3691_v20 }
 0x44a   :  { %1337 = vmatprep.subr.mxu0 %v3694_v21  ;;  %1408 = vmatprep.subr.mxu1 %v3697_v22 }
 0x44b   :  { %1338 = vmatpush1.msra.mxu0 %v3700_v23  ;;  %1409 = vmatpush1.msra.mxu1 %v3703_v24 }
 0x44c   :  { %1339 = vmatprep.subr.mxu0 %v3706_v25  ;;  %1410 = vmatprep.subr.mxu1 %v3709_v27  ;;  %v4491_v25 = vld [vmem:[#allocation48_spill] sm:$0xff] }
 0x44d   :  { %1340 = vmatpush1.msra.mxu0 %v3712_v28  ;;  %1411 = vmatpush1.msra.mxu1 %v3715_v29  ;;  %v4490_v28 = vld [vmem:[#allocation46_spill] sm:$0xff] }
 0x44e   :  { %1341 = vmatprep.subr.mxu0 %v3718_v30  ;;  %1412 = vmatprep.subr.mxu1 %v3721_v31  ;;  %v4489_v31 = vld [vmem:[#allocation47_spill] sm:$0xff] }
 0x44f   :  { %1342 = vmatpush1.msra.mxu0 %v3724_v32  ;;  %1413 = vmatpush1.msra.mxu1 %v3727_v33 }
 0x450   :  { %1343 = vmatprep.subr.mxu0 %v3730_v34  ;;  %1414 = vmatprep.subr.mxu1 %v3733_v36  ;;  %v3748_v34 = vld [vmem:[#allocation3 + $0xa0] sm:$0xff]  ;;  %v3751_v36 = vld [vmem:[#allocation3 + $0xb0] sm:$0xff] }
 0x451   :  { %1344 = vmatpush1.msra.mxu0 %v3736_v37  ;;  %1415 = vmatpush1.msra.mxu1 %v3739_v39  ;;  %4482 = vst [vmem:[#allocation23_spill] sm:$0xff] %v3748_v34  ;;  %4483 = vst [vmem:[#allocation24_spill] sm:$0xff] %v3751_v36  ;;  %v3754_v37 = vld [vmem:[#allocation3 + $0x88] sm:$0xff]  ;;  %v3757_v39 = vld [vmem:[#allocation3 + $0x98] sm:$0xff] }
 0x452   :  { %1345 = vmatprep.subr.mxu0 %v3742_v40  ;;  %1416 = vmatprep.subr.mxu1 %v3745_v41  ;;  %4484 = vst [vmem:[#allocation25_spill] sm:$0xff] %v3754_v37  ;;  %4485 = vst [vmem:[#allocation26_spill] sm:$0xff] %v3757_v39  ;;  %v3760_v40 = vld [vmem:[#allocation3 + $0x80] sm:$0xff]  ;;  %v3764_v41 = vld [vmem:[#allocation3 + $0x90] sm:$0xff] }
 0x453   :  { %1346 = vmatpush1.msra.mxu0 %v3748_v34  ;;  %1417 = vmatpush1.msra.mxu1 %v3751_v36  ;;  %4486 = vst [vmem:[#allocation27_spill] sm:$0xff] %v3760_v40  ;;  %4487 = vst [vmem:[#allocation28_spill] sm:$0xff] %v3764_v41  ;;  %v4488_v34 = vld [vmem:[#allocation45_spill] sm:$0xff] }
 0x454   :  { %1347 = vmatprep.subr.mxu0 %v3754_v37  ;;  %1418 = vmatprep.subr.mxu1 %v3757_v39 }
 0x455   :  { %1348 = vmatpush1.msra.mxu0 %v3760_v40  ;;  %1381 = vmatprep.mubr.f32.mxu0 %v4459_v43 }
 0x456   :  { %1419 = vmatpush1.msra.mxu1 %v3764_v41  ;;  %1452 = vmatprep.mubr.f32.mxu1 %v4459_v43 }
 0x457   :  { %1494 = vmatprep.subr.mxu0 %v3602_v46  ;;  %1565 = vmatprep.subr.mxu1 %v3605_v47 }
 0x4f6   :  { %v1206_v37 = vpop.f32.mrf.mxu0  ;;  %v1277_v29 = vpop.f32.mrf.mxu1 }
 0x4f7   :  { %v1207_v36 = vadd.f32 %v1206_v37, %v4463_v49  ;;  %v1278_v43 = vadd.f32 %v1277_v29, %v3321_v3 }
 0x4f8   :  { %v1208_v39 = vpop.f32.mrf.mxu0  ;;  %v1279_v46 = vpop.f32.mrf.mxu1 }
 0x4f9   :  { %v1282_v33 = vadd.f32 %v1207_v36, %v4488_v34  ;;  %v1209_v40 = vadd.f32 %v1208_v39, %v3315_v14  ;;  %v1284_v47 = vadd.f32 %v1278_v43, %v4490_v28  ;;  %v1280_v27 = vadd.f32 %v1279_v46, %v3324_v2 }
 0x4fb   :  { %v2482_v32 = vmul.f32 -1.442695, %v1282_v33  ;;  %v1283_v30 = vadd.f32 %v1209_v40, %v4489_v31  ;;  %v2484_v37 = vmul.f32 -1.442695, %v1284_v47  ;;  %v1285_v34 = vadd.f32 %v1280_v27, %v4491_v25  ;;  %v4493_v27 = vld [vmem:[#allocation36_spill] sm:$0xff] }
 0x4fd   :  { %2626 = vpow2.f32 %v2482_v32  ;;  %v2483_v41 = vmul.f32 -1.442695, %v1283_v30 }
 0x4ff   :  { %2628 = vpow2.f32 %v2483_v41  ;;  %v4494_v41 = vld [vmem:[#allocation11_spill] sm:$0xff] }
 0x500   :  { %2630 = vpow2.f32 %v2484_v37  ;;  %v4495_v37 = vld [vmem:[#allocation12_spill] sm:$0xff] }
 0x50a   :  { %v2627_v49 = vpop.eup %2626 }
 0x50b   :  { %v1295_v36 = vadd.f32 1.0, %v2627_v49 }
 0x50c   :  { %v2629_v39 = vpop.eup %2628 }
 0x50d   :  { %2632 = vrcp.f32 %v1295_v36  ;;  %v1296_v31 = vadd.f32 1.0, %v2629_v39  ;;  %v2631_v30 = vpop.eup %2630  ;;  %v4497_v36 = vld [vmem:[#allocation14_spill] sm:$0xff]  ;;  %v4498_v39 = vld [vmem:[#allocation15_spill] sm:$0xff] }
 0x50e   :  { %2634 = vtanh.f32 %v1285_v34  ;;  %v1297_v40 = vadd.f32 1.0, %v2631_v30  ;;  %v4496_v34 = vld [vmem:[#allocation13_spill] sm:$0xff] }
 0x50f   :  { %2636 = vrcp.f32 %v1296_v31  ;;  %v4499_v31 = vld [vmem:[#allocation16_spill] sm:$0xff]  ;;  %v4500_v30 = vld [vmem:[#allocation17_spill] sm:$0xff] }
 0x510   :  { %2638 = vrcp.f32 %v1297_v40  ;;  %v4504_v40 = vld [vmem:[#allocation21_spill] sm:$0xff] }
 0x51a   :  { %v2633_v32 = vpop.eup %2632 }
 0x51b   :  { %v2635_v33 = vpop.eup %2634 }
 0x51c   :  { %v2637_v29 = vpop.eup %2636  ;;  %v1306_v28 = vmul.f32 %v2635_v33, %v2633_v32  ;;  %v4501_v32 = vld [vmem:[#allocation18_spill] sm:$0xff]  ;;  %v4502_v33 = vld [vmem:[#allocation19_spill] sm:$0xff] }
 0x51d   :  { %v1305_v43 = vmul.f32 %v2637_v29, %v3617_v38  ;;  %v2639_v47 = vpop.eup %2638  ;;  %v4492_v38 = vld [vmem:[#allocation34_spill] sm:$0xff]  ;;  %v4503_v29 = vld [vmem:[#allocation20_spill] sm:$0xff] }
 0x51f   :  { %v3779_v46 = vadd.f32 %v1306_v28, %v1305_v43  ;;  %v4505_v43 = vld [vmem:[#allocation22_spill] sm:$0xff]  ;;  %v4506_v28 = vld [vmem:[#allocation23_spill] sm:$0xff] }
 0x521   :  { %2640 = vtanh.f32 %v3779_v46 }
 0x52e   :  { %v2641_v49 = vpop.eup %2640 }
 0x52f   :  { %v1309_v25 = vmul.f32 %v2641_v49, %v2639_v47  ;;  %v4507_v47 = vld [vmem:[#allocation24_spill] sm:$0xff]  ;;  %v4508_v49 = vld [vmem:[#allocation25_spill] sm:$0xff] }
 0x531   :  { %1382 = vmatmul.mubr.f32.vlgmr.msra.gmra.mxu0 %v1309_v25  ;;  %1453 = vmatmul.mubr.f32.vlgmr.msra.gmra.mxu1 %v1309_v25  ;;  %v4509_v25 = vld [vmem:[#allocation26_spill] sm:$0xff] }
 0x532   :  { %1495 = vmatpush1.msra.mxu0 %v3498_v16  ;;  %1566 = vmatpush1.msra.mxu1 %v3501_v0 }
 0x533   :  { %1496 = vmatprep.subr.mxu0 %v3504_v11  ;;  %1567 = vmatprep.subr.mxu1 %v3507_v19 }
 0x534   :  { %1497 = vmatpush1.msra.mxu0 %v3510_v5  ;;  %1568 = vmatpush1.msra.mxu1 %v3513_v8 }
 0x535   :  { %1498 = vmatprep.subr.mxu0 %v3516_v6  ;;  %1569 = vmatprep.subr.mxu1 %v3519_v62 }
 0x536   :  { %1499 = vmatpush1.msra.mxu0 %v3522_v10  ;;  %1570 = vmatpush1.msra.mxu1 %v3525_v35 }
 0x537   :  { %1500 = vmatprep.subr.mxu0 %v3528_v15  ;;  %1571 = vmatprep.subr.mxu1 %v3531_v26 }
 0x538   :  { %1501 = vmatpush1.msra.mxu0 %v3534_v12  ;;  %1572 = vmatpush1.msra.mxu1 %v3537_v53 }
 0x539   :  { %1502 = vmatprep.subr.mxu0 %v3540_v17  ;;  %1573 = vmatprep.subr.mxu1 %v3543_v18 }
 0x53a   :  { %1503 = vmatpush1.msra.mxu0 %v3546_v13  ;;  %1574 = vmatpush1.msra.mxu1 %v3549_v4 }
 0x53b   :  { %1504 = vmatprep.subr.mxu0 %v3552_v9  ;;  %1575 = vmatprep.subr.mxu1 %v3555_v44 }
 0x53c   :  { %1505 = vmatpush1.msra.mxu0 %v3640_v7  ;;  %1576 = vmatpush1.msra.mxu1 %v3643_v42 }
 0x53d   :  { %1506 = vmatprep.subr.mxu0 %v3646_v45  ;;  %1577 = vmatprep.subr.mxu1 %v3649_v48 }
 0x53e   :  { %1507 = vmatpush1.msra.mxu0 %v3652_v50  ;;  %1578 = vmatpush1.msra.mxu1 %v3655_v51 }
 0x53f   :  { %1508 = vmatprep.subr.mxu0 %v3658_v52  ;;  %1579 = vmatprep.subr.mxu1 %v3661_v54 }
 0x540   :  { %1509 = vmatpush1.msra.mxu0 %v3664_v55  ;;  %1580 = vmatpush1.msra.mxu1 %v3667_v56 }
 0x541   :  { %1510 = vmatprep.subr.mxu0 %v3670_v57  ;;  %1581 = vmatprep.subr.mxu1 %v3673_v58 }
 0x542   :  { %1511 = vmatpush1.msra.mxu0 %v3676_v59  ;;  %1582 = vmatpush1.msra.mxu1 %v3679_v60 }
 0x543   :  { %1512 = vmatprep.subr.mxu0 %v3682_v61  ;;  %1583 = vmatprep.subr.mxu1 %v3685_v63 }
 0x544   :  { %1513 = vmatpush1.msra.mxu0 %v3688_v1  ;;  %1584 = vmatpush1.msra.mxu1 %v3691_v20 }
 0x545   :  { %1514 = vmatprep.subr.mxu0 %v3694_v21  ;;  %1585 = vmatprep.subr.mxu1 %v3697_v22 }
 0x546   :  { %1515 = vmatpush1.msra.mxu0 %v3700_v23  ;;  %1586 = vmatpush1.msra.mxu1 %v3703_v24 }
 0x547   :  { %1516 = vmatprep.subr.mxu0 %v4492_v38  ;;  %1587 = vmatprep.subr.mxu1 %v4493_v27  ;;  %v4519_v38 = vld [vmem:[#allocation52_spill] sm:$0xff] }
 0x548   :  { %1517 = vmatpush1.msra.mxu0 %v4494_v41  ;;  %1588 = vmatpush1.msra.mxu1 %v4495_v37  ;;  %v4518_v41 = vld [vmem:[#allocation50_spill] sm:$0xff] }
 0x549   :  { %1518 = vmatprep.subr.mxu0 %v4496_v34  ;;  %1589 = vmatprep.subr.mxu1 %v4497_v36 }
 0x54a   :  { %1519 = vmatpush1.msra.mxu0 %v4498_v39  ;;  %1590 = vmatpush1.msra.mxu1 %v4499_v31  ;;  %v4510_v31 = vld [vmem:[#allocation27_spill] sm:$0xff]  ;;  %v4516_v39 = vld [vmem:[#allocation49_spill] sm:$0xff] }
 0x54b   :  { %1520 = vmatprep.subr.mxu0 %v4500_v30  ;;  %1591 = vmatprep.subr.mxu1 %v4501_v32  ;;  %v4511_v30 = vmov 0.0   ;;  %v4512_v32 = vld [vmem:[#allocation28_spill] sm:$0xff] }
 0x54c   :  { %1521 = vmatpush1.msra.mxu0 %v4502_v33  ;;  %1592 = vmatpush1.msra.mxu1 %v4503_v29  ;;  %v4513_v29 = vld [vmem:[#allocation33_spill] sm:$0xff] }
 0x54d   :  { %1522 = vmatprep.subr.mxu0 %v4504_v40  ;;  %1593 = vmatprep.subr.mxu1 %v4505_v43  ;;  %v4514_v40 = vld [vmem:[#allocation35_spill] sm:$0xff] }
 0x54e   :  { %1523 = vmatpush1.msra.mxu0 %v4506_v28  ;;  %1594 = vmatpush1.msra.mxu1 %v4507_v47  ;;  %v4515_v28 = vld [vmem:[#allocation59_spill] sm:$0xff] }
 0x54f   :  { %1524 = vmatprep.subr.mxu0 %v4508_v49  ;;  %1595 = vmatprep.subr.mxu1 %v4509_v25 }
 0x550   :  { %1525 = vmatpush1.msra.mxu0 %v4510_v31  ;;  %1558 = vmatprep.mubr.f32.mxu0 %v4511_v30  ;;  %v4517_v31 = vld [vmem:[#allocation51_spill] sm:$0xff] }
 0x551   :  { %1596 = vmatpush1.msra.mxu1 %v4512_v32  ;;  %1629 = vmatprep.mubr.f32.mxu1 %v4511_v30 }
 0x552   :  { %1671 = vmatprep.subr.mxu0 %v4513_v29  ;;  %1742 = vmatprep.subr.mxu1 %v4514_v40 }
 0x5f1   :  { %v1383_v43 = vpop.f32.mrf.mxu0  ;;  %v1454_v37 = vpop.f32.mrf.mxu1 }
 0x5f2   :  { %v1384_v33 = vadd.f32 %v1383_v43, %v4515_v28  ;;  %v1455_v30 = vadd.f32 %v1454_v37, %v3321_v3 }
 0x5f3   :  { %v1385_v47 = vpop.f32.mrf.mxu0  ;;  %v1456_v29 = vpop.f32.mrf.mxu1 }
 0x5f4   :  { %v1459_v49 = vadd.f32 %v1384_v33, %v4516_v39  ;;  %v1386_v25 = vadd.f32 %v1385_v47, %v3315_v14  ;;  %v1461_v40 = vadd.f32 %v1455_v30, %v4518_v41  ;;  %v1457_v27 = vadd.f32 %v1456_v29, %v3324_v2 }
 0x5f6   :  { %v2485_v36 = vmul.f32 -1.442695, %v1459_v49  ;;  %v1460_v34 = vadd.f32 %v1386_v25, %v4517_v31  ;;  %v2487_v43 = vmul.f32 -1.442695, %v1461_v40  ;;  %v1462_v39 = vadd.f32 %v1457_v27, %v4519_v38  ;;  %v4522_v25 = vld [vmem:[#allocation11_spill] sm:$0xff] }
 0x5f8   :  { %2642 = vpow2.f32 %v2485_v36  ;;  %v2486_v32 = vmul.f32 -1.442695, %v1460_v34 }
 0x5fa   :  { %2644 = vpow2.f32 %v2486_v32 }
 0x5fb   :  { %2646 = vpow2.f32 %v2487_v43  ;;  %v4523_v43 = vld [vmem:[#allocation12_spill] sm:$0xff] }
 0x605   :  { %v2643_v28 = vpop.eup %2642 }
 0x606   :  { %v1472_v33 = vadd.f32 1.0, %v2643_v28  ;;  %v4521_v28 = vld [vmem:[#allocation36_spill] sm:$0xff] }
 0x607   :  { %v2645_v47 = vpop.eup %2644 }
 0x608   :  { %2648 = vrcp.f32 %v1472_v33  ;;  %v1473_v31 = vadd.f32 1.0, %v2645_v47  ;;  %v2647_v34 = vpop.eup %2646  ;;  %v4525_v33 = vld [vmem:[#allocation14_spill] sm:$0xff]  ;;  %v4526_v47 = vld [vmem:[#allocation15_spill] sm:$0xff] }
 0x609   :  { %2650 = vtanh.f32 %v1462_v39  ;;  %v1474_v49 = vadd.f32 1.0, %v2647_v34  ;;  %v4524_v39 = vld [vmem:[#allocation13_spill] sm:$0xff] }
 0x60a   :  { %2652 = vrcp.f32 %v1473_v31  ;;  %v4527_v31 = vld [vmem:[#allocation16_spill] sm:$0xff]  ;;  %v4528_v34 = vld [vmem:[#allocation17_spill] sm:$0xff] }
 0x60b   :  { %2654 = vrcp.f32 %v1474_v49  ;;  %v4532_v49 = vld [vmem:[#allocation21_spill] sm:$0xff] }
 0x615   :  { %v2649_v36 = vpop.eup %2648 }
 0x616   :  { %v2651_v32 = vpop.eup %2650 }
 0x617   :  { %v2653_v37 = vpop.eup %2652  ;;  %v1483_v30 = vmul.f32 %v2651_v32, %v2649_v36  ;;  %v4529_v36 = vld [vmem:[#allocation18_spill] sm:$0xff]  ;;  %v4530_v32 = vld [vmem:[#allocation19_spill] sm:$0xff] }
 0x618   :  { %v1482_v41 = vmul.f32 %v2653_v37, %v3779_v46  ;;  %v2655_v38 = vpop.eup %2654  ;;  %v4520_v46 = vld [vmem:[#allocation34_spill] sm:$0xff]  ;;  %v4531_v37 = vld [vmem:[#allocation20_spill] sm:$0xff] }
 0x61a   :  { %v3857_v29 = vadd.f32 %v1483_v30, %v1482_v41  ;;  %v4533_v41 = vld [vmem:[#allocation22_spill] sm:$0xff]  ;;  %v4534_v30 = vld [vmem:[#allocation23_spill] sm:$0xff] }
 0x61c   :  { %2656 = vtanh.f32 %v3857_v29 }
 0x629   :  { %v2657_v27 = vpop.eup %2656 }
 0x62a   :  { %v1486_v40 = vmul.f32 %v2657_v27, %v2655_v38  ;;  %v4535_v38 = vld [vmem:[#allocation24_spill] sm:$0xff]  ;;  %v4536_v27 = vld [vmem:[#allocation25_spill] sm:$0xff] }
 0x62c   :  { %1559 = vmatmul.mubr.f32.vlgmr.msra.gmra.mxu0 %v1486_v40  ;;  %1630 = vmatmul.mubr.f32.vlgmr.msra.gmra.mxu1 %v1486_v40  ;;  %v4537_v40 = vld [vmem:[#allocation26_spill] sm:$0xff] }
 0x62d   :  { %1672 = vmatpush1.msra.mxu0 %v3498_v16  ;;  %1743 = vmatpush1.msra.mxu1 %v3501_v0 }
 0x62e   :  { %1673 = vmatprep.subr.mxu0 %v3504_v11  ;;  %1744 = vmatprep.subr.mxu1 %v3507_v19 }
 0x62f   :  { %1674 = vmatpush1.msra.mxu0 %v3510_v5  ;;  %1745 = vmatpush1.msra.mxu1 %v3513_v8 }
 0x630   :  { %1675 = vmatprep.subr.mxu0 %v3516_v6  ;;  %1746 = vmatprep.subr.mxu1 %v3519_v62 }
 0x631   :  { %1676 = vmatpush1.msra.mxu0 %v3522_v10  ;;  %1747 = vmatpush1.msra.mxu1 %v3525_v35 }
 0x632   :  { %1677 = vmatprep.subr.mxu0 %v3528_v15  ;;  %1748 = vmatprep.subr.mxu1 %v3531_v26 }
 0x633   :  { %1678 = vmatpush1.msra.mxu0 %v3534_v12  ;;  %1749 = vmatpush1.msra.mxu1 %v3537_v53 }
 0x634   :  { %1679 = vmatprep.subr.mxu0 %v3540_v17  ;;  %1750 = vmatprep.subr.mxu1 %v3543_v18 }
 0x635   :  { %1680 = vmatpush1.msra.mxu0 %v3546_v13  ;;  %1751 = vmatpush1.msra.mxu1 %v3549_v4 }
 0x636   :  { %1681 = vmatprep.subr.mxu0 %v3552_v9  ;;  %1752 = vmatprep.subr.mxu1 %v3555_v44 }
 0x637   :  { %1682 = vmatpush1.msra.mxu0 %v3640_v7  ;;  %1753 = vmatpush1.msra.mxu1 %v3643_v42 }
 0x638   :  { %1683 = vmatprep.subr.mxu0 %v3646_v45  ;;  %1754 = vmatprep.subr.mxu1 %v3649_v48 }
 0x639   :  { %1684 = vmatpush1.msra.mxu0 %v3652_v50  ;;  %1755 = vmatpush1.msra.mxu1 %v3655_v51 }
 0x63a   :  { %1685 = vmatprep.subr.mxu0 %v3658_v52  ;;  %1756 = vmatprep.subr.mxu1 %v3661_v54 }
 0x63b   :  { %1686 = vmatpush1.msra.mxu0 %v3664_v55  ;;  %1757 = vmatpush1.msra.mxu1 %v3667_v56 }
 0x63c   :  { %1687 = vmatprep.subr.mxu0 %v3670_v57  ;;  %1758 = vmatprep.subr.mxu1 %v3673_v58 }
 0x63d   :  { %1688 = vmatpush1.msra.mxu0 %v3676_v59  ;;  %1759 = vmatpush1.msra.mxu1 %v3679_v60 }
 0x63e   :  { %1689 = vmatprep.subr.mxu0 %v3682_v61  ;;  %1760 = vmatprep.subr.mxu1 %v3685_v63 }
 0x63f   :  { %1690 = vmatpush1.msra.mxu0 %v3688_v1  ;;  %1761 = vmatpush1.msra.mxu1 %v3691_v20 }
 0x640   :  { %1691 = vmatprep.subr.mxu0 %v3694_v21  ;;  %1762 = vmatprep.subr.mxu1 %v3697_v22 }
 0x641   :  { %1692 = vmatpush1.msra.mxu0 %v3700_v23  ;;  %1763 = vmatpush1.msra.mxu1 %v3703_v24 }
 0x642   :  { %1693 = vmatprep.subr.mxu0 %v4520_v46  ;;  %1764 = vmatprep.subr.mxu1 %v4521_v28  ;;  %v4547_v46 = vld [vmem:[#allocation57_spill] sm:$0xff] }
 0x643   :  { %1694 = vmatpush1.msra.mxu0 %v4522_v25  ;;  %1765 = vmatpush1.msra.mxu1 %v4523_v43  ;;  %v4546_v25 = vld [vmem:[#allocation55_spill] sm:$0xff] }
 0x644   :  { %1695 = vmatprep.subr.mxu0 %v4524_v39  ;;  %1766 = vmatprep.subr.mxu1 %v4525_v33 }
 0x645   :  { %1696 = vmatpush1.msra.mxu0 %v4526_v47  ;;  %1767 = vmatpush1.msra.mxu1 %v4527_v31  ;;  %v4538_v31 = vld [vmem:[#allocation27_spill] sm:$0xff]  ;;  %v4544_v47 = vld [vmem:[#allocation53_spill] sm:$0xff] }
 0x646   :  { %1697 = vmatprep.subr.mxu0 %v4528_v34  ;;  %1768 = vmatprep.subr.mxu1 %v4529_v36  ;;  %v4539_v34 = vmov 0.0   ;;  %v4540_v36 = vld [vmem:[#allocation28_spill] sm:$0xff] }
 0x647   :  { %1698 = vmatpush1.msra.mxu0 %v4530_v32  ;;  %1769 = vmatpush1.msra.mxu1 %v4531_v37  ;;  %v4541_v37 = vld [vmem:[#allocation33_spill] sm:$0xff] }
 0x648   :  { %1699 = vmatprep.subr.mxu0 %v4532_v49  ;;  %1770 = vmatprep.subr.mxu1 %v4533_v41  ;;  %v4542_v49 = vld [vmem:[#allocation35_spill] sm:$0xff] }
 0x649   :  { %1700 = vmatpush1.msra.mxu0 %v4534_v30  ;;  %1771 = vmatpush1.msra.mxu1 %v4535_v38  ;;  %v4543_v30 = vld [vmem:[#allocation59_spill] sm:$0xff] }
 0x64a   :  { %1701 = vmatprep.subr.mxu0 %v4536_v27  ;;  %1772 = vmatprep.subr.mxu1 %v4537_v40 }
 0x64b   :  { %1702 = vmatpush1.msra.mxu0 %v4538_v31  ;;  %1735 = vmatprep.mubr.f32.mxu0 %v4539_v34  ;;  %v4545_v31 = vld [vmem:[#allocation54_spill] sm:$0xff] }
 0x64c   :  { %1773 = vmatpush1.msra.mxu1 %v4540_v36  ;;  %1806 = vmatprep.mubr.f32.mxu1 %v4539_v34 }
 0x64d   :  { %1841 = vmatprep.subr.mxu0 %v4541_v37  ;;  %1912 = vmatprep.subr.mxu1 %v4542_v49 }
 0x6ec   :  { %v1560_v41 = vpop.f32.mrf.mxu0  ;;  %v1631_v43 = vpop.f32.mrf.mxu1 }
 0x6ed   :  { %v1561_v32 = vadd.f32 %v1560_v41, %v4543_v30  ;;  %v1632_v34 = vadd.f32 %v1631_v43, %v3321_v3 }
 0x6ee   :  { %v1562_v38 = vpop.f32.mrf.mxu0  ;;  %v1633_v37 = vpop.f32.mrf.mxu1 }
 0x6ef   :  { %v1636_v27 = vadd.f32 %v1561_v32, %v4544_v47  ;;  %v1563_v40 = vadd.f32 %v1562_v38, %v3315_v14  ;;  %v1638_v49 = vadd.f32 %v1632_v34, %v4546_v25  ;;  %v1634_v28 = vadd.f32 %v1633_v37, %v3324_v2 }
 0x6f1   :  { %v2488_v33 = vmul.f32 -1.442695, %v1636_v27  ;;  %v1637_v39 = vadd.f32 %v1563_v40, %v4545_v31  ;;  %v2490_v41 = vmul.f32 -1.442695, %v1638_v49  ;;  %v1639_v47 = vadd.f32 %v1634_v28, %v4547_v46  ;;  %v4570_v40 = vld [vmem:[#allocation35_spill] sm:$0xff] }
 0x6f3   :  { %2658 = vpow2.f32 %v2488_v33  ;;  %v2489_v36 = vmul.f32 -1.442695, %v1637_v39 }
 0x6f5   :  { %2660 = vpow2.f32 %v2489_v36 }
 0x6f6   :  { %2662 = vpow2.f32 %v2490_v41 }
 0x700   :  { %v2659_v30 = vpop.eup %2658 }
 0x701   :  { %v1649_v32 = vadd.f32 1.0, %v2659_v30  ;;  %v4569_v30 = vld [vmem:[#allocation33_spill] sm:$0xff] }
 0x702   :  { %v2661_v38 = vpop.eup %2660 }
 0x703   :  { %2664 = vrcp.f32 %v1649_v32  ;;  %v1650_v31 = vadd.f32 1.0, %v2661_v38  ;;  %v2663_v39 = vpop.eup %2662 }
 0x704   :  { %2666 = vtanh.f32 %v1639_v47  ;;  %v1651_v27 = vadd.f32 1.0, %v2663_v39  ;;  %v4571_v47 = vld [vmem:[#allocation59_spill] sm:$0xff] }
 0x705   :  { %2668 = vrcp.f32 %v1650_v31  ;;  %v4572_v31 = vld [vmem:[#allocation56_spill] sm:$0xff] }
 0x706   :  { %2670 = vrcp.f32 %v1651_v27 }
 0x710   :  { %v2665_v33 = vpop.eup %2664 }
 0x711   :  { %v2667_v36 = vpop.eup %2666 }
 0x712   :  { %v2669_v43 = vpop.eup %2668  ;;  %v1660_v34 = vmul.f32 %v2667_v36, %v2665_v33 }
 0x713   :  { %v1659_v25 = vmul.f32 %v2669_v43, %v3857_v29  ;;  %v2671_v46 = vpop.eup %2670  ;;  %v4568_v29 = vld [vmem:[#allocation28_spill] sm:$0xff]  ;;  %v4573_v43 = vld [vmem:[#allocation58_spill] sm:$0xff] }
 0x715   :  { %v3935_v37 = vadd.f32 %v1660_v34, %v1659_v25 }
 0x717   :  { %2672 = vtanh.f32 %v3935_v37 }
 0x724   :  { %v2673_v28 = vpop.eup %2672 }
 0x725   :  { %v1663_v49 = vmul.f32 %v2673_v28, %v2671_v46 }
 0x727   :  { %1736 = vmatmul.mubr.f32.vlgmr.msra.gmra.mxu0 %v1663_v49  ;;  %1807 = vmatmul.mubr.f32.vlgmr.msra.gmra.mxu1 %v1663_v49  ;;  %v4574_v49 = vld [vmem:[#allocation60_spill] sm:$0xff] }
 0x728   :  { %1842 = vmatpush1.msra.mxu0 %v3498_v16  ;;  %1913 = vmatpush1.msra.mxu1 %v3501_v0  ;;  %v4548_v16 = vld [vmem:[#allocation34_spill] sm:$0xff]  ;;  %v4549_v0 = vld [vmem:[#allocation36_spill] sm:$0xff] }
 0x729   :  { %1843 = vmatprep.subr.mxu0 %v3504_v11  ;;  %1914 = vmatprep.subr.mxu1 %v3507_v19  ;;  %v4550_v11 = vld [vmem:[#allocation11_spill] sm:$0xff]  ;;  %v4551_v19 = vld [vmem:[#allocation12_spill] sm:$0xff] }
 0x72a   :  { %1844 = vmatpush1.msra.mxu0 %v3510_v5  ;;  %1915 = vmatpush1.msra.mxu1 %v3513_v8  ;;  %v4552_v5 = vld [vmem:[#allocation13_spill] sm:$0xff]  ;;  %v4553_v8 = vld [vmem:[#allocation14_spill] sm:$0xff] }
 0x72b   :  { %1845 = vmatprep.subr.mxu0 %v3516_v6  ;;  %1916 = vmatprep.subr.mxu1 %v3519_v62  ;;  %v4554_v6 = vld [vmem:[#allocation15_spill] sm:$0xff]  ;;  %v4555_v62 = vld [vmem:[#allocation16_spill] sm:$0xff] }
 0x72c   :  { %1846 = vmatpush1.msra.mxu0 %v3522_v10  ;;  %1917 = vmatpush1.msra.mxu1 %v3525_v35  ;;  %v4556_v10 = vld [vmem:[#allocation17_spill] sm:$0xff]  ;;  %v4557_v35 = vld [vmem:[#allocation18_spill] sm:$0xff] }
 0x72d   :  { %1847 = vmatprep.subr.mxu0 %v3528_v15  ;;  %1918 = vmatprep.subr.mxu1 %v3531_v26  ;;  %v4558_v15 = vld [vmem:[#allocation19_spill] sm:$0xff]  ;;  %v4559_v26 = vld [vmem:[#allocation20_spill] sm:$0xff] }
 0x72e   :  { %1848 = vmatpush1.msra.mxu0 %v3534_v12  ;;  %1919 = vmatpush1.msra.mxu1 %v3537_v53  ;;  %v4560_v12 = vld [vmem:[#allocation21_spill] sm:$0xff]  ;;  %v4561_v53 = vld [vmem:[#allocation22_spill] sm:$0xff] }
 0x72f   :  { %1849 = vmatprep.subr.mxu0 %v3540_v17  ;;  %1920 = vmatprep.subr.mxu1 %v3543_v18  ;;  %v4562_v17 = vld [vmem:[#allocation23_spill] sm:$0xff]  ;;  %v4563_v18 = vld [vmem:[#allocation24_spill] sm:$0xff] }
 0x730   :  { %1850 = vmatpush1.msra.mxu0 %v3546_v13  ;;  %1921 = vmatpush1.msra.mxu1 %v3549_v4  ;;  %v4564_v13 = vld [vmem:[#allocation25_spill] sm:$0xff]  ;;  %v4565_v4 = vld [vmem:[#allocation26_spill] sm:$0xff] }
 0x731   :  { %1851 = vmatprep.subr.mxu0 %v3552_v9  ;;  %1922 = vmatprep.subr.mxu1 %v3555_v44  ;;  %v4566_v9 = vld [vmem:[#allocation27_spill] sm:$0xff]  ;;  %v4567_v44 = vmov 0.0  }
 0x732   :  { %1852 = vmatpush1.msra.mxu0 %v3640_v7  ;;  %1923 = vmatpush1.msra.mxu1 %v3643_v42 }
 0x733   :  { %1853 = vmatprep.subr.mxu0 %v3646_v45  ;;  %1924 = vmatprep.subr.mxu1 %v3649_v48 }
 0x734   :  { %1854 = vmatpush1.msra.mxu0 %v3652_v50  ;;  %1925 = vmatpush1.msra.mxu1 %v3655_v51 }
 0x735   :  { %1855 = vmatprep.subr.mxu0 %v3658_v52  ;;  %1926 = vmatprep.subr.mxu1 %v3661_v54 }
 0x736   :  { %1856 = vmatpush1.msra.mxu0 %v3664_v55  ;;  %1927 = vmatpush1.msra.mxu1 %v3667_v56 }
 0x737   :  { %1857 = vmatprep.subr.mxu0 %v3670_v57  ;;  %1928 = vmatprep.subr.mxu1 %v3673_v58 }
 0x738   :  { %1858 = vmatpush1.msra.mxu0 %v3676_v59  ;;  %1929 = vmatpush1.msra.mxu1 %v3679_v60 }
 0x739   :  { %1859 = vmatprep.subr.mxu0 %v3682_v61  ;;  %1930 = vmatprep.subr.mxu1 %v3685_v63 }
 0x73a   :  { %1860 = vmatpush1.msra.mxu0 %v3688_v1  ;;  %1931 = vmatpush1.msra.mxu1 %v3691_v20 }
 0x73b   :  { %1861 = vmatprep.subr.mxu0 %v3694_v21  ;;  %1932 = vmatprep.subr.mxu1 %v3697_v22 }
 0x73c   :  { %1862 = vmatpush1.msra.mxu0 %v3700_v23  ;;  %1933 = vmatpush1.msra.mxu1 %v3703_v24 }
 0x73d   :  { %1863 = vmatprep.subr.mxu0 %v4548_v16  ;;  %1934 = vmatprep.subr.mxu1 %v4549_v0 }
 0x73e   :  { %1864 = vmatpush1.msra.mxu0 %v4550_v11  ;;  %1935 = vmatpush1.msra.mxu1 %v4551_v19 }
 0x73f   :  { %1865 = vmatprep.subr.mxu0 %v4552_v5  ;;  %1936 = vmatprep.subr.mxu1 %v4553_v8 }
 0x740   :  { %1866 = vmatpush1.msra.mxu0 %v4554_v6  ;;  %1937 = vmatpush1.msra.mxu1 %v4555_v62 }
 0x741   :  { %1867 = vmatprep.subr.mxu0 %v4556_v10  ;;  %1938 = vmatprep.subr.mxu1 %v4557_v35 }
 0x742   :  { %1868 = vmatpush1.msra.mxu0 %v4558_v15  ;;  %1939 = vmatpush1.msra.mxu1 %v4559_v26 }
 0x743   :  { %1869 = vmatprep.subr.mxu0 %v4560_v12  ;;  %1940 = vmatprep.subr.mxu1 %v4561_v53 }
 0x744   :  { %1870 = vmatpush1.msra.mxu0 %v4562_v17  ;;  %1941 = vmatpush1.msra.mxu1 %v4563_v18 }
 0x745   :  { %1871 = vmatprep.subr.mxu0 %v4564_v13  ;;  %1942 = vmatprep.subr.mxu1 %v4565_v4 }
 0x746   :  { %1872 = vmatpush1.msra.mxu0 %v4566_v9  ;;  %1905 = vmatprep.mubr.f32.mxu0 %v4567_v44 }
 0x747   :  { %1943 = vmatpush1.msra.mxu1 %v4568_v29  ;;  %1976 = vmatprep.mubr.f32.mxu1 %v4567_v44  ;;  %v4575_v29 = vld [vmem:[#allocation61_spill] sm:$0xff] }
 0x748   :  { %2007 = vmatprep.subr.mxu0 %v4569_v30  ;;  %2078 = vmatprep.subr.mxu1 %v4570_v40 }
 0x7e7   :  { %v1737_v41 = vpop.f32.mrf.mxu0  ;;  %v1808_v25 = vpop.f32.mrf.mxu1 }
 0x7e8   :  { %v1738_v32 = vadd.f32 %v1737_v41, %v4571_v47  ;;  %v1809_v46 = vadd.f32 %v1808_v25, %v3321_v3 }
 0x7e9   :  { %v1739_v38 = vpop.f32.mrf.mxu0  ;;  %v1810_v28 = vpop.f32.mrf.mxu1 }
 0x7ea   :  { %v1813_v39 = vadd.f32 %v1738_v32, %v4572_v31  ;;  %v1740_v33 = vadd.f32 %v1739_v38, %v3315_v14  ;;  %v1815_v30 = vadd.f32 %v1809_v46, %v4574_v49  ;;  %v1811_v40 = vadd.f32 %v1810_v28, %v3324_v2 }
 0x7ec   :  { %v2491_v36 = vmul.f32 -1.442695, %v1813_v39  ;;  %v1814_v27 = vadd.f32 %v1740_v33, %v4573_v43  ;;  %v2493_v41 = vmul.f32 -1.442695, %v1815_v30  ;;  %v1816_v32 = vadd.f32 %v1811_v40, %v4575_v29  ;;  %v4016_v30 = vld [vmem:[#allocation3 + $0x260] sm:$0xff]  ;;  %v4019_v40 = vld [vmem:[#allocation3 + $0x270] sm:$0xff] }
 0x7ee   :  { %2674 = vpow2.f32 %v2491_v36  ;;  %v2492_v34 = vmul.f32 -1.442695, %v1814_v27 }
 0x7f0   :  { %2676 = vpow2.f32 %v2492_v34 }
 0x7f1   :  { %2678 = vpow2.f32 %v2493_v41  ;;  %v4025_v41 = vld [vmem:[#allocation3 + $0x258] sm:$0xff] }
 0x7fb   :  { %v2675_v47 = vpop.eup %2674 }
 0x7fc   :  { %v1826_v31 = vadd.f32 1.0, %v2675_v47 }
 0x7fd   :  { %v2677_v38 = vpop.eup %2676 }
 0x7fe   :  { %2680 = vrcp.f32 %v1826_v31  ;;  %v1827_v39 = vadd.f32 1.0, %v2677_v38  ;;  %v2679_v33 = vpop.eup %2678  ;;  %v4031_v31 = vld [vmem:[#allocation3 + $0x250] sm:$0xff]  ;;  %v4034_v38 = vld [vmem:[#allocation3 + $0x228] sm:$0xff] }
 0x7ff   :  { %2682 = vtanh.f32 %v1816_v32  ;;  %v1828_v25 = vadd.f32 1.0, %v2679_v33  ;;  %v4028_v32 = vld [vmem:[#allocation3 + $0x240] sm:$0xff] }
 0x800   :  { %2684 = vrcp.f32 %v1827_v39  ;;  %v4037_v39 = vld [vmem:[#allocation3 + $0x238] sm:$0xff]  ;;  %v4040_v33 = vld [vmem:[#allocation3 + $0x220] sm:$0xff] }
 0x801   :  { %2686 = vrcp.f32 %v1828_v25  ;;  %v4052_v25 = vld [vmem:[#allocation3 + $0x200] sm:$0xff] }
 0x802   :  { %4576 = vst [vmem:[#allocation29_spill] sm:$0xff] %v4052_v25 }
 0x80b   :  { %v2681_v36 = vpop.eup %2680 }
 0x80c   :  { %v2683_v43 = vpop.eup %2682 }
 0x80d   :  { %v2685_v27 = vpop.eup %2684  ;;  %v1837_v46 = vmul.f32 %v2683_v43, %v2681_v36  ;;  %v4043_v36 = vld [vmem:[#allocation3 + $0x230] sm:$0xff]  ;;  %v4046_v43 = vld [vmem:[#allocation3 + $0x208] sm:$0xff] }
 0x80e   :  { %v1836_v34 = vmul.f32 %v2685_v27, %v3935_v37  ;;  %v2687_v29 = vpop.eup %2686  ;;  %v4022_v37 = vld [vmem:[#allocation3 + $0x248] sm:$0xff]  ;;  %v4049_v27 = vld [vmem:[#allocation3 + $0x218] sm:$0xff] }
 0x810   :  { %v4013_v28 = vadd.f32 %v1837_v46, %v1836_v34  ;;  %v4055_v34 = vld [vmem:[#allocation3 + $0x210] sm:$0xff]  ;;  %v4058_v46 = vld [vmem:[#allocation3 + $0x1e8] sm:$0xff] }
 0x811   :  { %4577 = vst [vmem:[#allocation30_spill] sm:$0xff] %v4055_v34 }
 0x812   :  { %2688 = vtanh.f32 %v4013_v28 }
 0x81f   :  { %v2689_v47 = vpop.eup %2688 }
 0x820   :  { %v1840_v49 = vmul.f32 %v2689_v47, %v2687_v29  ;;  %v4061_v29 = vld [vmem:[#allocation3 + $0x1f8] sm:$0xff]  ;;  %v4064_v47 = vld [vmem:[#allocation3 + $0x1e0] sm:$0xff] }
 0x822   :  { %1906 = vmatmul.mubr.f32.vlgmr.msra.gmra.mxu0 %v1840_v49  ;;  %1977 = vmatmul.mubr.f32.vlgmr.msra.gmra.mxu1 %v1840_v49  ;;  %v4067_v49 = vld [vmem:[#allocation3 + $0x1f0] sm:$0xff] }
 0x823   :  { %2008 = vmatpush1.msra.mxu0 %v4016_v30  ;;  %2079 = vmatpush1.msra.mxu1 %v4019_v40 }
 0x824   :  { %2009 = vmatprep.subr.mxu0 %v4022_v37  ;;  %2080 = vmatprep.subr.mxu1 %v4025_v41 }
 0x825   :  { %2010 = vmatpush1.msra.mxu0 %v4028_v32  ;;  %2081 = vmatpush1.msra.mxu1 %v4031_v31 }
 0x826   :  { %2011 = vmatprep.subr.mxu0 %v4034_v38  ;;  %2082 = vmatprep.subr.mxu1 %v4037_v39 }
 0x827   :  { %2012 = vmatpush1.msra.mxu0 %v4040_v33  ;;  %2083 = vmatpush1.msra.mxu1 %v4043_v36 }
 0x828   :  { %2013 = vmatprep.subr.mxu0 %v4046_v43  ;;  %2084 = vmatprep.subr.mxu1 %v4049_v27 }
 0x829   :  { %2014 = vmatpush1.msra.mxu0 %v4052_v25  ;;  %2085 = vmatpush1.msra.mxu1 %v4055_v34  ;;  %v4070_v25 = vld [vmem:[#allocation3 + $0x1c8] sm:$0xff]  ;;  %v4073_v34 = vld [vmem:[#allocation3 + $0x1d8] sm:$0xff] }
 0x82a   :  { %2015 = vmatprep.subr.mxu0 %v4058_v46  ;;  %2086 = vmatprep.subr.mxu1 %v4061_v29 }
 0x82b   :  { %2016 = vmatpush1.msra.mxu0 %v4064_v47  ;;  %2087 = vmatpush1.msra.mxu1 %v4067_v49 }
 0x82c   :  { %2017 = vmatprep.subr.mxu0 %v4070_v25  ;;  %2088 = vmatprep.subr.mxu1 %v4073_v34 }
 0x82d   :  { %2018 = vmatpush1.msra.mxu0 %v3640_v7  ;;  %2089 = vmatpush1.msra.mxu1 %v3643_v42  ;;  %v4578_v7 = vld [vmem:[#allocation28_spill] sm:$0xff]  ;;  %v2822_v42 = vld [vmem:[#allocation3 + $0x268] sm:$0xff] }
 0x82e   :  { %2019 = vmatprep.subr.mxu0 %v3646_v45  ;;  %2090 = vmatprep.subr.mxu1 %v3649_v48  ;;  %v2823_v45 = vld [vmem:[#allocation3 + $0x278] sm:$0xff] }
 0x82f   :  { %2020 = vmatpush1.msra.mxu0 %v3652_v50  ;;  %2091 = vmatpush1.msra.mxu1 %v3655_v51  ;;  %v4579_v50 = vld [vmem:[#allocation59_spill] sm:$0xff] }
 0x830   :  { %2021 = vmatprep.subr.mxu0 %v3658_v52  ;;  %2092 = vmatprep.subr.mxu1 %v3661_v54 }
 0x831   :  { %2022 = vmatpush1.msra.mxu0 %v3664_v55  ;;  %2093 = vmatpush1.msra.mxu1 %v3667_v56 }
 0x832   :  { %2023 = vmatprep.subr.mxu0 %v3670_v57  ;;  %2094 = vmatprep.subr.mxu1 %v3673_v58 }
 0x833   :  { %2024 = vmatpush1.msra.mxu0 %v3676_v59  ;;  %2095 = vmatpush1.msra.mxu1 %v3679_v60 }
 0x834   :  { %2025 = vmatprep.subr.mxu0 %v3682_v61  ;;  %2096 = vmatprep.subr.mxu1 %v3685_v63 }
 0x835   :  { %2026 = vmatpush1.msra.mxu0 %v3688_v1  ;;  %2097 = vmatpush1.msra.mxu1 %v3691_v20 }
 0x836   :  { %2027 = vmatprep.subr.mxu0 %v3694_v21  ;;  %2098 = vmatprep.subr.mxu1 %v3697_v22 }
 0x837   :  { %2028 = vmatpush1.msra.mxu0 %v3700_v23  ;;  %2099 = vmatpush1.msra.mxu1 %v3703_v24 }
 0x838   :  { %2029 = vmatprep.subr.mxu0 %v4548_v16  ;;  %2100 = vmatprep.subr.mxu1 %v4549_v0 }
 0x839   :  { %2030 = vmatpush1.msra.mxu0 %v4550_v11  ;;  %2101 = vmatpush1.msra.mxu1 %v4551_v19 }
 0x83a   :  { %2031 = vmatprep.subr.mxu0 %v4552_v5  ;;  %2102 = vmatprep.subr.mxu1 %v4553_v8 }
 0x83b   :  { %2032 = vmatpush1.msra.mxu0 %v4554_v6  ;;  %2103 = vmatpush1.msra.mxu1 %v4555_v62 }
 0x83c   :  { %2033 = vmatprep.subr.mxu0 %v4556_v10  ;;  %2104 = vmatprep.subr.mxu1 %v4557_v35  ;;  %v4580_v10 = vld [vmem:[#allocation29_spill] sm:$0xff]  ;;  %v4581_v35 = vld [vmem:[#allocation30_spill] sm:$0xff] }
 0x83d   :  { %2034 = vmatpush1.msra.mxu0 %v4558_v15  ;;  %2105 = vmatpush1.msra.mxu1 %v4559_v26  ;;  %v2824_v15 = vld [vmem:[#allocation3 + $0x1c0] sm:$0xff]  ;;  %v2825_v26 = vld [vmem:[#allocation3 + $0x1d0] sm:$0xff] }
 0x83e   :  { %2035 = vmatprep.subr.mxu0 %v4560_v12  ;;  %2106 = vmatprep.subr.mxu1 %v4561_v53  ;;  %v2826_v12 = vld [vmem:[#allocation3 + $0x1a8] sm:$0xff]  ;;  %v2827_v53 = vld [vmem:[#allocation3 + $0x1b8] sm:$0xff] }
 0x83f   :  { %2036 = vmatpush1.msra.mxu0 %v4562_v17  ;;  %2107 = vmatpush1.msra.mxu1 %v4563_v18  ;;  %v2828_v17 = vld [vmem:[#allocation3 + $0x1a0] sm:$0xff]  ;;  %v2829_v18 = vld [vmem:[#allocation3 + $0x1b0] sm:$0xff] }
 0x840   :  { %2037 = vmatprep.subr.mxu0 %v4564_v13  ;;  %2108 = vmatprep.subr.mxu1 %v4565_v4  ;;  %v2830_v13 = vld [vmem:[#allocation3 + $0x188] sm:$0xff]  ;;  %v2831_v4 = vld [vmem:[#allocation3 + $0x198] sm:$0xff] }
 0x841   :  { %2038 = vmatpush1.msra.mxu0 %v4566_v9  ;;  %2071 = vmatprep.mubr.f32.mxu0 %v4567_v44  ;;  %v2832_v9 = vld [vmem:[#allocation3 + $0x180] sm:$0xff] }
 0x842   :  { %2109 = vmatpush1.msra.mxu1 %v4578_v7  ;;  %2142 = vmatprep.mubr.f32.mxu1 %v4567_v44  ;;  %v2852_v7 = vld [vmem:[#allocation3 + $0xe0] sm:$0xff] }
 0x843   :  { %2173 = vmatprep.subr.mxu0 %v2822_v42  ;;  %2244 = vmatprep.subr.mxu1 %v2823_v45  ;;  %v2853_v42 = vld [vmem:[#allocation3 + $0xf0] sm:$0xff]  ;;  %v2854_v45 = vld [vmem:[#allocation3 + $0xc8] sm:$0xff] }
 0x8e2   :  { %v1907_v48 = vpop.f32.mrf.mxu0  ;;  %v1978_v57 = vpop.f32.mrf.mxu1 }
 0x8e3   :  { %v1908_v51 = vadd.f32 %v1907_v48, %v4579_v50  ;;  %v1979_v58 = vadd.f32 %v1978_v57, %v3321_v3  ;;  %v2855_v48 = vld [vmem:[#allocation3 + $0xd8] sm:$0xff]  ;;  %v2861_v57 = vld [vmem:[#allocation3 + $0xb0] sm:$0xff] }
 0x8e4   :  { %v1909_v52 = vpop.f32.mrf.mxu0  ;;  %v1980_v59 = vpop.f32.mrf.mxu1 }
 0x8e5   :  { %v2494_v54 = vmul.f32 -1.442695, %v1908_v51  ;;  %v1910_v55 = vadd.f32 %v1909_v52, %v3315_v14  ;;  %v2496_v60 = vmul.f32 -1.442695, %v1979_v58  ;;  %v1981_v63 = vadd.f32 %v1980_v59, %v3324_v2  ;;  %v2856_v51 = vld [vmem:[#allocation3 + $0xc0] sm:$0xff]  ;;  %v2857_v52 = vld [vmem:[#allocation3 + $0xd0] sm:$0xff] }
 0x8e6   :  { %v2862_v58 = vld [vmem:[#allocation3 + $0x88] sm:$0xff]  ;;  %v2863_v59 = vld [vmem:[#allocation3 + $0x98] sm:$0xff] }
 0x8e7   :  { %2690 = vpow2.f32 %v2494_v54  ;;  %v2495_v56 = vmul.f32 -1.442695, %v1910_v55  ;;  %v2858_v54 = vld [vmem:[#allocation3 + $0xa8] sm:$0xff]  ;;  %v2859_v55 = vld [vmem:[#allocation3 + $0xb8] sm:$0xff] }
 0x8e9   :  { %2692 = vpow2.f32 %v2495_v56  ;;  %v2860_v56 = vld [vmem:[#allocation3 + $0xa0] sm:$0xff] }
 0x8ea   :  { %2694 = vpow2.f32 %v2496_v60  ;;  %v2864_v60 = vld [vmem:[#allocation3 + $0x80] sm:$0xff] }
 0x8f4   :  { %v2691_v61 = vpop.eup %2690 }
 0x8f5   :  { %v1992_v1 = vadd.f32 1.0, %v2691_v61  ;;  %v2865_v61 = vld [vmem:[#allocation3 + $0x90] sm:$0xff] }
 0x8f6   :  { %v2693_v20 = vpop.eup %2692 }
 0x8f7   :  { %2696 = vrcp.f32 %v1992_v1  ;;  %v1993_v21 = vadd.f32 1.0, %v2693_v20  ;;  %v2695_v22 = vpop.eup %2694 }
 0x8f8   :  { %2698 = vtanh.f32 %v1981_v63  ;;  %v1994_v0 = vadd.f32 1.0, %v2695_v22 }
 0x8f9   :  { %2700 = vrcp.f32 %v1993_v21 }
 0x8fa   :  { %2702 = vrcp.f32 %v1994_v0 }
 0x904   :  { %v2697_v23 = vpop.eup %2696 }
 0x905   :  { %v2699_v24 = vpop.eup %2698 }
 0x906   :  { %v2701_v16 = vpop.eup %2700  ;;  %v2003_v19 = vmul.f32 %v2699_v24, %v2697_v23 }
 0x907   :  { %v2002_v11 = vmul.f32 %v2701_v16, %v4013_v28  ;;  %v2703_v8 = vpop.eup %2702  ;;  %v2833_v28 = vld [vmem:[#allocation3 + $0x190] sm:$0xff] }
 0x909   :  { %v4125_v5 = vadd.f32 %v2003_v19, %v2002_v11 }
 0x90b   :  { %2704 = vtanh.f32 %v4125_v5 }
 0x918   :  { %v2705_v6 = vpop.eup %2704 }
 0x919   :  { %v2006_v62 = vmul.f32 %v2705_v6, %v2703_v8 }
 0x91b   :  { %2072 = vmatmul.mubr.f32.vlgmr.msra.gmra.mxu0 %v2006_v62  ;;  %2143 = vmatmul.mubr.f32.vlgmr.msra.gmra.mxu1 %v2006_v62 }
 0x91c   :  { %2174 = vmatpush1.msra.mxu0 %v4016_v30  ;;  %2245 = vmatpush1.msra.mxu1 %v4019_v40  ;;  %v2834_v30 = vld [vmem:[#allocation3 + $0x168] sm:$0xff]  ;;  %v2835_v40 = vld [vmem:[#allocation3 + $0x178] sm:$0xff] }
 0x91d   :  { %2175 = vmatprep.subr.mxu0 %v4022_v37  ;;  %2246 = vmatprep.subr.mxu1 %v4025_v41  ;;  %v2836_v37 = vld [vmem:[#allocation3 + $0x160] sm:$0xff]  ;;  %v2837_v41 = vld [vmem:[#allocation3 + $0x170] sm:$0xff] }
 0x91e   :  { %2176 = vmatpush1.msra.mxu0 %v4028_v32  ;;  %2247 = vmatpush1.msra.mxu1 %v4031_v31  ;;  %v2838_v32 = vld [vmem:[#allocation3 + $0x148] sm:$0xff]  ;;  %v2839_v31 = vld [vmem:[#allocation3 + $0x158] sm:$0xff] }
 0x91f   :  { %2177 = vmatprep.subr.mxu0 %v4034_v38  ;;  %2248 = vmatprep.subr.mxu1 %v4037_v39  ;;  %v2840_v38 = vld [vmem:[#allocation3 + $0x140] sm:$0xff]  ;;  %v2841_v39 = vld [vmem:[#allocation3 + $0x150] sm:$0xff] }
 0x920   :  { %2178 = vmatpush1.msra.mxu0 %v4040_v33  ;;  %2249 = vmatpush1.msra.mxu1 %v4043_v36  ;;  %v2842_v33 = vld [vmem:[#allocation3 + $0x128] sm:$0xff]  ;;  %v2843_v36 = vld [vmem:[#allocation3 + $0x138] sm:$0xff] }
 0x921   :  { %2179 = vmatprep.subr.mxu0 %v4046_v43  ;;  %2250 = vmatprep.subr.mxu1 %v4049_v27  ;;  %v2844_v43 = vld [vmem:[#allocation3 + $0x120] sm:$0xff]  ;;  %v2845_v27 = vld [vmem:[#allocation3 + $0x130] sm:$0xff] }
 0x922   :  { %2180 = vmatpush1.msra.mxu0 %v4580_v10  ;;  %2251 = vmatpush1.msra.mxu1 %v4581_v35 }
 0x923   :  { %2181 = vmatprep.subr.mxu0 %v4058_v46  ;;  %2252 = vmatprep.subr.mxu1 %v4061_v29  ;;  %v2848_v46 = vld [vmem:[#allocation3 + $0x100] sm:$0xff]  ;;  %v2849_v29 = vld [vmem:[#allocation3 + $0x110] sm:$0xff] }
 0x924   :  { %2182 = vmatpush1.msra.mxu0 %v4064_v47  ;;  %2253 = vmatpush1.msra.mxu1 %v4067_v49  ;;  %v2850_v47 = vld [vmem:[#allocation3 + $0xe8] sm:$0xff]  ;;  %v2851_v49 = vld [vmem:[#allocation3 + $0xf8] sm:$0xff] }
 0x925   :  { %2183 = vmatprep.subr.mxu0 %v4070_v25  ;;  %2254 = vmatprep.subr.mxu1 %v4073_v34  ;;  %v2846_v25 = vld [vmem:[#allocation3 + $0x108] sm:$0xff]  ;;  %v2847_v34 = vld [vmem:[#allocation3 + $0x118] sm:$0xff] }
 0x926   :  { %2184 = vmatpush1.msra.mxu0 %v2824_v15  ;;  %2255 = vmatpush1.msra.mxu1 %v2825_v26 }
 0x927   :  { %2185 = vmatprep.subr.mxu0 %v2826_v12  ;;  %2256 = vmatprep.subr.mxu1 %v2827_v53 }
 0x928   :  { %2186 = vmatpush1.msra.mxu0 %v2828_v17  ;;  %2257 = vmatpush1.msra.mxu1 %v2829_v18 }
 0x929   :  { %2187 = vmatprep.subr.mxu0 %v2830_v13  ;;  %2258 = vmatprep.subr.mxu1 %v2831_v4 }
 0x92a   :  { %2188 = vmatpush1.msra.mxu0 %v2832_v9  ;;  %2259 = vmatpush1.msra.mxu1 %v2833_v28 }
 0x92b   :  { %2189 = vmatprep.subr.mxu0 %v2834_v30  ;;  %2260 = vmatprep.subr.mxu1 %v2835_v40  ;;  %v2354_v30 = vld [vmem:[%s4236_s2 + $0x78] sm:$0xff]  ;;  %v2352_v40 = vld [vmem:[%s4236_s2 + $0x68] sm:$0xff] }
 0x92c   :  { %2190 = vmatpush1.msra.mxu0 %v2836_v37  ;;  %2261 = vmatpush1.msra.mxu1 %v2837_v41  ;;  %v2351_v37 = vld [vmem:[%s4236_s2 + $0x60] sm:$0xff]  ;;  %v2350_v41 = vld [vmem:[%s4236_s2 + $0x58] sm:$0xff] }
 0x92d   :  { %2191 = vmatprep.subr.mxu0 %v2838_v32  ;;  %2262 = vmatprep.subr.mxu1 %v2839_v31  ;;  %v2349_v32 = vld [vmem:[%s4236_s2 + $0x50] sm:$0xff]  ;;  %v2348_v31 = vld [vmem:[%s4236_s2 + $0x48] sm:$0xff] }
 0x92e   :  { %2192 = vmatpush1.msra.mxu0 %v2840_v38  ;;  %2263 = vmatpush1.msra.mxu1 %v2841_v39  ;;  %v2347_v38 = vld [vmem:[%s4236_s2 + $0x40] sm:$0xff]  ;;  %v2346_v39 = vld [vmem:[%s4236_s2 + $0x38] sm:$0xff] }
 0x92f   :  { %2193 = vmatprep.subr.mxu0 %v2842_v33  ;;  %2264 = vmatprep.subr.mxu1 %v2843_v36  ;;  %v2345_v33 = vld [vmem:[%s4236_s2 + $0x30] sm:$0xff]  ;;  %v2344_v36 = vld [vmem:[%s4236_s2 + $0x28] sm:$0xff] }
 0x930   :  { %2194 = vmatpush1.msra.mxu0 %v2844_v43  ;;  %2265 = vmatpush1.msra.mxu1 %v2845_v27  ;;  %v2343_v43 = vld [vmem:[%s4236_s2 + $0x20] sm:$0xff]  ;;  %v2342_v27 = vld [vmem:[%s4236_s2 + $0x18] sm:$0xff] }
 0x931   :  { %2195 = vmatprep.subr.mxu0 %v2846_v25  ;;  %2266 = vmatprep.subr.mxu1 %v2847_v34  ;;  %v2341_v25 = vld [vmem:[%s4236_s2 + $0x10] sm:$0xff]  ;;  %v2340_v34 = vld [vmem:[%s4236_s2 + $0x8] sm:$0xff] }
 0x932   :  { %2196 = vmatpush1.msra.mxu0 %v2848_v46  ;;  %2267 = vmatpush1.msra.mxu1 %v2849_v29  ;;  %v2339_v46 = vld [vmem:[%s4236_s2] sm:$0xff] }
 0x933   :  { %2197 = vmatprep.subr.mxu0 %v2850_v47  ;;  %2268 = vmatprep.subr.mxu1 %v2851_v49 }
 0x934   :  { %2198 = vmatpush1.msra.mxu0 %v2852_v7  ;;  %2269 = vmatpush1.msra.mxu1 %v2853_v42 }
 0x935   :  { %2199 = vmatprep.subr.mxu0 %v2854_v45  ;;  %2270 = vmatprep.subr.mxu1 %v2855_v48 }
 0x936   :  { %2200 = vmatpush1.msra.mxu0 %v2856_v51  ;;  %2271 = vmatpush1.msra.mxu1 %v2857_v52 }
 0x937   :  { %2201 = vmatprep.subr.mxu0 %v2858_v54  ;;  %2272 = vmatprep.subr.mxu1 %v2859_v55 }
 0x938   :  { %2202 = vmatpush1.msra.mxu0 %v2860_v56  ;;  %2273 = vmatpush1.msra.mxu1 %v2861_v57 }
 0x939   :  { %2203 = vmatprep.subr.mxu0 %v2862_v58  ;;  %2274 = vmatprep.subr.mxu1 %v2863_v59 }
 0x93a   :  { %2204 = vmatpush1.msra.mxu0 %v2864_v60  ;;  %2237 = vmatprep.mubr.f32.mxu0 %v4567_v44 }
 0x93b   :  { %2275 = vmatpush1.msra.mxu1 %v2865_v61  ;;  %2308 = vmatprep.mubr.f32.mxu1 %v4567_v44 }
 0x93c   :  { %2521 = vmatprep.subr.mxu0 %v4567_v44 }
 0x9db   :  { %v2073_v63 = vpop.f32.mrf.mxu0  ;;  %v2144_v24 = vpop.f32.mrf.mxu1 }
 0x9dc   :  { %v2074_v1 = vadd.f32 %v2073_v63, %v4579_v50  ;;  %v2145_v16 = vadd.f32 %v2144_v24, %v3321_v3 }
 0x9dd   :  { %v2075_v20 = vpop.f32.mrf.mxu0  ;;  %v2146_v0 = vpop.f32.mrf.mxu1 }
 0x9de   :  { %v2497_v21 = vmul.f32 -1.442695, %v2074_v1  ;;  %v2076_v22 = vadd.f32 %v2075_v20, %v3315_v14  ;;  %v2499_v11 = vmul.f32 -1.442695, %v2145_v16  ;;  %v2147_v8 = vadd.f32 %v2146_v0, %v3324_v2 }
 0x9e0   :  { %2706 = vpow2.f32 %v2497_v21  ;;  %v2498_v23 = vmul.f32 -1.442695, %v2076_v22  ;;  %v2503_v22 = vld [vmem:[%s4236_s2 + $0x80] ss:$0 sm:$0xff] }
 0x9e2   :  { %2708 = vpow2.f32 %v2498_v23 }
 0x9e3   :  { %2710 = vpow2.f32 %v2499_v11 }
 0x9ed   :  { %v2707_v19 = vpop.eup %2706 }
 0x9ee   :  { %v2158_v6 = vadd.f32 1.0, %v2707_v19 }
 0x9ef   :  { %v2709_v62 = vpop.eup %2708 }
 0x9f0   :  { %2712 = vrcp.f32 %v2158_v6  ;;  %v2159_v10 = vadd.f32 1.0, %v2709_v62  ;;  %v2711_v35 = vpop.eup %2710 }
 0x9f1   :  { %2714 = vtanh.f32 %v2147_v8  ;;  %v2160_v53 = vadd.f32 1.0, %v2711_v35 }
 0x9f2   :  { %2716 = vrcp.f32 %v2159_v10 }
 0x9f3   :  { %2718 = vrcp.f32 %v2160_v53 }
 0x9fd   :  { %v2713_v15 = vpop.eup %2712 }
 0x9fe   :  { %v2715_v26 = vpop.eup %2714 }
 0x9ff   :  { %v2717_v12 = vpop.eup %2716  ;;  %v2169_v18 = vmul.f32 %v2715_v26, %v2713_v15 }
 0xa00   :  { %v2168_v17 = vmul.f32 %v2717_v12, %v4125_v5  ;;  %v2719_v4 = vpop.eup %2718  ;;  %v2353_v5 = vld [vmem:[%s4236_s2 + $0x70] sm:$0xff] }
 0xa02   :  { %v4156_v13 = vadd.f32 %v2169_v18, %v2168_v17 }
 0xa04   :  { %2720 = vtanh.f32 %v4156_v13 }
 0xa11   :  { %v2721_v9 = vpop.eup %2720 }
 0xa12   :  { %v2172_v28 = vmul.f32 %v2721_v9, %v2719_v4 }
 0xa14   :  { %2238 = vmatmul.mubr.f32.vlgmr.msra.gmra.mxu0 %v2172_v28  ;;  %2309 = vmatmul.mubr.f32.vlgmr.msra.gmra.mxu1 %v2172_v28 }
 0xa15   :  { %2522 = vmatpush3.msra.mxu0 %v2354_v30  ;;  %2553 = vmatprep.mubr.msk.f32.mxu0 %vm2914_vm4, %v4567_v44 }
 0xa16   :  { %2523 = vmatprep.subr.mxu0 %v4567_v44 }
 0xa17   :  { %2524 = vmatpush3.msra.mxu0 %v2353_v5 }
 0xa18   :  { %2525 = vmatprep.subr.mxu0 %v4567_v44 }
 0xa19   :  { %2526 = vmatpush3.msra.mxu0 %v2352_v40 }
 0xa1a   :  { %2527 = vmatprep.subr.mxu0 %v4567_v44 }
 0xa1b   :  { %2528 = vmatpush3.msra.mxu0 %v2351_v37 }
 0xa1c   :  { %2529 = vmatprep.subr.mxu0 %v4567_v44 }
 0xa1d   :  { %2530 = vmatpush3.msra.mxu0 %v2350_v41 }
 0xa1e   :  { %2531 = vmatprep.subr.mxu0 %v4567_v44 }
 0xa1f   :  { %2532 = vmatpush3.msra.mxu0 %v2349_v32 }
 0xa20   :  { %2533 = vmatprep.subr.mxu0 %v4567_v44 }
 0xa21   :  { %2534 = vmatpush3.msra.mxu0 %v2348_v31 }
 0xa22   :  { %2535 = vmatprep.subr.mxu0 %v4567_v44 }
 0xa23   :  { %2536 = vmatpush3.msra.mxu0 %v2347_v38 }
 0xa24   :  { %2537 = vmatprep.subr.mxu0 %v4567_v44 }
 0xa25   :  { %2538 = vmatpush3.msra.mxu0 %v2346_v39 }
 0xa26   :  { %2539 = vmatprep.subr.mxu0 %v4567_v44 }
 0xa27   :  { %2540 = vmatpush3.msra.mxu0 %v2345_v33 }
 0xa28   :  { %2541 = vmatprep.subr.mxu0 %v4567_v44 }
 0xa29   :  { %2542 = vmatpush3.msra.mxu0 %v2344_v36 }
 0xa2a   :  { %2543 = vmatprep.subr.mxu0 %v4567_v44 }
 0xa2b   :  { %2544 = vmatpush3.msra.mxu0 %v2343_v43 }
 0xa2c   :  { %2545 = vmatprep.subr.mxu0 %v4567_v44 }
 0xa2d   :  { %2546 = vmatpush3.msra.mxu0 %v2342_v27 }
 0xa2e   :  { %2547 = vmatprep.subr.mxu0 %v4567_v44 }
 0xa2f   :  { %2548 = vmatpush3.msra.mxu0 %v2341_v25 }
 0xa30   :  { %2549 = vmatprep.subr.mxu0 %v4567_v44 }
 0xa31   :  { %2550 = vmatpush3.msra.mxu0 %v2340_v34 }
 0xa32   :  { %2551 = vmatprep.subr.mxu0 %v4567_v44 }
 0xa33   :  { %2552 = vmatpush3.msra.mxu0 %v2339_v46 }
 0xad4   :  { %v2239_v29 = vpop.f32.mrf.mxu0  ;;  %v2310_v48 = vpop.f32.mrf.mxu1 }
 0xad5   :  { %v2240_v47 = vadd.f32 %v2239_v29, %v4579_v50  ;;  %v2311_v51 = vadd.f32 %v2310_v48, %v3321_v3 }
 0xad6   :  { %v2241_v49 = vpop.f32.mrf.mxu0  ;;  %v2312_v52 = vpop.f32.mrf.mxu1 }
 0xad7   :  { %v2500_v7 = vmul.f32 -1.442695, %v2240_v47  ;;  %v2242_v42 = vadd.f32 %v2241_v49, %v3315_v14  ;;  %v2502_v54 = vmul.f32 -1.442695, %v2311_v51  ;;  %v2313_v56 = vadd.f32 %v2312_v52, %v3324_v2 }
 0xad9   :  { %2722 = vpow2.f32 %v2500_v7  ;;  %v2501_v45 = vmul.f32 -1.442695, %v2242_v42 }
 0xadb   :  { %2724 = vpow2.f32 %v2501_v45 }
 0xadc   :  { %2726 = vpow2.f32 %v2502_v54 }
 0xae6   :  { %v2723_v55 = vpop.eup %2722 }
 0xae7   :  { %v2324_v44 = vadd.f32 1.0, %v2723_v55 }
 0xae8   :  { %v2725_v57 = vpop.eup %2724 }
 0xae9   :  { %2728 = vrcp.f32 %v2324_v44  ;;  %v2325_v50 = vadd.f32 1.0, %v2725_v57  ;;  %v2727_v58 = vpop.eup %2726 }
 0xaea   :  { %2730 = vtanh.f32 %v2313_v56  ;;  %v2326_v61 = vadd.f32 1.0, %v2727_v58 }
 0xaeb   :  { %2732 = vrcp.f32 %v2325_v50 }
 0xaec   :  { %2734 = vrcp.f32 %v2326_v61 }
 0xaf6   :  { %v2729_v14 = vpop.eup %2728 }
 0xaf7   :  { %v2731_v59 = vpop.eup %2730 }
 0xaf8   :  { %v2733_v60 = vpop.eup %2732  ;;  %v2335_v3 = vmul.f32 %v2731_v59, %v2729_v14 }
 0xaf9   :  { %v2334_v63 = vmul.f32 %v2733_v60, %v4156_v13  ;;  %v2735_v20 = vpop.eup %2734 }
 0xafb   :  { %v2336_v1 = vadd.f32 %v2335_v3, %v2334_v63 }
 0xafd   :  { %2736 = vtanh.f32 %v2336_v1 }
 0xb0a   :  { %v2737_v2 = vpop.eup %2736 }
 0xb0b   :  { %v2338_v21 = vmul.f32 %v2737_v2, %v2735_v20 }
 0xb0d   :  { %2554 = vmatmul.mubr.f32.vlgmr.msra.gmra.mxu0 %v2338_v21 }
 0xbcd   :  { %v2426_v23 = vpop.f32.mrf.mxu0 }
 0xbce   :  { %v2427_v24 = vadd.f32 %v2503_v22, %v2426_v23 }
 0xbcf   :  { %v2555_v16 = vpop.f32.mrf.mxu0 }
 0xbd0   :  { %2431 = vst.msk [vmem:[#allocation6] sm:$0xff] %vm2430_vm5, %v2427_v24 }
 0xbd1   :  { %2897 = shalt.err (!%p2894_p9)
}
 0xbd2   :  { %2441 = dma.vmem_to_hbm [thread:$0]  %s2439_s12, 128, %s4237_s3, [#allocation5]  }
 0xbd3   :  { %2908 = dma.done.wait [#allocation5], 128  }
 0xbd4   :  { %2909 = vsyncadd [#allocation5], 4294967168 }
 0xbd5   :  { %2445 = vsyncpa [#allocation4], 1 }
 0xbd6   :  { %2446 = vsyncpa [#allocation5], 1 }

</bundles_post_ra>
